<compile_context>
chip_gen: v7x
topology: tpu7x:2x2x1
jax: 0.10.0
libtpu: 0.0.40
codegen_flags: <defaults>
</compile_context>

<pallas_src>
import functools

import jax
import jax.numpy as jnp
from jax.experimental import pallas as pl
from jax.experimental.pallas import tpu as pltpu


def _round_up(x, m):
    return (x + m - 1) // m * m


def lstm_kernel(x_ref, wih0_ref, whh0_ref, b0_ref, wih1_ref, whh1_ref, b1_ref,
                wfc_ref, bfc_ref, out_ref, xproj_ref, *,
                seq_len, batch, hidden_size):
    """Single-invocation 2-layer LSTM + final FC.

    x_ref     : (T*B, Dp)    bf16 time-major, flattened, zero-padded input
    wih0_ref  : (Dp, 4H)     bf16 layer-0 input weights (zero rows beyond D_in)
    whh0_ref  : (H, 4H)      bf16 layer-0 hidden weights
    b0_ref    : (1, 4H)      f32  layer-0 bias (b_ih + b_hh folded)
    wih1_ref  : (H, 4H)      bf16 layer-1 input weights
    whh1_ref  : (H, 4H)      bf16 layer-1 hidden weights
    b1_ref    : (1, 4H)      f32  layer-1 bias (b_ih + b_hh folded)
    wfc_ref   : (H, Dout_p)  bf16 final FC weights (zero cols beyond D_out)
    bfc_ref   : (1, Dout_p)  f32
    out_ref   : (B, Dout_p)  f32
    xproj_ref : (T*B, 4H)    f32 VMEM scratch: precomputed x @ Wih0 + b0

    Gate column order in all packed weights/biases is [i, f, o, g].
    """
    T, B, H = seq_len, batch, hidden_size
    bf16 = jnp.bfloat16

    # Phase 1 (off the serial path): input projection for all timesteps at once
    # (bf16 operands, f32 accumulation).
    xproj_ref[...] = (
        jnp.dot(x_ref[...], wih0_ref[...], preferred_element_type=jnp.float32)
        + b0_ref[...])

    # Hoist the layer-1 bias broadcast out of the time loop.
    b1 = jnp.broadcast_to(b1_ref[...], (B, 4 * H))

    def gates_to_hc(gates, c):
        # Gate order [i, f, o, g]: one sigmoid over the contiguous 3H slab,
        # tanh only on the last H lanes.  H = 128 => every slice is a whole
        # lane-aligned vreg column block.
        sig = jax.nn.sigmoid(gates[:, :3 * H])
        i = sig[:, 0 * H:1 * H]
        f = sig[:, 1 * H:2 * H]
        o = sig[:, 2 * H:3 * H]
        g = jnp.tanh(gates[:, 3 * H:4 * H])
        c_new = f * c + i * g
        h_new = o * jnp.tanh(c_new)
        return h_new, c_new

    def step(t, carry):
        h0, c0, h1, c1 = carry
        row = pl.multiple_of(t * B, 8)          # aligned, unmasked sublane load
        # Layer 0: only the recurrent matmul remains on the serial path.
        g0 = (xproj_ref[pl.ds(row, B), :]
              + jnp.dot(h0.astype(bf16), whh0_ref[...],
                        preferred_element_type=jnp.float32))
        h0, c0 = gates_to_hc(g0, c0)
        # Layer 1: two dots (no per-step lane concat), both f32-accumulated.
        g1 = (jnp.dot(h0.astype(bf16), wih1_ref[...],
                      preferred_element_type=jnp.float32)
              + jnp.dot(h1.astype(bf16), whh1_ref[...],
                        preferred_element_type=jnp.float32)
              + b1)
        h1, c1 = gates_to_hc(g1, c1)
        return (h0, c0, h1, c1)

    z = jnp.zeros((B, H), jnp.float32)
    _, _, h1_last, _ = jax.lax.fori_loop(0, T, step, (z, z, z, z),
                                         unroll=min(T, 8))

    # Final FC on the last timestep's top-layer hidden state (full-tile store).
    out_ref[...] = (jnp.dot(h1_last.astype(bf16), wfc_ref[...],
                            preferred_element_type=jnp.float32)
                    + bfc_ref[...])


def lstm_model_forward(x_btd, params, *, hidden_size):
    """x_btd: (B, T, D_in) float32 — matches PyTorch batch_first input."""
    B, T, D = x_btd.shape
    H = hidden_size
    (wih0, whh0, b0, wih1, whh1, b1, wfc, bfc) = params
    D_out = wfc.shape[1]

    B_pad = _round_up(B, 8)
    D_pad = _round_up(D, 128)
    DO_pad = _round_up(D_out, 128)
    bf16 = jnp.bfloat16

    # Reorder PyTorch gate columns [i, f, g, o] -> [i, f, o, g] so the kernel
    # applies one sigmoid to a contiguous 3H slab (cheap XLA ops, traced once).
    def regate(w):
        return jnp.concatenate(
            [w[..., 0:2 * H], w[..., 3 * H:4 * H], w[..., 2 * H:3 * H]], axis=-1)

    wih0_g, whh0_g, b0_g = regate(wih0), regate(whh0), regate(b0)
    wih1_g, whh1_g, b1_g = regate(wih1), regate(whh1), regate(b1)

    # Pad + cast weights outside the kernel.  Matmul operands are bf16; biases
    # and all in-kernel gate math stay f32.
    wih0_p = (jnp.zeros((D_pad, 4 * H), jnp.float32)
              .at[:D, :].set(wih0_g).astype(bf16))
    whh0_b = whh0_g.astype(bf16)
    wih1_b = wih1_g.astype(bf16)
    whh1_b = whh1_g.astype(bf16)
    wfc_p = (jnp.zeros((H, DO_pad), jnp.float32)
             .at[:, :D_out].set(wfc).astype(bf16))
    bfc_p = jnp.zeros((1, DO_pad), jnp.float32).at[:, :D_out].set(bfc)

    # Time-major, zero-padded, flattened, bf16 input: (T*B_pad, D_pad).
    x_tbd = jnp.transpose(x_btd, (1, 0, 2))
    x_p = jnp.zeros((T, B_pad, D_pad), jnp.float32).at[:, :B, :D].set(x_tbd)
    x_flat = x_p.reshape(T * B_pad, D_pad).astype(bf16)

    kernel = functools.partial(lstm_kernel, seq_len=T, batch=B_pad,
                               hidden_size=H)
    vmem = lambda: pl.BlockSpec(memory_space=pltpu.MemorySpace.VMEM)

    out_full = pl.pallas_call(
        kernel,
        out_shape=jax.ShapeDtypeStruct((B_pad, DO_pad), jnp.float32),
        in_specs=[vmem() for _ in range(9)],
        out_specs=vmem(),
        scratch_shapes=[pltpu.VMEM((T * B_pad, 4 * H), jnp.float32)],
        compiler_params=pltpu.CompilerParams(vmem_limit_bytes=32 * 1024 * 1024),
    )(x_flat, wih0_p, whh0_b, b0_g, wih1_b, whh1_b, b1_g, wfc_p, bfc_p)

    return out_full[:B, :D_out]


def init_params(key, input_size, hidden_size):
    """PyTorch-like init: U(-1/sqrt(H), 1/sqrt(H)); weights pre-transposed to
    (in_features, 4H) / (H, D_out); b_ih + b_hh folded.  Gate order here is the
    PyTorch [i, f, g, o]; the wrapper permutes to the kernel layout."""
    H, D = hidden_size, input_size
    bound = 1.0 / jnp.sqrt(jnp.asarray(H, jnp.float32))
    ks = jax.random.split(key, 12)
    u = lambda k, shape: jax.random.uniform(k, shape, jnp.float32, -bound, bound)

    wih0 = u(ks[0], (D, 4 * H))
    whh0 = u(ks[1], (H, 4 * H))
    b0 = u(ks[2], (1, 4 * H)) + u(ks[3], (1, 4 * H))
    wih1 = u(ks[4], (H, 4 * H))
    whh1 = u(ks[5], (H, 4 * H))
    b1 = u(ks[6], (1, 4 * H)) + u(ks[7], (1, 4 * H))
    wfc = u(ks[8], (H, D))
    bfc = u(ks[9], (1, D))
    return (wih0, whh0, b0, wih1, whh1, b1, wfc, bfc)


def reference_forward(x_btd, params, *, hidden_size, matmul_dtype=jnp.float32):
    """Pure-JAX reference (lax.scan).  matmul_dtype controls the precision of
    the matmul operands (f32 = PyTorch semantics; bf16 = what the kernel
    computes, with f32 accumulation in both cases)."""
    H = hidden_size
    (wih0, whh0, b0, wih1, whh1, b1, wfc, bfc) = params
    B = x_btd.shape[0]

    def mm(a, w):
        return jnp.dot(a.astype(matmul_dtype), w.astype(matmul_dtype),
                       preferred_element_type=jnp.float32,
                       precision=jax.lax.Precision.HIGHEST)

    def cell(h, c, x, wih, whh, b):
        g = mm(x, wih) + mm(h, whh) + b
        i = jax.nn.sigmoid(g[:, 0 * H:1 * H])
        f = jax.nn.sigmoid(g[:, 1 * H:2 * H])
        gg = jnp.tanh(g[:, 2 * H:3 * H])
        o = jax.nn.sigmoid(g[:, 3 * H:4 * H])
        c_new = f * c + i * gg
        h_new = o * jnp.tanh(c_new)
        return h_new, c_new

    def step(carry, x_t):
        h0, c0, h1, c1 = carry
        h0, c0 = cell(h0, c0, x_t, wih0, whh0, b0)
        h1, c1 = cell(h1, c1, h0, wih1, whh1, b1)
        return (h0, c0, h1, c1), None

    z = jnp.zeros((B, H), jnp.float32)
    (h0, c0, h1, c1), _ = jax.lax.scan(step, (z, z, z, z),
                                       jnp.transpose(x_btd, (1, 0, 2)))
    return mm(h1, wfc) + bfc


if __name__ == "__main__":
    # Shapes implied by the module: input_size=6, hidden_size=128, num_layers=2.
    B, T, D_IN, HIDDEN = 2, 8, 6, 128

    key = jax.random.PRNGKey(0)
    k_x, k_p = jax.random.split(key)
    x = jax.random.normal(k_x, (B, T, D_IN), jnp.float32)
    params = init_params(k_p, D_IN, HIDDEN)

    out = lstm_model_forward(x, params, hidden_size=HIDDEN)
    out = jax.block_until_ready(out)
    assert out.shape == (B, D_IN)

    # Matched-precision reference (bf16 matmul operands, f32 accumulation):
    # this is the computation the kernel performs; tight tolerance.
    ref_bf16 = reference_forward(x, params, hidden_size=HIDDEN,
                                 matmul_dtype=jnp.bfloat16)
    assert jnp.allclose(out, ref_bf16, atol=1e-3, rtol=1e-3)

    # Full-f32 (PyTorch-semantics) reference: bf16 weight rounding compounds
    # through the recurrence with T, so the tolerance here is deliberately
    # looser and documented (at T=8 the observed error is far below this).
    ref_f32 = reference_forward(x, params, hidden_size=HIDDEN,
                                matmul_dtype=jnp.float32)
    assert jnp.allclose(out, ref_f32, atol=5e-2, rtol=5e-2)

    print("KERNEL_OK")
</pallas_src>

<mosaic_0001>
module attributes {stable_mosaic.version = 11 : i64} {
  func.func @lstm_kernel(%arg0: memref<64x128xbf16, #tpu.memory_space<vmem>>, %arg1: memref<128x512xbf16, #tpu.memory_space<vmem>>, %arg2: memref<128x512xbf16, #tpu.memory_space<vmem>>, %arg3: memref<1x512xf32, #tpu.memory_space<vmem>>, %arg4: memref<128x512xbf16, #tpu.memory_space<vmem>>, %arg5: memref<128x512xbf16, #tpu.memory_space<vmem>>, %arg6: memref<1x512xf32, #tpu.memory_space<vmem>>, %arg7: memref<128x128xbf16, #tpu.memory_space<vmem>>, %arg8: memref<1x128xf32, #tpu.memory_space<vmem>>, %arg9: memref<8x128xf32, #tpu.memory_space<vmem>>, %arg10: memref<64x512xf32, #tpu.memory_space<vmem>>) attributes {dimension_semantics = [], scalar_prefetch = 0 : i64, scratch_operands = 1 : i64, tpu.core_type = #tpu.core_type<tc>} {
    %c0 = arith.constant 0 : index
    %c0_0 = arith.constant 0 : index
    %0 = vector.load %arg0[%c0, %c0_0] : memref<64x128xbf16, #tpu.memory_space<vmem>>, vector<64x128xbf16>
    %c0_1 = arith.constant 0 : index
    %c0_2 = arith.constant 0 : index
    %1 = vector.load %arg1[%c0_1, %c0_2] : memref<128x512xbf16, #tpu.memory_space<vmem>>, vector<128x512xbf16>
    %cst = arith.constant dense<0.000000e+00> : vector<64x512xf32>
    %2 = tpu.matmul %0, %1, %cst {dimension_numbers = #tpu.dot_dimension_numbers<[1], [0], [0], [1], [0, 0, 1, 1], [], []>} : vector<64x128xbf16>, vector<128x512xbf16>, vector<64x512xf32> -> vector<64x512xf32>
    %c0_3 = arith.constant 0 : index
    %c0_4 = arith.constant 0 : index
    %3 = vector.load %arg3[%c0_3, %c0_4] : memref<1x512xf32, #tpu.memory_space<vmem>>, vector<1x512xf32>
    %4 = vector.broadcast %3 : vector<1x512xf32> to vector<64x512xf32>
    %5 = arith.addf %2, %4 : vector<64x512xf32>
    %c0_5 = arith.constant 0 : index
    %c0_6 = arith.constant 0 : index
    %6 = vector.load %arg10[%c0_5, %c0_6] : memref<64x512xf32, #tpu.memory_space<vmem>>, vector<64x512xf32>
    tpu.vector_store %arg10[%c0_5, %c0_6], %5 {strides = array<i32>} : memref<64x512xf32, #tpu.memory_space<vmem>>, vector<64x512xf32>,
    %c0_7 = arith.constant 0 : index
    %c0_8 = arith.constant 0 : index
    %7 = vector.load %arg6[%c0_7, %c0_8] : memref<1x512xf32, #tpu.memory_space<vmem>>, vector<1x512xf32>
    %8 = vector.shape_cast %7 : vector<1x512xf32> to vector<1x512xf32>
    %9 = vector.broadcast %8 : vector<1x512xf32> to vector<8x512xf32>
    %cst_9 = arith.constant 0.000000e+00 : f32
    %10 = vector.broadcast %cst_9 : f32 to vector<8x128xf32>
    %c0_i32 = arith.constant 0 : i32
    %c8_i32 = arith.constant 8 : i32
    %11 = arith.muli %c0_i32, %c8_i32 : i32
    %12 = tpu.assume_multiple %11, 8 : i32
    %13 = arith.index_cast %12 : i32 to index
    %c0_10 = arith.constant 0 : index
    %14 = vector.load %arg10[%13, %c0_10] : memref<64x512xf32, #tpu.memory_space<vmem>>, vector<8x512xf32>
    %15 = arith.truncf %10 : vector<8x128xf32> to vector<8x128xbf16>
    %c0_11 = arith.constant 0 : index
    %c0_12 = arith.constant 0 : index
    %16 = vector.load %arg2[%c0_11, %c0_12] : memref<128x512xbf16, #tpu.memory_space<vmem>>, vector<128x512xbf16>
    %cst_13 = arith.constant dense<0.000000e+00> : vector<8x512xf32>
    %17 = tpu.matmul %15, %16, %cst_13 {dimension_numbers = #tpu.dot_dimension_numbers<[1], [0], [0], [1], [0, 0, 1, 1], [], []>} : vector<8x128xbf16>, vector<128x512xbf16>, vector<8x512xf32> -> vector<8x512xf32>
    %18 = arith.addf %14, %17 : vector<8x512xf32>
    %19 = vector.extract_strided_slice %18 {offsets = [0, 0], sizes = [8, 384], strides = [1, 1]} : vector<8x512xf32> to vector<8x384xf32>
    %20 = arith.negf %19 : vector<8x384xf32>
    %21 = math.exp %20 : vector<8x384xf32>
    %cst_14 = arith.constant 1.000000e+00 : f32
    %22 = vector.broadcast %cst_14 : f32 to vector<8x384xf32>
    %23 = arith.addf %22, %21 : vector<8x384xf32>
    %24 = arith.divf %22, %23 : vector<8x384xf32>
    %25 = vector.extract_strided_slice %24 {offsets = [0, 0], sizes = [8, 128], strides = [1, 1]} : vector<8x384xf32> to vector<8x128xf32>
    %26 = vector.extract_strided_slice %24 {offsets = [0, 128], sizes = [8, 128], strides = [1, 1]} : vector<8x384xf32> to vector<8x128xf32>
    %27 = vector.extract_strided_slice %24 {offsets = [0, 256], sizes = [8, 128], strides = [1, 1]} : vector<8x384xf32> to vector<8x128xf32>
    %28 = vector.extract_strided_slice %18 {offsets = [0, 384], sizes = [8, 128], strides = [1, 1]} : vector<8x512xf32> to vector<8x128xf32>
    %29 = math.tanh %28 : vector<8x128xf32>
    %30 = arith.mulf %26, %10 : vector<8x128xf32>
    %31 = arith.mulf %25, %29 : vector<8x128xf32>
    %32 = arith.addf %30, %31 : vector<8x128xf32>
    %33 = math.tanh %32 : vector<8x128xf32>
    %34 = arith.mulf %27, %33 : vector<8x128xf32>
    %35 = arith.truncf %34 : vector<8x128xf32> to vector<8x128xbf16>
    %c0_15 = arith.constant 0 : index
    %c0_16 = arith.constant 0 : index
    %36 = vector.load %arg4[%c0_15, %c0_16] : memref<128x512xbf16, #tpu.memory_space<vmem>>, vector<128x512xbf16>
    %cst_17 = arith.constant dense<0.000000e+00> : vector<8x512xf32>
    %37 = tpu.matmul %35, %36, %cst_17 {dimension_numbers = #tpu.dot_dimension_numbers<[1], [0], [0], [1], [0, 0, 1, 1], [], []>} : vector<8x128xbf16>, vector<128x512xbf16>, vector<8x512xf32> -> vector<8x512xf32>
    %38 = arith.truncf %10 : vector<8x128xf32> to vector<8x128xbf16>
    %c0_18 = arith.constant 0 : index
    %c0_19 = arith.constant 0 : index
    %39 = vector.load %arg5[%c0_18, %c0_19] : memref<128x512xbf16, #tpu.memory_space<vmem>>, vector<128x512xbf16>
    %cst_20 = arith.constant dense<0.000000e+00> : vector<8x512xf32>
    %40 = tpu.matmul %38, %39, %cst_20 {dimension_numbers = #tpu.dot_dimension_numbers<[1], [0], [0], [1], [0, 0, 1, 1], [], []>} : vector<8x128xbf16>, vector<128x512xbf16>, vector<8x512xf32> -> vector<8x512xf32>
    %41 = arith.addf %37, %40 : vector<8x512xf32>
    %42 = arith.addf %41, %9 : vector<8x512xf32>
    %43 = vector.extract_strided_slice %42 {offsets = [0, 0], sizes = [8, 384], strides = [1, 1]} : vector<8x512xf32> to vector<8x384xf32>
    %44 = arith.negf %43 : vector<8x384xf32>
    %45 = math.exp %44 : vector<8x384xf32>
    %cst_21 = arith.constant 1.000000e+00 : f32
    %46 = vector.broadcast %cst_21 : f32 to vector<8x384xf32>
    %47 = arith.addf %46, %45 : vector<8x384xf32>
    %48 = arith.divf %46, %47 : vector<8x384xf32>
    %49 = vector.extract_strided_slice %48 {offsets = [0, 0], sizes = [8, 128], strides = [1, 1]} : vector<8x384xf32> to vector<8x128xf32>
    %50 = vector.extract_strided_slice %48 {offsets = [0, 128], sizes = [8, 128], strides = [1, 1]} : vector<8x384xf32> to vector<8x128xf32>
    %51 = vector.extract_strided_slice %48 {offsets = [0, 256], sizes = [8, 128], strides = [1, 1]} : vector<8x384xf32> to vector<8x128xf32>
    %52 = vector.extract_strided_slice %42 {offsets = [0, 384], sizes = [8, 128], strides = [1, 1]} : vector<8x512xf32> to vector<8x128xf32>
    %53 = math.tanh %52 : vector<8x128xf32>
    %54 = arith.mulf %50, %10 : vector<8x128xf32>
    %55 = arith.mulf %49, %53 : vector<8x128xf32>
    %56 = arith.addf %54, %55 : vector<8x128xf32>
    %57 = math.tanh %56 : vector<8x128xf32>
    %58 = arith.mulf %51, %57 : vector<8x128xf32>
    %c1_i32 = arith.constant 1 : i32
    %c8_i32_22 = arith.constant 8 : i32
    %59 = arith.muli %c1_i32, %c8_i32_22 : i32
    %60 = tpu.assume_multiple %59, 8 : i32
    %61 = arith.index_cast %60 : i32 to index
    %c0_23 = arith.constant 0 : index
    %62 = vector.load %arg10[%61, %c0_23] : memref<64x512xf32, #tpu.memory_space<vmem>>, vector<8x512xf32>
    %63 = arith.truncf %34 : vector<8x128xf32> to vector<8x128xbf16>
    %c0_24 = arith.constant 0 : index
    %c0_25 = arith.constant 0 : index
    %64 = vector.load %arg2[%c0_24, %c0_25] : memref<128x512xbf16, #tpu.memory_space<vmem>>, vector<128x512xbf16>
    %cst_26 = arith.constant dense<0.000000e+00> : vector<8x512xf32>
    %65 = tpu.matmul %63, %64, %cst_26 {dimension_numbers = #tpu.dot_dimension_numbers<[1], [0], [0], [1], [0, 0, 1, 1], [], []>} : vector<8x128xbf16>, vector<128x512xbf16>, vector<8x512xf32> -> vector<8x512xf32>
    %66 = arith.addf %62, %65 : vector<8x512xf32>
    %67 = vector.extract_strided_slice %66 {offsets = [0, 0], sizes = [8, 384], strides = [1, 1]} : vector<8x512xf32> to vector<8x384xf32>
    %68 = arith.negf %67 : vector<8x384xf32>
    %69 = math.exp %68 : vector<8x384xf32>
    %cst_27 = arith.constant 1.000000e+00 : f32
    %70 = vector.broadcast %cst_27 : f32 to vector<8x384xf32>
    %71 = arith.addf %70, %69 : vector<8x384xf32>
    %72 = arith.divf %70, %71 : vector<8x384xf32>
    %73 = vector.extract_strided_slice %72 {offsets = [0, 0], sizes = [8, 128], strides = [1, 1]} : vector<8x384xf32> to vector<8x128xf32>
    %74 = vector.extract_strided_slice %72 {offsets = [0, 128], sizes = [8, 128], strides = [1, 1]} : vector<8x384xf32> to vector<8x128xf32>
    %75 = vector.extract_strided_slice %72 {offsets = [0, 256], sizes = [8, 128], strides = [1, 1]} : vector<8x384xf32> to vector<8x128xf32>
    %76 = vector.extract_strided_slice %66 {offsets = [0, 384], sizes = [8, 128], strides = [1, 1]} : vector<8x512xf32> to vector<8x128xf32>
    %77 = math.tanh %76 : vector<8x128xf32>
    %78 = arith.mulf %74, %32 : vector<8x128xf32>
    %79 = arith.mulf %73, %77 : vector<8x128xf32>
    %80 = arith.addf %78, %79 : vector<8x128xf32>
    %81 = math.tanh %80 : vector<8x128xf32>
    %82 = arith.mulf %75, %81 : vector<8x128xf32>
    %83 = arith.truncf %82 : vector<8x128xf32> to vector<8x128xbf16>
    %c0_28 = arith.constant 0 : index
    %c0_29 = arith.constant 0 : index
    %84 = vector.load %arg4[%c0_28, %c0_29] : memref<128x512xbf16, #tpu.memory_space<vmem>>, vector<128x512xbf16>
    %cst_30 = arith.constant dense<0.000000e+00> : vector<8x512xf32>
    %85 = tpu.matmul %83, %84, %cst_30 {dimension_numbers = #tpu.dot_dimension_numbers<[1], [0], [0], [1], [0, 0, 1, 1], [], []>} : vector<8x128xbf16>, vector<128x512xbf16>, vector<8x512xf32> -> vector<8x512xf32>
    %86 = arith.truncf %58 : vector<8x128xf32> to vector<8x128xbf16>
    %c0_31 = arith.constant 0 : index
    %c0_32 = arith.constant 0 : index
    %87 = vector.load %arg5[%c0_31, %c0_32] : memref<128x512xbf16, #tpu.memory_space<vmem>>, vector<128x512xbf16>
    %cst_33 = arith.constant dense<0.000000e+00> : vector<8x512xf32>
    %88 = tpu.matmul %86, %87, %cst_33 {dimension_numbers = #tpu.dot_dimension_numbers<[1], [0], [0], [1], [0, 0, 1, 1], [], []>} : vector<8x128xbf16>, vector<128x512xbf16>, vector<8x512xf32> -> vector<8x512xf32>
    %89 = arith.addf %85, %88 : vector<8x512xf32>
    %90 = arith.addf %89, %9 : vector<8x512xf32>
    %91 = vector.extract_strided_slice %90 {offsets = [0, 0], sizes = [8, 384], strides = [1, 1]} : vector<8x512xf32> to vector<8x384xf32>
    %92 = arith.negf %91 : vector<8x384xf32>
    %93 = math.exp %92 : vector<8x384xf32>
    %cst_34 = arith.constant 1.000000e+00 : f32
    %94 = vector.broadcast %cst_34 : f32 to vector<8x384xf32>
    %95 = arith.addf %94, %93 : vector<8x384xf32>
    %96 = arith.divf %94, %95 : vector<8x384xf32>
    %97 = vector.extract_strided_slice %96 {offsets = [0, 0], sizes = [8, 128], strides = [1, 1]} : vector<8x384xf32> to vector<8x128xf32>
    %98 = vector.extract_strided_slice %96 {offsets = [0, 128], sizes = [8, 128], strides = [1, 1]} : vector<8x384xf32> to vector<8x128xf32>
    %99 = vector.extract_strided_slice %96 {offsets = [0, 256], sizes = [8, 128], strides = [1, 1]} : vector<8x384xf32> to vector<8x128xf32>
    %100 = vector.extract_strided_slice %90 {offsets = [0, 384], sizes = [8, 128], strides = [1, 1]} : vector<8x512xf32> to vector<8x128xf32>
    %101 = math.tanh %100 : vector<8x128xf32>
    %102 = arith.mulf %98, %56 : vector<8x128xf32>
    %103 = arith.mulf %97, %101 : vector<8x128xf32>
    %104 = arith.addf %102, %103 : vector<8x128xf32>
    %105 = math.tanh %104 : vector<8x128xf32>
    %106 = arith.mulf %99, %105 : vector<8x128xf32>
    %c2_i32 = arith.constant 2 : i32
    %c8_i32_35 = arith.constant 8 : i32
    %107 = arith.muli %c2_i32, %c8_i32_35 : i32
    %108 = tpu.assume_multiple %107, 8 : i32
    %109 = arith.index_cast %108 : i32 to index
    %c0_36 = arith.constant 0 : index
    %110 = vector.load %arg10[%109, %c0_36] : memref<64x512xf32, #tpu.memory_space<vmem>>, vector<8x512xf32>
    %111 = arith.truncf %82 : vector<8x128xf32> to vector<8x128xbf16>
    %c0_37 = arith.constant 0 : index
    %c0_38 = arith.constant 0 : index
    %112 = vector.load %arg2[%c0_37, %c0_38] : memref<128x512xbf16, #tpu.memory_space<vmem>>, vector<128x512xbf16>
    %cst_39 = arith.constant dense<0.000000e+00> : vector<8x512xf32>
    %113 = tpu.matmul %111, %112, %cst_39 {dimension_numbers = #tpu.dot_dimension_numbers<[1], [0], [0], [1], [0, 0, 1, 1], [], []>} : vector<8x128xbf16>, vector<128x512xbf16>, vector<8x512xf32> -> vector<8x512xf32>
    %114 = arith.addf %110, %113 : vector<8x512xf32>
    %115 = vector.extract_strided_slice %114 {offsets = [0, 0], sizes = [8, 384], strides = [1, 1]} : vector<8x512xf32> to vector<8x384xf32>
    %116 = arith.negf %115 : vector<8x384xf32>
    %117 = math.exp %116 : vector<8x384xf32>
    %cst_40 = arith.constant 1.000000e+00 : f32
    %118 = vector.broadcast %cst_40 : f32 to vector<8x384xf32>
    %119 = arith.addf %118, %117 : vector<8x384xf32>
    %120 = arith.divf %118, %119 : vector<8x384xf32>
    %121 = vector.extract_strided_slice %120 {offsets = [0, 0], sizes = [8, 128], strides = [1, 1]} : vector<8x384xf32> to vector<8x128xf32>
    %122 = vector.extract_strided_slice %120 {offsets = [0, 128], sizes = [8, 128], strides = [1, 1]} : vector<8x384xf32> to vector<8x128xf32>
    %123 = vector.extract_strided_slice %120 {offsets = [0, 256], sizes = [8, 128], strides = [1, 1]} : vector<8x384xf32> to vector<8x128xf32>
    %124 = vector.extract_strided_slice %114 {offsets = [0, 384], sizes = [8, 128], strides = [1, 1]} : vector<8x512xf32> to vector<8x128xf32>
    %125 = math.tanh %124 : vector<8x128xf32>
    %126 = arith.mulf %122, %80 : vector<8x128xf32>
    %127 = arith.mulf %121, %125 : vector<8x128xf32>
    %128 = arith.addf %126, %127 : vector<8x128xf32>
    %129 = math.tanh %128 : vector<8x128xf32>
    %130 = arith.mulf %123, %129 : vector<8x128xf32>
    %131 = arith.truncf %130 : vector<8x128xf32> to vector<8x128xbf16>
    %c0_41 = arith.constant 0 : index
    %c0_42 = arith.constant 0 : index
    %132 = vector.load %arg4[%c0_41, %c0_42] : memref<128x512xbf16, #tpu.memory_space<vmem>>, vector<128x512xbf16>
    %cst_43 = arith.constant dense<0.000000e+00> : vector<8x512xf32>
    %133 = tpu.matmul %131, %132, %cst_43 {dimension_numbers = #tpu.dot_dimension_numbers<[1], [0], [0], [1], [0, 0, 1, 1], [], []>} : vector<8x128xbf16>, vector<128x512xbf16>, vector<8x512xf32> -> vector<8x512xf32>
    %134 = arith.truncf %106 : vector<8x128xf32> to vector<8x128xbf16>
    %c0_44 = arith.constant 0 : index
    %c0_45 = arith.constant 0 : index
    %135 = vector.load %arg5[%c0_44, %c0_45] : memref<128x512xbf16, #tpu.memory_space<vmem>>, vector<128x512xbf16>
    %cst_46 = arith.constant dense<0.000000e+00> : vector<8x512xf32>
    %136 = tpu.matmul %134, %135, %cst_46 {dimension_numbers = #tpu.dot_dimension_numbers<[1], [0], [0], [1], [0, 0, 1, 1], [], []>} : vector<8x128xbf16>, vector<128x512xbf16>, vector<8x512xf32> -> vector<8x512xf32>
    %137 = arith.addf %133, %136 : vector<8x512xf32>
    %138 = arith.addf %137, %9 : vector<8x512xf32>
    %139 = vector.extract_strided_slice %138 {offsets = [0, 0], sizes = [8, 384], strides = [1, 1]} : vector<8x512xf32> to vector<8x384xf32>
    %140 = arith.negf %139 : vector<8x384xf32>
    %141 = math.exp %140 : vector<8x384xf32>
    %cst_47 = arith.constant 1.000000e+00 : f32
    %142 = vector.broadcast %cst_47 : f32 to vector<8x384xf32>
    %143 = arith.addf %142, %141 : vector<8x384xf32>
    %144 = arith.divf %142, %143 : vector<8x384xf32>
    %145 = vector.extract_strided_slice %144 {offsets = [0, 0], sizes = [8, 128], strides = [1, 1]} : vector<8x384xf32> to vector<8x128xf32>
    %146 = vector.extract_strided_slice %144 {offsets = [0, 128], sizes = [8, 128], strides = [1, 1]} : vector<8x384xf32> to vector<8x128xf32>
    %147 = vector.extract_strided_slice %144 {offsets = [0, 256], sizes = [8, 128], strides = [1, 1]} : vector<8x384xf32> to vector<8x128xf32>
    %148 = vector.extract_strided_slice %138 {offsets = [0, 384], sizes = [8, 128], strides = [1, 1]} : vector<8x512xf32> to vector<8x128xf32>
    %149 = math.tanh %148 : vector<8x128xf32>
    %150 = arith.mulf %146, %104 : vector<8x128xf32>
    %151 = arith.mulf %145, %149 : vector<8x128xf32>
    %152 = arith.addf %150, %151 : vector<8x128xf32>
    %153 = math.tanh %152 : vector<8x128xf32>
    %154 = arith.mulf %147, %153 : vector<8x128xf32>
    %c3_i32 = arith.constant 3 : i32
    %c8_i32_48 = arith.constant 8 : i32
    %155 = arith.muli %c3_i32, %c8_i32_48 : i32
    %156 = tpu.assume_multiple %155, 8 : i32
    %157 = arith.index_cast %156 : i32 to index
    %c0_49 = arith.constant 0 : index
    %158 = vector.load %arg10[%157, %c0_49] : memref<64x512xf32, #tpu.memory_space<vmem>>, vector<8x512xf32>
    %159 = arith.truncf %130 : vector<8x128xf32> to vector<8x128xbf16>
    %c0_50 = arith.constant 0 : index
    %c0_51 = arith.constant 0 : index
    %160 = vector.load %arg2[%c0_50, %c0_51] : memref<128x512xbf16, #tpu.memory_space<vmem>>, vector<128x512xbf16>
    %cst_52 = arith.constant dense<0.000000e+00> : vector<8x512xf32>
    %161 = tpu.matmul %159, %160, %cst_52 {dimension_numbers = #tpu.dot_dimension_numbers<[1], [0], [0], [1], [0, 0, 1, 1], [], []>} : vector<8x128xbf16>, vector<128x512xbf16>, vector<8x512xf32> -> vector<8x512xf32>
    %162 = arith.addf %158, %161 : vector<8x512xf32>
    %163 = vector.extract_strided_slice %162 {offsets = [0, 0], sizes = [8, 384], strides = [1, 1]} : vector<8x512xf32> to vector<8x384xf32>
    %164 = arith.negf %163 : vector<8x384xf32>
    %165 = math.exp %164 : vector<8x384xf32>
    %cst_53 = arith.constant 1.000000e+00 : f32
    %166 = vector.broadcast %cst_53 : f32 to vector<8x384xf32>
    %167 = arith.addf %166, %165 : vector<8x384xf32>
    %168 = arith.divf %166, %167 : vector<8x384xf32>
    %169 = vector.extract_strided_slice %168 {offsets = [0, 0], sizes = [8, 128], strides = [1, 1]} : vector<8x384xf32> to vector<8x128xf32>
    %170 = vector.extract_strided_slice %168 {offsets = [0, 128], sizes = [8, 128], strides = [1, 1]} : vector<8x384xf32> to vector<8x128xf32>
    %171 = vector.extract_strided_slice %168 {offsets = [0, 256], sizes = [8, 128], strides = [1, 1]} : vector<8x384xf32> to vector<8x128xf32>
    %172 = vector.extract_strided_slice %162 {offsets = [0, 384], sizes = [8, 128], strides = [1, 1]} : vector<8x512xf32> to vector<8x128xf32>
    %173 = math.tanh %172 : vector<8x128xf32>
    %174 = arith.mulf %170, %128 : vector<8x128xf32>
    %175 = arith.mulf %169, %173 : vector<8x128xf32>
    %176 = arith.addf %174, %175 : vector<8x128xf32>
    %177 = math.tanh %176 : vector<8x128xf32>
    %178 = arith.mulf %171, %177 : vector<8x128xf32>
    %179 = arith.truncf %178 : vector<8x128xf32> to vector<8x128xbf16>
    %c0_54 = arith.constant 0 : index
    %c0_55 = arith.constant 0 : index
    %180 = vector.load %arg4[%c0_54, %c0_55] : memref<128x512xbf16, #tpu.memory_space<vmem>>, vector<128x512xbf16>
    %cst_56 = arith.constant dense<0.000000e+00> : vector<8x512xf32>
    %181 = tpu.matmul %179, %180, %cst_56 {dimension_numbers = #tpu.dot_dimension_numbers<[1], [0], [0], [1], [0, 0, 1, 1], [], []>} : vector<8x128xbf16>, vector<128x512xbf16>, vector<8x512xf32> -> vector<8x512xf32>
    %182 = arith.truncf %154 : vector<8x128xf32> to vector<8x128xbf16>
    %c0_57 = arith.constant 0 : index
    %c0_58 = arith.constant 0 : index
    %183 = vector.load %arg5[%c0_57, %c0_58] : memref<128x512xbf16, #tpu.memory_space<vmem>>, vector<128x512xbf16>
    %cst_59 = arith.constant dense<0.000000e+00> : vector<8x512xf32>
    %184 = tpu.matmul %182, %183, %cst_59 {dimension_numbers = #tpu.dot_dimension_numbers<[1], [0], [0], [1], [0, 0, 1, 1], [], []>} : vector<8x128xbf16>, vector<128x512xbf16>, vector<8x512xf32> -> vector<8x512xf32>
    %185 = arith.addf %181, %184 : vector<8x512xf32>
    %186 = arith.addf %185, %9 : vector<8x512xf32>
    %187 = vector.extract_strided_slice %186 {offsets = [0, 0], sizes = [8, 384], strides = [1, 1]} : vector<8x512xf32> to vector<8x384xf32>
    %188 = arith.negf %187 : vector<8x384xf32>
    %189 = math.exp %188 : vector<8x384xf32>
    %cst_60 = arith.constant 1.000000e+00 : f32
    %190 = vector.broadcast %cst_60 : f32 to vector<8x384xf32>
    %191 = arith.addf %190, %189 : vector<8x384xf32>
    %192 = arith.divf %190, %191 : vector<8x384xf32>
    %193 = vector.extract_strided_slice %192 {offsets = [0, 0], sizes = [8, 128], strides = [1, 1]} : vector<8x384xf32> to vector<8x128xf32>
    %194 = vector.extract_strided_slice %192 {offsets = [0, 128], sizes = [8, 128], strides = [1, 1]} : vector<8x384xf32> to vector<8x128xf32>
    %195 = vector.extract_strided_slice %192 {offsets = [0, 256], sizes = [8, 128], strides = [1, 1]} : vector<8x384xf32> to vector<8x128xf32>
    %196 = vector.extract_strided_slice %186 {offsets = [0, 384], sizes = [8, 128], strides = [1, 1]} : vector<8x512xf32> to vector<8x128xf32>
    %197 = math.tanh %196 : vector<8x128xf32>
    %198 = arith.mulf %194, %152 : vector<8x128xf32>
    %199 = arith.mulf %193, %197 : vector<8x128xf32>
    %200 = arith.addf %198, %199 : vector<8x128xf32>
    %201 = math.tanh %200 : vector<8x128xf32>
    %202 = arith.mulf %195, %201 : vector<8x128xf32>
    %c4_i32 = arith.constant 4 : i32
    %c8_i32_61 = arith.constant 8 : i32
    %203 = arith.muli %c4_i32, %c8_i32_61 : i32
    %204 = tpu.assume_multiple %203, 8 : i32
    %205 = arith.index_cast %204 : i32 to index
    %c0_62 = arith.constant 0 : index
    %206 = vector.load %arg10[%205, %c0_62] : memref<64x512xf32, #tpu.memory_space<vmem>>, vector<8x512xf32>
    %207 = arith.truncf %178 : vector<8x128xf32> to vector<8x128xbf16>
    %c0_63 = arith.constant 0 : index
    %c0_64 = arith.constant 0 : index
    %208 = vector.load %arg2[%c0_63, %c0_64] : memref<128x512xbf16, #tpu.memory_space<vmem>>, vector<128x512xbf16>
    %cst_65 = arith.constant dense<0.000000e+00> : vector<8x512xf32>
    %209 = tpu.matmul %207, %208, %cst_65 {dimension_numbers = #tpu.dot_dimension_numbers<[1], [0], [0], [1], [0, 0, 1, 1], [], []>} : vector<8x128xbf16>, vector<128x512xbf16>, vector<8x512xf32> -> vector<8x512xf32>
    %210 = arith.addf %206, %209 : vector<8x512xf32>
    %211 = vector.extract_strided_slice %210 {offsets = [0, 0], sizes = [8, 384], strides = [1, 1]} : vector<8x512xf32> to vector<8x384xf32>
    %212 = arith.negf %211 : vector<8x384xf32>
    %213 = math.exp %212 : vector<8x384xf32>
    %cst_66 = arith.constant 1.000000e+00 : f32
    %214 = vector.broadcast %cst_66 : f32 to vector<8x384xf32>
    %215 = arith.addf %214, %213 : vector<8x384xf32>
    %216 = arith.divf %214, %215 : vector<8x384xf32>
    %217 = vector.extract_strided_slice %216 {offsets = [0, 0], sizes = [8, 128], strides = [1, 1]} : vector<8x384xf32> to vector<8x128xf32>
    %218 = vector.extract_strided_slice %216 {offsets = [0, 128], sizes = [8, 128], strides = [1, 1]} : vector<8x384xf32> to vector<8x128xf32>
    %219 = vector.extract_strided_slice %216 {offsets = [0, 256], sizes = [8, 128], strides = [1, 1]} : vector<8x384xf32> to vector<8x128xf32>
    %220 = vector.extract_strided_slice %210 {offsets = [0, 384], sizes = [8, 128], strides = [1, 1]} : vector<8x512xf32> to vector<8x128xf32>
    %221 = math.tanh %220 : vector<8x128xf32>
    %222 = arith.mulf %218, %176 : vector<8x128xf32>
    %223 = arith.mulf %217, %221 : vector<8x128xf32>
    %224 = arith.addf %222, %223 : vector<8x128xf32>
    %225 = math.tanh %224 : vector<8x128xf32>
    %226 = arith.mulf %219, %225 : vector<8x128xf32>
    %227 = arith.truncf %226 : vector<8x128xf32> to vector<8x128xbf16>
    %c0_67 = arith.constant 0 : index
    %c0_68 = arith.constant 0 : index
    %228 = vector.load %arg4[%c0_67, %c0_68] : memref<128x512xbf16, #tpu.memory_space<vmem>>, vector<128x512xbf16>
    %cst_69 = arith.constant dense<0.000000e+00> : vector<8x512xf32>
    %229 = tpu.matmul %227, %228, %cst_69 {dimension_numbers = #tpu.dot_dimension_numbers<[1], [0], [0], [1], [0, 0, 1, 1], [], []>} : vector<8x128xbf16>, vector<128x512xbf16>, vector<8x512xf32> -> vector<8x512xf32>
    %230 = arith.truncf %202 : vector<8x128xf32> to vector<8x128xbf16>
    %c0_70 = arith.constant 0 : index
    %c0_71 = arith.constant 0 : index
    %231 = vector.load %arg5[%c0_70, %c0_71] : memref<128x512xbf16, #tpu.memory_space<vmem>>, vector<128x512xbf16>
    %cst_72 = arith.constant dense<0.000000e+00> : vector<8x512xf32>
    %232 = tpu.matmul %230, %231, %cst_72 {dimension_numbers = #tpu.dot_dimension_numbers<[1], [0], [0], [1], [0, 0, 1, 1], [], []>} : vector<8x128xbf16>, vector<128x512xbf16>, vector<8x512xf32> -> vector<8x512xf32>
    %233 = arith.addf %229, %232 : vector<8x512xf32>
    %234 = arith.addf %233, %9 : vector<8x512xf32>
    %235 = vector.extract_strided_slice %234 {offsets = [0, 0], sizes = [8, 384], strides = [1, 1]} : vector<8x512xf32> to vector<8x384xf32>
    %236 = arith.negf %235 : vector<8x384xf32>
    %237 = math.exp %236 : vector<8x384xf32>
    %cst_73 = arith.constant 1.000000e+00 : f32
    %238 = vector.broadcast %cst_73 : f32 to vector<8x384xf32>
    %239 = arith.addf %238, %237 : vector<8x384xf32>
    %240 = arith.divf %238, %239 : vector<8x384xf32>
    %241 = vector.extract_strided_slice %240 {offsets = [0, 0], sizes = [8, 128], strides = [1, 1]} : vector<8x384xf32> to vector<8x128xf32>
    %242 = vector.extract_strided_slice %240 {offsets = [0, 128], sizes = [8, 128], strides = [1, 1]} : vector<8x384xf32> to vector<8x128xf32>
    %243 = vector.extract_strided_slice %240 {offsets = [0, 256], sizes = [8, 128], strides = [1, 1]} : vector<8x384xf32> to vector<8x128xf32>
    %244 = vector.extract_strided_slice %234 {offsets = [0, 384], sizes = [8, 128], strides = [1, 1]} : vector<8x512xf32> to vector<8x128xf32>
    %245 = math.tanh %244 : vector<8x128xf32>
    %246 = arith.mulf %242, %200 : vector<8x128xf32>
    %247 = arith.mulf %241, %245 : vector<8x128xf32>
    %248 = arith.addf %246, %247 : vector<8x128xf32>
    %249 = math.tanh %248 : vector<8x128xf32>
    %250 = arith.mulf %243, %249 : vector<8x128xf32>
    %c5_i32 = arith.constant 5 : i32
    %c8_i32_74 = arith.constant 8 : i32
    %251 = arith.muli %c5_i32, %c8_i32_74 : i32
    %252 = tpu.assume_multiple %251, 8 : i32
    %253 = arith.index_cast %252 : i32 to index
    %c0_75 = arith.constant 0 : index
    %254 = vector.load %arg10[%253, %c0_75] : memref<64x512xf32, #tpu.memory_space<vmem>>, vector<8x512xf32>
    %255 = arith.truncf %226 : vector<8x128xf32> to vector<8x128xbf16>
    %c0_76 = arith.constant 0 : index
    %c0_77 = arith.constant 0 : index
    %256 = vector.load %arg2[%c0_76, %c0_77] : memref<128x512xbf16, #tpu.memory_space<vmem>>, vector<128x512xbf16>
    %cst_78 = arith.constant dense<0.000000e+00> : vector<8x512xf32>
    %257 = tpu.matmul %255, %256, %cst_78 {dimension_numbers = #tpu.dot_dimension_numbers<[1], [0], [0], [1], [0, 0, 1, 1], [], []>} : vector<8x128xbf16>, vector<128x512xbf16>, vector<8x512xf32> -> vector<8x512xf32>
    %258 = arith.addf %254, %257 : vector<8x512xf32>
    %259 = vector.extract_strided_slice %258 {offsets = [0, 0], sizes = [8, 384], strides = [1, 1]} : vector<8x512xf32> to vector<8x384xf32>
    %260 = arith.negf %259 : vector<8x384xf32>
    %261 = math.exp %260 : vector<8x384xf32>
    %cst_79 = arith.constant 1.000000e+00 : f32
    %262 = vector.broadcast %cst_79 : f32 to vector<8x384xf32>
    %263 = arith.addf %262, %261 : vector<8x384xf32>
    %264 = arith.divf %262, %263 : vector<8x384xf32>
    %265 = vector.extract_strided_slice %264 {offsets = [0, 0], sizes = [8, 128], strides = [1, 1]} : vector<8x384xf32> to vector<8x128xf32>
    %266 = vector.extract_strided_slice %264 {offsets = [0, 128], sizes = [8, 128], strides = [1, 1]} : vector<8x384xf32> to vector<8x128xf32>
    %267 = vector.extract_strided_slice %264 {offsets = [0, 256], sizes = [8, 128], strides = [1, 1]} : vector<8x384xf32> to vector<8x128xf32>
    %268 = vector.extract_strided_slice %258 {offsets = [0, 384], sizes = [8, 128], strides = [1, 1]} : vector<8x512xf32> to vector<8x128xf32>
    %269 = math.tanh %268 : vector<8x128xf32>
    %270 = arith.mulf %266, %224 : vector<8x128xf32>
    %271 = arith.mulf %265, %269 : vector<8x128xf32>
    %272 = arith.addf %270, %271 : vector<8x128xf32>
    %273 = math.tanh %272 : vector<8x128xf32>
    %274 = arith.mulf %267, %273 : vector<8x128xf32>
    %275 = arith.truncf %274 : vector<8x128xf32> to vector<8x128xbf16>
    %c0_80 = arith.constant 0 : index
    %c0_81 = arith.constant 0 : index
    %276 = vector.load %arg4[%c0_80, %c0_81] : memref<128x512xbf16, #tpu.memory_space<vmem>>, vector<128x512xbf16>
    %cst_82 = arith.constant dense<0.000000e+00> : vector<8x512xf32>
    %277 = tpu.matmul %275, %276, %cst_82 {dimension_numbers = #tpu.dot_dimension_numbers<[1], [0], [0], [1], [0, 0, 1, 1], [], []>} : vector<8x128xbf16>, vector<128x512xbf16>, vector<8x512xf32> -> vector<8x512xf32>
    %278 = arith.truncf %250 : vector<8x128xf32> to vector<8x128xbf16>
    %c0_83 = arith.constant 0 : index
    %c0_84 = arith.constant 0 : index
    %279 = vector.load %arg5[%c0_83, %c0_84] : memref<128x512xbf16, #tpu.memory_space<vmem>>, vector<128x512xbf16>
    %cst_85 = arith.constant dense<0.000000e+00> : vector<8x512xf32>
    %280 = tpu.matmul %278, %279, %cst_85 {dimension_numbers = #tpu.dot_dimension_numbers<[1], [0], [0], [1], [0, 0, 1, 1], [], []>} : vector<8x128xbf16>, vector<128x512xbf16>, vector<8x512xf32> -> vector<8x512xf32>
    %281 = arith.addf %277, %280 : vector<8x512xf32>
    %282 = arith.addf %281, %9 : vector<8x512xf32>
    %283 = vector.extract_strided_slice %282 {offsets = [0, 0], sizes = [8, 384], strides = [1, 1]} : vector<8x512xf32> to vector<8x384xf32>
    %284 = arith.negf %283 : vector<8x384xf32>
    %285 = math.exp %284 : vector<8x384xf32>
    %cst_86 = arith.constant 1.000000e+00 : f32
    %286 = vector.broadcast %cst_86 : f32 to vector<8x384xf32>
    %287 = arith.addf %286, %285 : vector<8x384xf32>
    %288 = arith.divf %286, %287 : vector<8x384xf32>
    %289 = vector.extract_strided_slice %288 {offsets = [0, 0], sizes = [8, 128], strides = [1, 1]} : vector<8x384xf32> to vector<8x128xf32>
    %290 = vector.extract_strided_slice %288 {offsets = [0, 128], sizes = [8, 128], strides = [1, 1]} : vector<8x384xf32> to vector<8x128xf32>
    %291 = vector.extract_strided_slice %288 {offsets = [0, 256], sizes = [8, 128], strides = [1, 1]} : vector<8x384xf32> to vector<8x128xf32>
    %292 = vector.extract_strided_slice %282 {offsets = [0, 384], sizes = [8, 128], strides = [1, 1]} : vector<8x512xf32> to vector<8x128xf32>
    %293 = math.tanh %292 : vector<8x128xf32>
    %294 = arith.mulf %290, %248 : vector<8x128xf32>
    %295 = arith.mulf %289, %293 : vector<8x128xf32>
    %296 = arith.addf %294, %295 : vector<8x128xf32>
    %297 = math.tanh %296 : vector<8x128xf32>
    %298 = arith.mulf %291, %297 : vector<8x128xf32>
    %c6_i32 = arith.constant 6 : i32
    %c8_i32_87 = arith.constant 8 : i32
    %299 = arith.muli %c6_i32, %c8_i32_87 : i32
    %300 = tpu.assume_multiple %299, 8 : i32
    %301 = arith.index_cast %300 : i32 to index
    %c0_88 = arith.constant 0 : index
    %302 = vector.load %arg10[%301, %c0_88] : memref<64x512xf32, #tpu.memory_space<vmem>>, vector<8x512xf32>
    %303 = arith.truncf %274 : vector<8x128xf32> to vector<8x128xbf16>
    %c0_89 = arith.constant 0 : index
    %c0_90 = arith.constant 0 : index
    %304 = vector.load %arg2[%c0_89, %c0_90] : memref<128x512xbf16, #tpu.memory_space<vmem>>, vector<128x512xbf16>
    %cst_91 = arith.constant dense<0.000000e+00> : vector<8x512xf32>
    %305 = tpu.matmul %303, %304, %cst_91 {dimension_numbers = #tpu.dot_dimension_numbers<[1], [0], [0], [1], [0, 0, 1, 1], [], []>} : vector<8x128xbf16>, vector<128x512xbf16>, vector<8x512xf32> -> vector<8x512xf32>
    %306 = arith.addf %302, %305 : vector<8x512xf32>
    %307 = vector.extract_strided_slice %306 {offsets = [0, 0], sizes = [8, 384], strides = [1, 1]} : vector<8x512xf32> to vector<8x384xf32>
    %308 = arith.negf %307 : vector<8x384xf32>
    %309 = math.exp %308 : vector<8x384xf32>
    %cst_92 = arith.constant 1.000000e+00 : f32
    %310 = vector.broadcast %cst_92 : f32 to vector<8x384xf32>
    %311 = arith.addf %310, %309 : vector<8x384xf32>
    %312 = arith.divf %310, %311 : vector<8x384xf32>
    %313 = vector.extract_strided_slice %312 {offsets = [0, 0], sizes = [8, 128], strides = [1, 1]} : vector<8x384xf32> to vector<8x128xf32>
    %314 = vector.extract_strided_slice %312 {offsets = [0, 128], sizes = [8, 128], strides = [1, 1]} : vector<8x384xf32> to vector<8x128xf32>
    %315 = vector.extract_strided_slice %312 {offsets = [0, 256], sizes = [8, 128], strides = [1, 1]} : vector<8x384xf32> to vector<8x128xf32>
    %316 = vector.extract_strided_slice %306 {offsets = [0, 384], sizes = [8, 128], strides = [1, 1]} : vector<8x512xf32> to vector<8x128xf32>
    %317 = math.tanh %316 : vector<8x128xf32>
    %318 = arith.mulf %314, %272 : vector<8x128xf32>
    %319 = arith.mulf %313, %317 : vector<8x128xf32>
    %320 = arith.addf %318, %319 : vector<8x128xf32>
    %321 = math.tanh %320 : vector<8x128xf32>
    %322 = arith.mulf %315, %321 : vector<8x128xf32>
    %323 = arith.truncf %322 : vector<8x128xf32> to vector<8x128xbf16>
    %c0_93 = arith.constant 0 : index
    %c0_94 = arith.constant 0 : index
    %324 = vector.load %arg4[%c0_93, %c0_94] : memref<128x512xbf16, #tpu.memory_space<vmem>>, vector<128x512xbf16>
    %cst_95 = arith.constant dense<0.000000e+00> : vector<8x512xf32>
    %325 = tpu.matmul %323, %324, %cst_95 {dimension_numbers = #tpu.dot_dimension_numbers<[1], [0], [0], [1], [0, 0, 1, 1], [], []>} : vector<8x128xbf16>, vector<128x512xbf16>, vector<8x512xf32> -> vector<8x512xf32>
    %326 = arith.truncf %298 : vector<8x128xf32> to vector<8x128xbf16>
    %c0_96 = arith.constant 0 : index
    %c0_97 = arith.constant 0 : index
    %327 = vector.load %arg5[%c0_96, %c0_97] : memref<128x512xbf16, #tpu.memory_space<vmem>>, vector<128x512xbf16>
    %cst_98 = arith.constant dense<0.000000e+00> : vector<8x512xf32>
    %328 = tpu.matmul %326, %327, %cst_98 {dimension_numbers = #tpu.dot_dimension_numbers<[1], [0], [0], [1], [0, 0, 1, 1], [], []>} : vector<8x128xbf16>, vector<128x512xbf16>, vector<8x512xf32> -> vector<8x512xf32>
    %329 = arith.addf %325, %328 : vector<8x512xf32>
    %330 = arith.addf %329, %9 : vector<8x512xf32>
    %331 = vector.extract_strided_slice %330 {offsets = [0, 0], sizes = [8, 384], strides = [1, 1]} : vector<8x512xf32> to vector<8x384xf32>
    %332 = arith.negf %331 : vector<8x384xf32>
    %333 = math.exp %332 : vector<8x384xf32>
    %cst_99 = arith.constant 1.000000e+00 : f32
    %334 = vector.broadcast %cst_99 : f32 to vector<8x384xf32>
    %335 = arith.addf %334, %333 : vector<8x384xf32>
    %336 = arith.divf %334, %335 : vector<8x384xf32>
    %337 = vector.extract_strided_slice %336 {offsets = [0, 0], sizes = [8, 128], strides = [1, 1]} : vector<8x384xf32> to vector<8x128xf32>
    %338 = vector.extract_strided_slice %336 {offsets = [0, 128], sizes = [8, 128], strides = [1, 1]} : vector<8x384xf32> to vector<8x128xf32>
    %339 = vector.extract_strided_slice %336 {offsets = [0, 256], sizes = [8, 128], strides = [1, 1]} : vector<8x384xf32> to vector<8x128xf32>
    %340 = vector.extract_strided_slice %330 {offsets = [0, 384], sizes = [8, 128], strides = [1, 1]} : vector<8x512xf32> to vector<8x128xf32>
    %341 = math.tanh %340 : vector<8x128xf32>
    %342 = arith.mulf %338, %296 : vector<8x128xf32>
    %343 = arith.mulf %337, %341 : vector<8x128xf32>
    %344 = arith.addf %342, %343 : vector<8x128xf32>
    %345 = math.tanh %344 : vector<8x128xf32>
    %346 = arith.mulf %339, %345 : vector<8x128xf32>
    %c7_i32 = arith.constant 7 : i32
    %c8_i32_100 = arith.constant 8 : i32
    %347 = arith.muli %c7_i32, %c8_i32_100 : i32
    %348 = tpu.assume_multiple %347, 8 : i32
    %349 = arith.index_cast %348 : i32 to index
    %c0_101 = arith.constant 0 : index
    %350 = vector.load %arg10[%349, %c0_101] : memref<64x512xf32, #tpu.memory_space<vmem>>, vector<8x512xf32>
    %351 = arith.truncf %322 : vector<8x128xf32> to vector<8x128xbf16>
    %c0_102 = arith.constant 0 : index
    %c0_103 = arith.constant 0 : index
    %352 = vector.load %arg2[%c0_102, %c0_103] : memref<128x512xbf16, #tpu.memory_space<vmem>>, vector<128x512xbf16>
    %cst_104 = arith.constant dense<0.000000e+00> : vector<8x512xf32>
    %353 = tpu.matmul %351, %352, %cst_104 {dimension_numbers = #tpu.dot_dimension_numbers<[1], [0], [0], [1], [0, 0, 1, 1], [], []>} : vector<8x128xbf16>, vector<128x512xbf16>, vector<8x512xf32> -> vector<8x512xf32>
    %354 = arith.addf %350, %353 : vector<8x512xf32>
    %355 = vector.extract_strided_slice %354 {offsets = [0, 0], sizes = [8, 384], strides = [1, 1]} : vector<8x512xf32> to vector<8x384xf32>
    %356 = arith.negf %355 : vector<8x384xf32>
    %357 = math.exp %356 : vector<8x384xf32>
    %cst_105 = arith.constant 1.000000e+00 : f32
    %358 = vector.broadcast %cst_105 : f32 to vector<8x384xf32>
    %359 = arith.addf %358, %357 : vector<8x384xf32>
    %360 = arith.divf %358, %359 : vector<8x384xf32>
    %361 = vector.extract_strided_slice %360 {offsets = [0, 0], sizes = [8, 128], strides = [1, 1]} : vector<8x384xf32> to vector<8x128xf32>
    %362 = vector.extract_strided_slice %360 {offsets = [0, 128], sizes = [8, 128], strides = [1, 1]} : vector<8x384xf32> to vector<8x128xf32>
    %363 = vector.extract_strided_slice %360 {offsets = [0, 256], sizes = [8, 128], strides = [1, 1]} : vector<8x384xf32> to vector<8x128xf32>
    %364 = vector.extract_strided_slice %354 {offsets = [0, 384], sizes = [8, 128], strides = [1, 1]} : vector<8x512xf32> to vector<8x128xf32>
    %365 = math.tanh %364 : vector<8x128xf32>
    %366 = arith.mulf %362, %320 : vector<8x128xf32>
    %367 = arith.mulf %361, %365 : vector<8x128xf32>
    %368 = arith.addf %366, %367 : vector<8x128xf32>
    %369 = math.tanh %368 : vector<8x128xf32>
    %370 = arith.mulf %363, %369 : vector<8x128xf32>
    %371 = arith.truncf %370 : vector<8x128xf32> to vector<8x128xbf16>
    %c0_106 = arith.constant 0 : index
    %c0_107 = arith.constant 0 : index
    %372 = vector.load %arg4[%c0_106, %c0_107] : memref<128x512xbf16, #tpu.memory_space<vmem>>, vector<128x512xbf16>
    %cst_108 = arith.constant dense<0.000000e+00> : vector<8x512xf32>
    %373 = tpu.matmul %371, %372, %cst_108 {dimension_numbers = #tpu.dot_dimension_numbers<[1], [0], [0], [1], [0, 0, 1, 1], [], []>} : vector<8x128xbf16>, vector<128x512xbf16>, vector<8x512xf32> -> vector<8x512xf32>
    %374 = arith.truncf %346 : vector<8x128xf32> to vector<8x128xbf16>
    %c0_109 = arith.constant 0 : index
    %c0_110 = arith.constant 0 : index
    %375 = vector.load %arg5[%c0_109, %c0_110] : memref<128x512xbf16, #tpu.memory_space<vmem>>, vector<128x512xbf16>
    %cst_111 = arith.constant dense<0.000000e+00> : vector<8x512xf32>
    %376 = tpu.matmul %374, %375, %cst_111 {dimension_numbers = #tpu.dot_dimension_numbers<[1], [0], [0], [1], [0, 0, 1, 1], [], []>} : vector<8x128xbf16>, vector<128x512xbf16>, vector<8x512xf32> -> vector<8x512xf32>
    %377 = arith.addf %373, %376 : vector<8x512xf32>
    %378 = arith.addf %377, %9 : vector<8x512xf32>
    %379 = vector.extract_strided_slice %378 {offsets = [0, 0], sizes = [8, 384], strides = [1, 1]} : vector<8x512xf32> to vector<8x384xf32>
    %380 = arith.negf %379 : vector<8x384xf32>
    %381 = math.exp %380 : vector<8x384xf32>
    %cst_112 = arith.constant 1.000000e+00 : f32
    %382 = vector.broadcast %cst_112 : f32 to vector<8x384xf32>
    %383 = arith.addf %382, %381 : vector<8x384xf32>
    %384 = arith.divf %382, %383 : vector<8x384xf32>
    %385 = vector.extract_strided_slice %384 {offsets = [0, 0], sizes = [8, 128], strides = [1, 1]} : vector<8x384xf32> to vector<8x128xf32>
    %386 = vector.extract_strided_slice %384 {offsets = [0, 128], sizes = [8, 128], strides = [1, 1]} : vector<8x384xf32> to vector<8x128xf32>
    %387 = vector.extract_strided_slice %384 {offsets = [0, 256], sizes = [8, 128], strides = [1, 1]} : vector<8x384xf32> to vector<8x128xf32>
    %388 = vector.extract_strided_slice %378 {offsets = [0, 384], sizes = [8, 128], strides = [1, 1]} : vector<8x512xf32> to vector<8x128xf32>
    %389 = math.tanh %388 : vector<8x128xf32>
    %390 = arith.mulf %386, %344 : vector<8x128xf32>
    %391 = arith.mulf %385, %389 : vector<8x128xf32>
    %392 = arith.addf %390, %391 : vector<8x128xf32>
    %393 = math.tanh %392 : vector<8x128xf32>
    %394 = arith.mulf %387, %393 : vector<8x128xf32>
    %c8_i32_113 = arith.constant 8 : i32
    %395 = arith.truncf %394 : vector<8x128xf32> to vector<8x128xbf16>
    %c0_114 = arith.constant 0 : index
    %c0_115 = arith.constant 0 : index
    %396 = vector.load %arg7[%c0_114, %c0_115] : memref<128x128xbf16, #tpu.memory_space<vmem>>, vector<128x128xbf16>
    %cst_116 = arith.constant dense<0.000000e+00> : vector<8x128xf32>
    %397 = tpu.matmul %395, %396, %cst_116 {dimension_numbers = #tpu.dot_dimension_numbers<[1], [0], [0], [1], [0, 0, 1, 1], [], []>} : vector<8x128xbf16>, vector<128x128xbf16>, vector<8x128xf32> -> vector<8x128xf32>
    %c0_117 = arith.constant 0 : index
    %c0_118 = arith.constant 0 : index
    %398 = vector.load %arg8[%c0_117, %c0_118] : memref<1x128xf32, #tpu.memory_space<vmem>>, vector<1x128xf32>
    %399 = vector.broadcast %398 : vector<1x128xf32> to vector<8x128xf32>
    %400 = arith.addf %397, %399 : vector<8x128xf32>
    %c0_119 = arith.constant 0 : index
    %c0_120 = arith.constant 0 : index
    %401 = vector.load %arg9[%c0_119, %c0_120] : memref<8x128xf32, #tpu.memory_space<vmem>>, vector<8x128xf32>
    tpu.vector_store %arg9[%c0_119, %c0_120], %400 {strides = array<i32>} : memref<8x128xf32, #tpu.memory_space<vmem>>, vector<8x128xf32>,
    return
  }
}

</mosaic_0001>

<bundles_post_ra>
// kernel: tpu_custom_call.1
= control target key start
LH: loop header
LB: loop body
LE: loop exit
PB: predicated region body
PF: predicated region fallthrough
CT: control target
= control target key end

     0   :  { %14 = vsyncpa [#allocation4], 0  ;;  %s6630_s0 = inlined_call_operand.hbm [shape: bf16[64,128], index: 0, kind: input, shape index: {}]   ;;  %s6631_s1 = inlined_call_operand.hbm [shape: bf16[128,512], index: 1, kind: input, shape index: {}]   ;;  %s6632_s2 = inlined_call_operand.hbm [shape: bf16[128,512], index: 2, kind: input, shape index: {}]   ;;  %s6633_s3 = inlined_call_operand.vmem [shape: f32[1,512], index: 3, kind: input, shape index: {}]   ;;  %s6634_s4 = inlined_call_operand.hbm [shape: bf16[128,512], index: 4, kind: input, shape index: {}]   ;;  %s6635_s5 = inlined_call_operand.hbm [shape: bf16[128,512], index: 5, kind: input, shape index: {}]   ;;  %s6636_s6 = inlined_call_operand.vmem [shape: f32[1,512], index: 6, kind: input, shape index: {}]   ;;  %s6637_s7 = inlined_call_operand.hbm [shape: bf16[128,128], index: 7, kind: input, shape index: {}]   ;;  %s6638_s8 = inlined_call_operand.vmem [shape: f32[1,128], index: 8, kind: input, shape index: {}]   ;;  %s6639_s9 = inlined_call_operand.hbm [shape: f32[8,128], index: 9, kind: output, shape index: {}]  }
   0x1   :  { %15 = vsyncpa [#allocation7], 0 }
   0x2   :  { %16 = vsyncpa [#allocation10], 0 }
   0x3   :  { %17 = vsyncpa [#allocation13], 0 }
   0x4   :  { %18 = vsyncpa [#allocation5], 0  ;;  %s4811_s30 = smov [#allocation6]   ;;  %s4647_s13 = scalar_lea.hbm %s6631_s1, 4096 }
   0x5   :  { %s36_s10 = sshll.u32 %s4811_s30, 4  ;;  %p4648_p0 = scmp.ne.s32.totalorder %s6631_s1, %s4647_s13  ;;  %s37_s10 = int_to_ptr.vmem [resolvable:$true] %s36_s10 }
   0x6   :  { %p4651_p1 = scmp.lt.u32.totalorder %s4647_s13, %s6631_s1 }
   0x8   :  { %p4653_p2 = pnand %p4651_p1, %p4648_p0 }
   0xa   :  { %4656 = shalt.err (!%p4653_p2)
}
   0xb   :  { %s4657_s18 = scalar_lea.vmem %s37_s10, 4096  ;;  %p4662_p4 = scmp.lt.s32.totalorder %s37_s10, %s37_s10 }
   0xc   :  { %p4658_p3 = scmp.ne.s32.totalorder %s37_s10, %s4657_s18  ;;  %p4663_p5 = scmp.lt.s32.totalorder %s4657_s18, %s4657_s18 }
   0xe   :  { %p4664_p6 = por %p4663_p5, %p4662_p4 }
  0x10   :  { %p4665_p7 = pnand %p4664_p6, %p4658_p3 }
  0x12   :  { %4668 = shalt.err (!%p4665_p7)
}
  0x13   :  { %s4812_s19 = smov 256   ;;  %s4813_s20 = smov 16  }
  0x14   :  { %42 = dma.hbm_to_vmem [thread:$0]  %s6631_s1, 4096, %s37_s10, [#allocation7], %s4812_s19, %s4812_s19, %s4813_s20  }
  0x15   :  { %s4814_s23 = smov [#allocation9]   ;;  %s4815_s25 = smov [#allocation3]  }
  0x16   :  { %s62_s24 = sshll.u32 %s4814_s23, 4  ;;  %s24_s26 = sshll.u32 %s4815_s25, 4  ;;  %s63_s24 = int_to_ptr.vmem [resolvable:$true] %s62_s24  ;;  %s25_s26 = int_to_ptr.vmem [resolvable:$true] %s24_s26 }
  0x17   :  { %s4669_s29 = scalar_lea.hbm %s6634_s4, 4096 }
  0x18   :  { %p4670_p8 = scmp.ne.s32.totalorder %s6634_s4, %s4669_s29  ;;  %p4673_p9 = scmp.lt.u32.totalorder %s4669_s29, %s6634_s4 }
  0x1a   :  { %p4675_p10 = pnand %p4673_p9, %p4670_p8 }
  0x1c   :  { %4678 = shalt.err (!%p4675_p10)
}
  0x1d   :  { %s4679_s1 = scalar_lea.vmem %s63_s24, 4096  ;;  %p4684_p12 = scmp.lt.s32.totalorder %s63_s24, %s63_s24 }
  0x1e   :  { %p4680_p11 = scmp.ne.s32.totalorder %s63_s24, %s4679_s1  ;;  %p4685_p13 = scmp.lt.s32.totalorder %s4679_s1, %s4679_s1 }
  0x20   :  { %p4686_p0 = por %p4685_p13, %p4684_p12 }
  0x22   :  { %p4687_p1 = pnand %p4686_p0, %p4680_p11 }
  0x24   :  { %4690 = shalt.err (!%p4687_p1)
}
  0x25   :  { %68 = dma.hbm_to_vmem [thread:$0]  %s6634_s4, 4096, %s63_s24, [#allocation10], %s4812_s19, %s4812_s19, %s4813_s20  }
  0x26   :  { %s4691_s17 = scalar_lea.hbm %s6630_s0, 512 }
  0x27   :  { %p4692_p2 = scmp.ne.s32.totalorder %s6630_s0, %s4691_s17  ;;  %p4695_p3 = scmp.lt.u32.totalorder %s4691_s17, %s6630_s0 }
  0x29   :  { %p4697_p4 = pnand %p4695_p3, %p4692_p2 }
  0x2b   :  { %4700 = shalt.err (!%p4697_p4)
}
  0x2c   :  { %s4701_s25 = scalar_lea.vmem %s25_s26, 512  ;;  %p4706_p6 = scmp.lt.s32.totalorder %s25_s26, %s25_s26 }
  0x2d   :  { %p4702_p5 = scmp.ne.s32.totalorder %s25_s26, %s4701_s25  ;;  %p4707_p7 = scmp.lt.s32.totalorder %s4701_s25, %s4701_s25 }
  0x2f   :  { %p4708_p8 = por %p4707_p7, %p4706_p6 }
  0x31   :  { %p4709_p9 = pnand %p4708_p8, %p4702_p5 }
  0x33   :  { %4712 = shalt.err (!%p4709_p9)
}
  0x34   :  { %s4816_s4 = smov 64   ;;  %s4817_s24 = smov 4  }
  0x35   :  { %30 = dma.hbm_to_vmem [thread:$0]  %s6630_s0, 512, %s25_s26, [#allocation4], %s4816_s4, %s4816_s4, %s4817_s24  }
  0x36   :  { %s4818_s29 = smov [#allocation8]   ;;  %s4819_s11 = smov [#allocation11]  }
  0x37   :  { %s48_s30 = sshll.u32 %s4818_s29, 4  ;;  %s74_s12 = sshll.u32 %s4819_s11, 4  ;;  %s49_s30 = int_to_ptr.vmem [resolvable:$true] %s48_s30  ;;  %s75_s12 = int_to_ptr.vmem [resolvable:$true] %s74_s12 }
  0x38   :  { %s4713_s10 = scalar_lea.hbm %s6632_s2, 4096 }
  0x39   :  { %p4714_p10 = scmp.ne.s32.totalorder %s6632_s2, %s4713_s10  ;;  %p4717_p11 = scmp.lt.u32.totalorder %s4713_s10, %s6632_s2 }
  0x3b   :  { %p4719_p12 = pnand %p4717_p11, %p4714_p10 }
  0x3d   :  { %4722 = shalt.err (!%p4719_p12)
}
  0x3e   :  { %s4723_s0 = scalar_lea.vmem %s49_s30, 4096  ;;  %p4728_p0 = scmp.lt.s32.totalorder %s49_s30, %s49_s30 }
  0x3f   :  { %p4724_p13 = scmp.ne.s32.totalorder %s49_s30, %s4723_s0  ;;  %p4729_p1 = scmp.lt.s32.totalorder %s4723_s0, %s4723_s0 }
  0x41   :  { %p4730_p2 = por %p4729_p1, %p4728_p0 }
  0x43   :  { %p4731_p3 = pnand %p4730_p2, %p4724_p13 }
  0x45   :  { %4734 = shalt.err (!%p4731_p3)
}
  0x46   :  { %54 = dma.hbm_to_vmem [thread:$0]  %s6632_s2, 4096, %s49_s30, [#allocation7], %s4812_s19, %s4812_s19, %s4813_s20  }
  0x47   :  { %s4735_s23 = scalar_lea.hbm %s6635_s5, 4096 }
  0x48   :  { %p4736_p4 = scmp.ne.s32.totalorder %s6635_s5, %s4735_s23  ;;  %p4739_p5 = scmp.lt.u32.totalorder %s4735_s23, %s6635_s5 }
  0x4a   :  { %p4741_p6 = pnand %p4739_p5, %p4736_p4 }
  0x4c   :  { %4744 = shalt.err (!%p4741_p6)
}
  0x4d   :  { %s4745_s11 = scalar_lea.vmem %s75_s12, 4096  ;;  %p4750_p8 = scmp.lt.s32.totalorder %s75_s12, %s75_s12 }
  0x4e   :  { %p4746_p7 = scmp.ne.s32.totalorder %s75_s12, %s4745_s11  ;;  %p4751_p9 = scmp.lt.s32.totalorder %s4745_s11, %s4745_s11 }
  0x50   :  { %p4752_p10 = por %p4751_p9, %p4750_p8 }
  0x52   :  { %p4753_p11 = pnand %p4752_p10, %p4746_p7 }
  0x54   :  { %4756 = shalt.err (!%p4753_p11)
}
  0x55   :  { %80 = dma.hbm_to_vmem [thread:$0]  %s6635_s5, 4096, %s75_s12, [#allocation10], %s4812_s19, %s4812_s19, %s4813_s20  }
  0x56   :  { %s4820_s13 = smov [#allocation12]   ;;  %s4757_s15 = scalar_lea.hbm %s6637_s7, 1024 }
  0x57   :  { %s88_s1 = sshll.u32 %s4820_s13, 4  ;;  %p4758_p12 = scmp.ne.s32.totalorder %s6637_s7, %s4757_s15  ;;  %s89_s1 = int_to_ptr.vmem [resolvable:$true] %s88_s1 }
  0x58   :  { %p4761_p13 = scmp.lt.u32.totalorder %s4757_s15, %s6637_s7 }
  0x5a   :  { %p4763_p0 = pnand %p4761_p13, %p4758_p12 }
  0x5c   :  { %4766 = shalt.err (!%p4763_p0)
}
  0x5d   :  { %s4767_s18 = scalar_lea.vmem %s89_s1, 1024  ;;  %p4772_p2 = scmp.lt.s32.totalorder %s89_s1, %s89_s1 }
  0x5e   :  { %p4768_p1 = scmp.ne.s32.totalorder %s89_s1, %s4767_s18  ;;  %p4773_p3 = scmp.lt.s32.totalorder %s4767_s18, %s4767_s18 }
  0x60   :  { %p4774_p4 = por %p4773_p3, %p4772_p2 }
  0x62   :  { %p4775_p5 = pnand %p4774_p4, %p4768_p1 }
  0x64   :  { %4778 = shalt.err (!%p4775_p5)
}
  0x65   :  { %94 = dma.hbm_to_vmem [thread:$0]  %s6637_s7, 1024, %s89_s1, [#allocation13], %s4816_s4, %s4816_s4, %s4817_s24  }
  0x66   :  { %4801 = dma.done.wait [#allocation4], 512  }
  0x67   :  { %4802 = vsyncadd [#allocation4], 4294966784 }
  0x68   :  { %4803 = dma.done.wait [#allocation7], 8192  }
  0x69   :  { %4804 = vsyncadd [#allocation7], 4294959104 }
  0x6a   :  { %4805 = dma.done.wait [#allocation10], 8192  }
  0x6b   :  { %4806 = vsyncadd [#allocation10], 4294959104 }
  0x6c   :  { %4807 = dma.done.wait [#allocation13], 1024  }
  0x6d   :  { %4808 = vsyncadd [#allocation13], 4294966272  ;;  %v6640_v0 = vmov 0   ;;  %v3995_v1 = vld [vmem:[#allocation6 + $0x4] ss:$16 sps:$4 sm:$0xff]   ;;  %v4056_v44 = vld [vmem:[#allocation3 + $0x8] sm:$0xff]  }
  0x6e   :  { %394 = vmatprep.mubr.bf16.mxu0 %v6640_v0  ;;  %467 = vmatprep.mubr.bf16.mxu1 %v6640_v0  ;;  %v3997_v2 = vld [vmem:[#allocation6 + $0xc] ss:$16 sps:$4 sm:$0xff]   ;;  %v3999_v3 = vld [vmem:[#allocation6] ss:$16 sps:$4 sm:$0xff]   ;;  %v4000_v4 = vld [vmem:[#allocation6 + $0x8] ss:$16 sps:$4 sm:$0xff]  }
  0x6f   :  { %362 = vmatprep.subr.bf16.mxu0 %v3995_v1  ;;  %435 = vmatprep.subr.bf16.mxu1 %v3997_v2  ;;  %v4001_v5 = vld [vmem:[#allocation6 + $0x24] ss:$16 sps:$4 sm:$0xff]   ;;  %v4003_v6 = vld [vmem:[#allocation6 + $0x2c] ss:$16 sps:$4 sm:$0xff]   ;;  %v4005_v7 = vld [vmem:[#allocation6 + $0x20] ss:$16 sps:$4 sm:$0xff]  }
  0x70   :  { %363 = vmatpush1.bf16.msra.mxu0 %v3999_v3  ;;  %436 = vmatpush1.bf16.msra.mxu1 %v4000_v4  ;;  %v4006_v8 = vld [vmem:[#allocation6 + $0x28] ss:$16 sps:$4 sm:$0xff]   ;;  %v4007_v9 = vld [vmem:[#allocation6 + $0x44] ss:$16 sps:$4 sm:$0xff]   ;;  %v4009_v10 = vld [vmem:[#allocation6 + $0x4c] ss:$16 sps:$4 sm:$0xff]  }
  0x71   :  { %364 = vmatprep.subr.bf16.mxu0 %v4001_v5  ;;  %437 = vmatprep.subr.bf16.mxu1 %v4003_v6  ;;  %v4011_v11 = vld [vmem:[#allocation6 + $0x40] ss:$16 sps:$4 sm:$0xff]   ;;  %v4012_v12 = vld [vmem:[#allocation6 + $0x48] ss:$16 sps:$4 sm:$0xff]   ;;  %v4013_v13 = vld [vmem:[#allocation6 + $0x64] ss:$16 sps:$4 sm:$0xff]  }
  0x72   :  { %v4015_v14 = vld [vmem:[#allocation6 + $0x6c] ss:$16 sps:$4 sm:$0xff]   ;;  %v4017_v15 = vld [vmem:[#allocation6 + $0x60] ss:$16 sps:$4 sm:$0xff]   ;;  %v4018_v16 = vld [vmem:[#allocation6 + $0x68] ss:$16 sps:$4 sm:$0xff]  }
  0x73   :  { %v4019_v17 = vld [vmem:[#allocation6 + $0x84] ss:$16 sps:$4 sm:$0xff]   ;;  %v4021_v18 = vld [vmem:[#allocation6 + $0x8c] ss:$16 sps:$4 sm:$0xff]   ;;  %v4023_v19 = vld [vmem:[#allocation6 + $0x80] ss:$16 sps:$4 sm:$0xff]  }
  0x74   :  { %365 = vmatpush1.bf16.msra.mxu0 %v4005_v7  ;;  %438 = vmatpush1.bf16.msra.mxu1 %v4006_v8  ;;  %v4024_v20 = vld [vmem:[#allocation6 + $0x88] ss:$16 sps:$4 sm:$0xff]   ;;  %v4025_v21 = vld [vmem:[#allocation6 + $0xa4] ss:$16 sps:$4 sm:$0xff]   ;;  %v4027_v22 = vld [vmem:[#allocation6 + $0xac] ss:$16 sps:$4 sm:$0xff]  }
  0x75   :  { %366 = vmatprep.subr.bf16.mxu0 %v4007_v9  ;;  %439 = vmatprep.subr.bf16.mxu1 %v4009_v10  ;;  %v4029_v23 = vld [vmem:[#allocation6 + $0xa0] ss:$16 sps:$4 sm:$0xff]   ;;  %v4030_v24 = vld [vmem:[#allocation6 + $0xa8] ss:$16 sps:$4 sm:$0xff]   ;;  %v4031_v25 = vld [vmem:[#allocation6 + $0xc4] ss:$16 sps:$4 sm:$0xff]  }
  0x76   :  { %v4033_v26 = vld [vmem:[#allocation6 + $0xcc] ss:$16 sps:$4 sm:$0xff]   ;;  %v4035_v27 = vld [vmem:[#allocation6 + $0xc0] ss:$16 sps:$4 sm:$0xff]   ;;  %v4036_v28 = vld [vmem:[#allocation6 + $0xc8] ss:$16 sps:$4 sm:$0xff]  }
  0x77   :  { %v4037_v29 = vld [vmem:[#allocation6 + $0xe4] ss:$16 sps:$4 sm:$0xff]   ;;  %v4039_v30 = vld [vmem:[#allocation6 + $0xec] ss:$16 sps:$4 sm:$0xff]   ;;  %v4041_v31 = vld [vmem:[#allocation6 + $0xe0] ss:$16 sps:$4 sm:$0xff]  }
  0x78   :  { %367 = vmatpush1.bf16.msra.mxu0 %v4011_v11  ;;  %440 = vmatpush1.bf16.msra.mxu1 %v4012_v12  ;;  %v4042_v32 = vld [vmem:[#allocation6 + $0xe8] ss:$16 sps:$4 sm:$0xff]   ;;  %v4967_v33 = vld [vmem:[#allocation8 + $0x4] ss:$16 sps:$4 sm:$0xff]   ;;  %v4969_v34 = vld [vmem:[#allocation8 + $0xc] ss:$16 sps:$4 sm:$0xff]  }
  0x79   :  { %368 = vmatprep.subr.bf16.mxu0 %v4013_v13  ;;  %441 = vmatprep.subr.bf16.mxu1 %v4015_v14  ;;  %v4043_v35 = vld [vmem:[#allocation3] sm:$0xff]   ;;  %v4973_v37 = vld [vmem:[#allocation8 + $0x8] ss:$16 sps:$4 sm:$0xff]   ;;  %v4979_v39 = vld [vmem:[#allocation8 + $0x2c] ss:$16 sps:$4 sm:$0xff]   ;;  %vm4823_vm0 = vmmov 0  }
  0x7a   :  { %v4971_v36 = vld [vmem:[#allocation8] ss:$16 sps:$4 sm:$0xff]   ;;  %v4977_v38 = vld [vmem:[#allocation8 + $0x24] ss:$16 sps:$4 sm:$0xff]   ;;  %v4985_v41 = vld [vmem:[#allocation8 + $0x28] ss:$16 sps:$4 sm:$0xff]  }
  0x7b   :  { %v4981_v40 = vld [vmem:[#allocation8 + $0x20] ss:$16 sps:$4 sm:$0xff]   ;;  %v4989_v42 = vld [vmem:[#allocation8 + $0x44] ss:$16 sps:$4 sm:$0xff]   ;;  %v4991_v43 = vld [vmem:[#allocation8 + $0x4c] ss:$16 sps:$4 sm:$0xff]  }
  0x7c   :  { %369 = vmatpush1.bf16.msra.mxu0 %v4017_v15  ;;  %442 = vmatpush1.bf16.msra.mxu1 %v4018_v16  ;;  %v4995_v45 = vld [vmem:[#allocation8 + $0x40] ss:$16 sps:$4 sm:$0xff]   ;;  %v4997_v46 = vld [vmem:[#allocation8 + $0x48] ss:$16 sps:$4 sm:$0xff]   ;;  %v5001_v47 = vld [vmem:[#allocation8 + $0x64] ss:$16 sps:$4 sm:$0xff]  }
  0x7d   :  { %370 = vmatprep.subr.bf16.mxu0 %v4019_v17  ;;  %443 = vmatprep.subr.bf16.mxu1 %v4021_v18  ;;  %v5005_v48 = vld [vmem:[#allocation8 + $0x6c] ss:$16 sps:$4 sm:$0xff]   ;;  %v5007_v49 = vld [vmem:[#allocation8 + $0x60] ss:$16 sps:$4 sm:$0xff]   ;;  %v5009_v50 = vld [vmem:[#allocation8 + $0x68] ss:$16 sps:$4 sm:$0xff]  }
  0x7e   :  { %v5013_v51 = vld [vmem:[#allocation8 + $0x84] ss:$16 sps:$4 sm:$0xff]   ;;  %v5017_v52 = vld [vmem:[#allocation8 + $0x8c] ss:$16 sps:$4 sm:$0xff]   ;;  %v5021_v54 = vld [vmem:[#allocation8 + $0x80] ss:$16 sps:$4 sm:$0xff]  }
  0x7f   :  { %v4069_v53 = vld [vmem:[#allocation3 + $0x10] sm:$0xff]   ;;  %v5023_v55 = vld [vmem:[#allocation8 + $0x88] ss:$16 sps:$4 sm:$0xff]   ;;  %v5027_v57 = vld [vmem:[#allocation8 + $0xac] ss:$16 sps:$4 sm:$0xff]   ;;  %s4824_s12 = smov [#allocation14]  }
  0x80   :  { %371 = vmatpush1.bf16.msra.mxu0 %v4023_v19  ;;  %444 = vmatpush1.bf16.msra.mxu1 %v4024_v20  ;;  %v5025_v56 = vld [vmem:[#allocation8 + $0xa4] ss:$16 sps:$4 sm:$0xff]   ;;  %v5033_v58 = vld [vmem:[#allocation8 + $0xa0] ss:$16 sps:$4 sm:$0xff]   ;;  %v5035_v59 = vld [vmem:[#allocation8 + $0xa8] ss:$16 sps:$4 sm:$0xff]  }
  0x81   :  { %372 = vmatprep.subr.bf16.mxu0 %v4025_v21  ;;  %445 = vmatprep.subr.bf16.mxu1 %v4027_v22  ;;  %v5037_v60 = vld [vmem:[#allocation8 + $0xc4] ss:$16 sps:$4 sm:$0xff]   ;;  %v5039_v61 = vld [vmem:[#allocation8 + $0xcc] ss:$16 sps:$4 sm:$0xff]   ;;  %v5047_v63 = vld [vmem:[#allocation8 + $0xc0] ss:$16 sps:$4 sm:$0xff]  }
  0x82   :  { %v4082_v62 = vld [vmem:[#allocation3 + $0x18] sm:$0xff]   ;;  %v5051_v2 = vld [vmem:[#allocation8 + $0xe4] ss:$16 sps:$4 sm:$0xff]   ;;  %v5059_v4 = vld [vmem:[#allocation8 + $0xe0] ss:$16 sps:$4 sm:$0xff]   ;;  %s3744_s21 = sshll.u32 %s4824_s12, 4  ;;  %s3745_s21 = int_to_ptr.vmem [resolvable:$true] %s3744_s21 }
  0x83   :  { %v5049_v1 = vld [vmem:[#allocation8 + $0xc8] ss:$16 sps:$4 sm:$0xff]   ;;  %v5053_v3 = vld [vmem:[#allocation8 + $0xec] ss:$16 sps:$4 sm:$0xff]   ;;  %v5075_v6 = vld [vmem:[#allocation11 + $0x4] ss:$16 sps:$4 sm:$0xff]   ;;  %p4784_p7 = scmp.lt.s32.totalorder %s3745_s21, %s3745_s21 }
  0x84   :  { %373 = vmatpush1.bf16.msra.mxu0 %v4029_v23  ;;  %446 = vmatpush1.bf16.msra.mxu1 %v4030_v24  ;;  %v5061_v5 = vld [vmem:[#allocation8 + $0xe8] ss:$16 sps:$4 sm:$0xff]   ;;  %v5077_v7 = vld [vmem:[#allocation11 + $0xc] ss:$16 sps:$4 sm:$0xff]   ;;  %v5079_v8 = vld [vmem:[#allocation11] ss:$16 sps:$4 sm:$0xff]  }
  0x85   :  { %374 = vmatprep.subr.bf16.mxu0 %v4031_v25  ;;  %447 = vmatprep.subr.bf16.mxu1 %v4033_v26  ;;  %v5082_v9 = vld [vmem:[#allocation11 + $0x8] ss:$16 sps:$4 sm:$0xff]   ;;  %v5087_v10 = vld [vmem:[#allocation11 + $0x24] ss:$16 sps:$4 sm:$0xff]   ;;  %v5089_v11 = vld [vmem:[#allocation11 + $0x2c] ss:$16 sps:$4 sm:$0xff]  }
  0x86   :  { %v5091_v12 = vld [vmem:[#allocation11 + $0x20] ss:$16 sps:$4 sm:$0xff]   ;;  %v5094_v13 = vld [vmem:[#allocation11 + $0x28] ss:$16 sps:$4 sm:$0xff]   ;;  %v5099_v14 = vld [vmem:[#allocation11 + $0x44] ss:$16 sps:$4 sm:$0xff]  }
  0x87   :  { %6910 = vst [vmem:[#allocation20_spill] sm:$0xff] %v5099_v14  ;;  %v5101_v15 = vld [vmem:[#allocation11 + $0x4c] ss:$16 sps:$4 sm:$0xff]   ;;  %v5103_v16 = vld [vmem:[#allocation11 + $0x40] ss:$16 sps:$4 sm:$0xff]   ;;  %s4779_s22 = scalar_lea.vmem %s3745_s21, 128 }
  0x88   :  { %375 = vmatpush1.bf16.msra.mxu0 %v4035_v27  ;;  %448 = vmatpush1.bf16.msra.mxu1 %v4036_v28  ;;  %6911 = vst [vmem:[#allocation21_spill] sm:$0xff] %v5101_v15  ;;  %6912 = vst [vmem:[#allocation22_spill] sm:$0xff] %v5103_v16  ;;  %v5106_v17 = vld [vmem:[#allocation11 + $0x48] ss:$16 sps:$4 sm:$0xff]   ;;  %v5111_v18 = vld [vmem:[#allocation11 + $0x64] ss:$16 sps:$4 sm:$0xff]   ;;  %p4780_p6 = scmp.ne.s32.totalorder %s3745_s21, %s4779_s22  ;;  %p4785_p8 = scmp.lt.s32.totalorder %s4779_s22, %s4779_s22 }
  0x89   :  { %376 = vmatprep.subr.bf16.mxu0 %v4037_v29  ;;  %449 = vmatprep.subr.bf16.mxu1 %v4039_v30  ;;  %6913 = vst [vmem:[#allocation23_spill] sm:$0xff] %v5106_v17  ;;  %6914 = vst [vmem:[#allocation24_spill] sm:$0xff] %v5111_v18  ;;  %v5113_v19 = vld [vmem:[#allocation11 + $0x6c] ss:$16 sps:$4 sm:$0xff]   ;;  %v5115_v20 = vld [vmem:[#allocation11 + $0x60] ss:$16 sps:$4 sm:$0xff]  }
  0x8a   :  { %6915 = vst [vmem:[#allocation25_spill] sm:$0xff] %v5113_v19  ;;  %6916 = vst [vmem:[#allocation26_spill] sm:$0xff] %v5115_v20  ;;  %v5118_v21 = vld [vmem:[#allocation11 + $0x68] ss:$16 sps:$4 sm:$0xff]   ;;  %v5123_v22 = vld [vmem:[#allocation11 + $0x84] ss:$16 sps:$4 sm:$0xff]   ;;  %p4786_p9 = por %p4785_p8, %p4784_p7 }
  0x8b   :  { %6917 = vst [vmem:[#allocation27_spill] sm:$0xff] %v5118_v21  ;;  %6918 = vst [vmem:[#allocation28_spill] sm:$0xff] %v5123_v22  ;;  %v5125_v23 = vld [vmem:[#allocation11 + $0x8c] ss:$16 sps:$4 sm:$0xff]   ;;  %v5127_v24 = vld [vmem:[#allocation11 + $0x80] ss:$16 sps:$4 sm:$0xff]  }
  0x8c   :  { %377 = vmatpush1.bf16.msra.mxu0 %v4041_v31  ;;  %450 = vmatpush1.bf16.msra.mxu1 %v4042_v32  ;;  %6919 = vst [vmem:[#allocation29_spill] sm:$0xff] %v5125_v23  ;;  %6920 = vst [vmem:[#allocation30_spill] sm:$0xff] %v5127_v24  ;;  %v5130_v25 = vld [vmem:[#allocation11 + $0x88] ss:$16 sps:$4 sm:$0xff]   ;;  %v5135_v26 = vld [vmem:[#allocation11 + $0xa4] ss:$16 sps:$4 sm:$0xff]   ;;  %p4787_p10 = pnand %p4786_p9, %p4780_p6 }
  0x8d   :  { %761 = vmatprep.subr.bf16.mxu0 %v4967_v33  ;;  %802 = vmatprep.subr.bf16.mxu1 %v4969_v34  ;;  %6921 = vst [vmem:[#allocation31_spill] sm:$0xff] %v5130_v25  ;;  %6922 = vst [vmem:[#allocation32_spill] sm:$0xff] %v5135_v26  ;;  %v5137_v27 = vld [vmem:[#allocation11 + $0xac] ss:$16 sps:$4 sm:$0xff]   ;;  %v5139_v28 = vld [vmem:[#allocation11 + $0xa0] ss:$16 sps:$4 sm:$0xff]  }
  0x8e   :  { %6923 = vst [vmem:[#allocation33_spill] sm:$0xff] %v5137_v27  ;;  %6924 = vst [vmem:[#allocation34_spill] sm:$0xff] %v5139_v28  ;;  %v5142_v29 = vld [vmem:[#allocation11 + $0xa8] ss:$16 sps:$4 sm:$0xff]   ;;  %v5147_v30 = vld [vmem:[#allocation11 + $0xc4] ss:$16 sps:$4 sm:$0xff]  }
  0x8f   :  { %395 = vmatmul.mubr.bf16.vlgmr.msra.gmra.mrb[0].mxu0 %v4043_v35  ;;  %468 = vmatmul.mubr.bf16.vlgmr.msra.gmra.mrb[0].mxu1 %v4043_v35  ;;  %6925 = vst [vmem:[#allocation35_spill] sm:$0xff] %v5142_v29  ;;  %6926 = vst [vmem:[#allocation36_spill] sm:$0xff] %v5147_v30  ;;  %v5149_v31 = vld [vmem:[#allocation11 + $0xcc] ss:$16 sps:$4 sm:$0xff]   ;;  %v5151_v32 = vld [vmem:[#allocation11 + $0xc0] ss:$16 sps:$4 sm:$0xff]  }
  0x90   :  { %762 = vmatpush1.bf16.msra.mxu0 %v4971_v36  ;;  %803 = vmatpush1.bf16.msra.mxu1 %v4973_v37  ;;  %6927 = vst [vmem:[#allocation37_spill] sm:$0xff] %v5149_v31  ;;  %6928 = vst [vmem:[#allocation38_spill] sm:$0xff] %v5151_v32  ;;  %v5154_v35 = vld [vmem:[#allocation11 + $0xc8] ss:$16 sps:$4 sm:$0xff]  }
  0x91   :  { %763 = vmatprep.subr.bf16.mxu0 %v4977_v38  ;;  %804 = vmatprep.subr.bf16.mxu1 %v4979_v39  ;;  %6929 = vst [vmem:[#allocation39_spill] sm:$0xff] %v5154_v35 }
  0x92   :  { %404 = vmatprep.mubr.bf16.mxu0 %v6640_v0  ;;  %477 = vmatprep.mubr.bf16.mxu1 %v6640_v0 }
  0x94   :  { %764 = vmatpush1.bf16.msra.mxu0 %v4981_v40  ;;  %805 = vmatpush1.bf16.msra.mxu1 %v4985_v41 }
  0x95   :  { %765 = vmatprep.subr.bf16.mxu0 %v4989_v42  ;;  %806 = vmatprep.subr.bf16.mxu1 %v4991_v43 }
  0x97   :  { %405 = vmatmul.mubr.bf16.gmra.mrb[4].mxu0 %v4056_v44  ;;  %478 = vmatmul.mubr.bf16.gmra.mrb[4].mxu1 %v4056_v44  ;;  %v5159_v44 = vld [vmem:[#allocation11 + $0xe4] ss:$16 sps:$4 sm:$0xff]  }
  0x98   :  { %766 = vmatpush1.bf16.msra.mxu0 %v4995_v45  ;;  %807 = vmatpush1.bf16.msra.mxu1 %v4997_v46  ;;  %6930 = vst [vmem:[#allocation40_spill] sm:$0xff] %v5159_v44 }
  0x99   :  { %767 = vmatprep.subr.bf16.mxu0 %v5001_v47  ;;  %808 = vmatprep.subr.bf16.mxu1 %v5005_v48 }
  0x9a   :  { %414 = vmatprep.mubr.bf16.mxu0 %v6640_v0  ;;  %487 = vmatprep.mubr.bf16.mxu1 %v6640_v0 }
  0x9c   :  { %768 = vmatpush1.bf16.msra.mxu0 %v5007_v49  ;;  %809 = vmatpush1.bf16.msra.mxu1 %v5009_v50 }
  0x9d   :  { %769 = vmatprep.subr.bf16.mxu0 %v5013_v51  ;;  %810 = vmatprep.subr.bf16.mxu1 %v5017_v52 }
  0x9f   :  { %415 = vmatmul.mubr.bf16.gmra.mrb[8].mxu0 %v4069_v53  ;;  %488 = vmatmul.mubr.bf16.gmra.mrb[8].mxu1 %v4069_v53  ;;  %v5161_v53 = vld [vmem:[#allocation11 + $0xec] ss:$16 sps:$4 sm:$0xff]  }
  0xa0   :  { %770 = vmatpush1.bf16.msra.mxu0 %v5021_v54  ;;  %811 = vmatpush1.bf16.msra.mxu1 %v5023_v55  ;;  %6931 = vst [vmem:[#allocation41_spill] sm:$0xff] %v5161_v53 }
  0xa1   :  { %771 = vmatprep.subr.bf16.mxu0 %v5025_v56  ;;  %812 = vmatprep.subr.bf16.mxu1 %v5027_v57 }
  0xa2   :  { %424 = vmatprep.mubr.bf16.mxu0 %v6640_v0  ;;  %497 = vmatprep.mubr.bf16.mxu1 %v6640_v0 }
  0xa4   :  { %772 = vmatpush1.bf16.msra.mxu0 %v5033_v58  ;;  %813 = vmatpush1.bf16.msra.mxu1 %v5035_v59 }
  0xa5   :  { %773 = vmatprep.subr.bf16.mxu0 %v5037_v60  ;;  %814 = vmatprep.subr.bf16.mxu1 %v5039_v61 }
  0xa7   :  { %425 = vmatmul.mubr.bf16.gmra.mrb[12].mxu0 %v4082_v62  ;;  %498 = vmatmul.mubr.bf16.gmra.mrb[12].mxu1 %v4082_v62  ;;  %v5163_v62 = vld [vmem:[#allocation11 + $0xe0] ss:$16 sps:$4 sm:$0xff]  }
  0xa8   :  { %774 = vmatpush1.bf16.msra.mxu0 %v5047_v63  ;;  %815 = vmatpush1.bf16.msra.mxu1 %v5049_v1  ;;  %6932 = vst [vmem:[#allocation42_spill] sm:$0xff] %v5163_v62 }
  0xa9   :  { %775 = vmatprep.subr.bf16.mxu0 %v5051_v2  ;;  %816 = vmatprep.subr.bf16.mxu1 %v5053_v3 }
  0xaa   :  { %793 = vmatprep.mubr.bf16.mxu0 %v6640_v0  ;;  %834 = vmatprep.mubr.bf16.mxu1 %v6640_v0 }
  0xac   :  { %776 = vmatpush1.bf16.msra.mxu0 %v5059_v4  ;;  %817 = vmatpush1.bf16.msra.mxu1 %v5061_v5 }
  0xad   :  { %1096 = vmatprep.subr.bf16.mxu0 %v5075_v6  ;;  %1137 = vmatprep.subr.bf16.mxu1 %v5077_v7 }
  0xaf   :  { %794 = vmatmul.mubr.bf16.vlgmr.msra.gmra.mrb[16].mxu0 %v6640_v0  ;;  %835 = vmatmul.mubr.bf16.vlgmr.msra.gmra.mrb[16].mxu1 %v6640_v0 }
  0xb0   :  { %1128 = vmatprep.mubr.bf16.mxu0 %v6640_v0  ;;  %1169 = vmatprep.mubr.bf16.mxu1 %v6640_v0  ;;  %v5166_v0 = vld [vmem:[#allocation11 + $0xe8] ss:$16 sps:$4 sm:$0xff]  }
  0xb1   :  { %1097 = vmatpush1.bf16.msra.mxu0 %v5079_v8  ;;  %1138 = vmatpush1.bf16.msra.mxu1 %v5082_v9  ;;  %6933 = vst [vmem:[#allocation43_spill] sm:$0xff] %v5166_v0 }
  0xb2   :  { %1098 = vmatprep.subr.bf16.mxu0 %v5087_v10  ;;  %1139 = vmatprep.subr.bf16.mxu1 %v5089_v11 }
  0xb5   :  { %1099 = vmatpush1.bf16.msra.mxu0 %v5091_v12  ;;  %1140 = vmatpush1.bf16.msra.mxu1 %v5094_v13 }
  0xb6   :  { %1100 = vmatprep.subr.bf16.mxu0 %v5099_v14  ;;  %1141 = vmatprep.subr.bf16.mxu1 %v5101_v15 }
  0xb9   :  { %1101 = vmatpush1.bf16.msra.mxu0 %v5103_v16  ;;  %1142 = vmatpush1.bf16.msra.mxu1 %v5106_v17 }
  0xba   :  { %1102 = vmatprep.subr.bf16.mxu0 %v5111_v18  ;;  %1143 = vmatprep.subr.bf16.mxu1 %v5113_v19 }
  0xbd   :  { %1103 = vmatpush1.bf16.msra.mxu0 %v5115_v20  ;;  %1144 = vmatpush1.bf16.msra.mxu1 %v5118_v21 }
  0xbe   :  { %1104 = vmatprep.subr.bf16.mxu0 %v5123_v22  ;;  %1145 = vmatprep.subr.bf16.mxu1 %v5125_v23 }
  0xc1   :  { %1105 = vmatpush1.bf16.msra.mxu0 %v5127_v24  ;;  %1146 = vmatpush1.bf16.msra.mxu1 %v5130_v25 }
  0xc2   :  { %1106 = vmatprep.subr.bf16.mxu0 %v5135_v26  ;;  %1147 = vmatprep.subr.bf16.mxu1 %v5137_v27  ;;  %v5245_v27 = vld [vmem:[#allocation9 + $0xcc] ss:$16 sps:$4 sm:$0xff]  }
  0xc3   :  { %6960 = vst [vmem:[#allocation69_spill] sm:$0xff] %v5245_v27 }
  0xc5   :  { %1107 = vmatpush1.bf16.msra.mxu0 %v5139_v28  ;;  %1148 = vmatpush1.bf16.msra.mxu1 %v5142_v29  ;;  %v5178_v29 = vld [vmem:[#allocation9 + $0x8] ss:$16 sps:$4 sm:$0xff]   ;;  %v5243_v28 = vld [vmem:[#allocation9 + $0xc4] ss:$16 sps:$4 sm:$0xff]  }
  0xc6   :  { %1108 = vmatprep.subr.bf16.mxu0 %v5147_v30  ;;  %1149 = vmatprep.subr.bf16.mxu1 %v5149_v31  ;;  %v5171_v31 = vld [vmem:[#allocation9 + $0x4] ss:$16 sps:$4 sm:$0xff]   ;;  %v5176_v30 = vld [vmem:[#allocation9] ss:$16 sps:$4 sm:$0xff]   ;;  %6938 = vst [vmem:[#allocation47_spill] sm:$0xff] %v5178_v29  ;;  %6959 = vst [vmem:[#allocation68_spill] sm:$0xff] %v5243_v28 }
  0xc7   :  { %6934 = vst [vmem:[#allocation44_spill] sm:$0xff] %v5171_v31  ;;  %6937 = vst [vmem:[#allocation46_spill] sm:$0xff] %v5176_v30 }
  0xc9   :  { %1109 = vmatpush1.bf16.msra.mxu0 %v5151_v32  ;;  %1150 = vmatpush1.bf16.msra.mxu1 %v5154_v35  ;;  %v5173_v32 = vld [vmem:[#allocation9 + $0xc] ss:$16 sps:$4 sm:$0xff]   ;;  %v6936_v35 = vmov 0  }
  0xca   :  { %1110 = vmatprep.subr.bf16.mxu0 %v5159_v44  ;;  %1151 = vmatprep.subr.bf16.mxu1 %v5161_v53  ;;  %6935 = vst [vmem:[#allocation45_spill] sm:$0xff] %v5173_v32  ;;  %v5190_v53 = vld [vmem:[#allocation9 + $0x20] ss:$16 sps:$4 sm:$0xff]   ;;  %v5192_v44 = vld [vmem:[#allocation9 + $0x28] ss:$16 sps:$4 sm:$0xff]  }
  0xcb   :  { %6941 = vst [vmem:[#allocation50_spill] sm:$0xff] %v5190_v53  ;;  %6942 = vst [vmem:[#allocation51_spill] sm:$0xff] %v5192_v44 }
  0xcd   :  { %1111 = vmatpush1.bf16.msra.mxu0 %v5163_v62  ;;  %1152 = vmatpush1.bf16.msra.mxu1 %v5166_v0  ;;  %v5185_v0 = vld [vmem:[#allocation9 + $0x24] ss:$16 sps:$4 sm:$0xff]   ;;  %v5187_v62 = vld [vmem:[#allocation9 + $0x2c] ss:$16 sps:$4 sm:$0xff]  }
  0xce   :  { %1338 = vmatprep.subr.bf16.mxu0 %v5171_v31  ;;  %1379 = vmatprep.subr.bf16.mxu1 %v5173_v32  ;;  %6939 = vst [vmem:[#allocation48_spill] sm:$0xff] %v5185_v0  ;;  %6940 = vst [vmem:[#allocation49_spill] sm:$0xff] %v5187_v62  ;;  %v5203_v32 = vld [vmem:[#allocation9 + $0x40] ss:$16 sps:$4 sm:$0xff]   ;;  %v5205_v31 = vld [vmem:[#allocation9 + $0x48] ss:$16 sps:$4 sm:$0xff]  }
  0xcf   :  { %6945 = vst [vmem:[#allocation54_spill] sm:$0xff] %v5203_v32  ;;  %6946 = vst [vmem:[#allocation55_spill] sm:$0xff] %v5205_v31 }
  0xd0   :  { %1129 = vmatmul.mubr.bf16.vlgmr.msra.gmra.mrb[20].mxu0 %v6936_v35  ;;  %1170 = vmatmul.mubr.bf16.vlgmr.msra.gmra.mrb[20].mxu1 %v6936_v35 }
  0xd1   :  { %1339 = vmatpush1.bf16.msra.mxu0 %v5176_v30  ;;  %1380 = vmatpush1.bf16.msra.mxu1 %v5178_v29  ;;  %v5199_v29 = vld [vmem:[#allocation9 + $0x44] ss:$16 sps:$4 sm:$0xff]   ;;  %v5201_v30 = vld [vmem:[#allocation9 + $0x4c] ss:$16 sps:$4 sm:$0xff]  }
  0xd2   :  { %1370 = vmatprep.mubr.bf16.mxu0 %v6936_v35  ;;  %1411 = vmatprep.mubr.bf16.mxu1 %v6936_v35  ;;  %6943 = vst [vmem:[#allocation52_spill] sm:$0xff] %v5199_v29  ;;  %6944 = vst [vmem:[#allocation53_spill] sm:$0xff] %v5201_v30 }
  0xd3   :  { %1340 = vmatprep.subr.bf16.mxu0 %v5185_v0  ;;  %1381 = vmatprep.subr.bf16.mxu1 %v5187_v62  ;;  %v5211_v62 = vld [vmem:[#allocation9 + $0x64] ss:$16 sps:$4 sm:$0xff]   ;;  %v5217_v0 = vld [vmem:[#allocation9 + $0x68] ss:$16 sps:$4 sm:$0xff]  }
  0xd4   :  { %6947 = vst [vmem:[#allocation56_spill] sm:$0xff] %v5211_v62  ;;  %6950 = vst [vmem:[#allocation59_spill] sm:$0xff] %v5217_v0 }
  0xd5   :  { %1341 = vmatpush1.bf16.msra.mxu0 %v5190_v53  ;;  %1382 = vmatpush1.bf16.msra.mxu1 %v5192_v44  ;;  %v5213_v53 = vld [vmem:[#allocation9 + $0x6c] ss:$16 sps:$4 sm:$0xff]   ;;  %v5215_v44 = vld [vmem:[#allocation9 + $0x60] ss:$16 sps:$4 sm:$0xff]  }
  0xd6   :  { %1342 = vmatprep.subr.bf16.mxu0 %v5199_v29  ;;  %1383 = vmatprep.subr.bf16.mxu1 %v5201_v30  ;;  %6948 = vst [vmem:[#allocation57_spill] sm:$0xff] %v5213_v53  ;;  %6949 = vst [vmem:[#allocation58_spill] sm:$0xff] %v5215_v44  ;;  %v5223_v30 = vld [vmem:[#allocation9 + $0x84] ss:$16 sps:$4 sm:$0xff]   ;;  %v5229_v29 = vld [vmem:[#allocation9 + $0x88] ss:$16 sps:$4 sm:$0xff]  }
  0xd7   :  { %6951 = vst [vmem:[#allocation60_spill] sm:$0xff] %v5223_v30  ;;  %6954 = vst [vmem:[#allocation63_spill] sm:$0xff] %v5229_v29 }
  0xd9   :  { %1343 = vmatpush1.bf16.msra.mxu0 %v5203_v32  ;;  %1384 = vmatpush1.bf16.msra.mxu1 %v5205_v31  ;;  %v5225_v32 = vld [vmem:[#allocation9 + $0x8c] ss:$16 sps:$4 sm:$0xff]   ;;  %v5227_v31 = vld [vmem:[#allocation9 + $0x80] ss:$16 sps:$4 sm:$0xff]  }
  0xda   :  { %1344 = vmatprep.subr.bf16.mxu0 %v5211_v62  ;;  %1385 = vmatprep.subr.bf16.mxu1 %v5213_v53  ;;  %6952 = vst [vmem:[#allocation61_spill] sm:$0xff] %v5225_v32  ;;  %6953 = vst [vmem:[#allocation62_spill] sm:$0xff] %v5227_v31  ;;  %v5235_v53 = vld [vmem:[#allocation9 + $0xa4] ss:$16 sps:$4 sm:$0xff]   ;;  %v5241_v62 = vld [vmem:[#allocation9 + $0xa8] ss:$16 sps:$4 sm:$0xff]  }
  0xdb   :  { %6955 = vst [vmem:[#allocation64_spill] sm:$0xff] %v5235_v53  ;;  %6958 = vst [vmem:[#allocation67_spill] sm:$0xff] %v5241_v62 }
  0xdd   :  { %1345 = vmatpush1.bf16.msra.mxu0 %v5215_v44  ;;  %1386 = vmatpush1.bf16.msra.mxu1 %v5217_v0  ;;  %v5237_v44 = vld [vmem:[#allocation9 + $0xac] ss:$16 sps:$4 sm:$0xff]   ;;  %v5239_v0 = vld [vmem:[#allocation9 + $0xa0] ss:$16 sps:$4 sm:$0xff]  }
  0xde   :  { %1346 = vmatprep.subr.bf16.mxu0 %v5223_v30  ;;  %1387 = vmatprep.subr.bf16.mxu1 %v5225_v32  ;;  %6956 = vst [vmem:[#allocation65_spill] sm:$0xff] %v5237_v44  ;;  %6957 = vst [vmem:[#allocation66_spill] sm:$0xff] %v5239_v0  ;;  %v5256_v32 = vld [vmem:[#allocation9 + $0xe4] ss:$16 sps:$4 sm:$0xff]   ;;  %v5259_v30 = vld [vmem:[#allocation9 + $0xec] ss:$16 sps:$4 sm:$0xff]  }
  0xdf   :  { %6963 = vst [vmem:[#allocation72_spill] sm:$0xff] %v5256_v32  ;;  %6964 = vst [vmem:[#allocation73_spill] sm:$0xff] %v5259_v30 }
  0xe1   :  { %1347 = vmatpush1.bf16.msra.mxu0 %v5227_v31  ;;  %1388 = vmatpush1.bf16.msra.mxu1 %v5229_v29  ;;  %v5250_v31 = vld [vmem:[#allocation9 + $0xc0] ss:$16 sps:$4 sm:$0xff]   ;;  %v5254_v29 = vld [vmem:[#allocation9 + $0xc8] ss:$16 sps:$4 sm:$0xff]  }
  0xe2   :  { %1348 = vmatprep.subr.bf16.mxu0 %v5235_v53  ;;  %1389 = vmatprep.subr.bf16.mxu1 %v5237_v44  ;;  %6961 = vst [vmem:[#allocation70_spill] sm:$0xff] %v5250_v31  ;;  %6962 = vst [vmem:[#allocation71_spill] sm:$0xff] %v5254_v29  ;;  %v5262_v53 = vld [vmem:[#allocation9 + $0xe0] ss:$16 sps:$4 sm:$0xff]  }
  0xe3   :  { %6965 = vst [vmem:[#allocation74_spill] sm:$0xff] %v5262_v53 }
  0xe5   :  { %1349 = vmatpush1.bf16.msra.mxu0 %v5239_v0  ;;  %1390 = vmatpush1.bf16.msra.mxu1 %v5241_v62  ;;  %v5266_v0 = vld [vmem:[#allocation9 + $0xe8] ss:$16 sps:$4 sm:$0xff]  }
  0xe6   :  { %1350 = vmatprep.subr.bf16.mxu0 %v5243_v28  ;;  %1391 = vmatprep.subr.bf16.mxu1 %v5245_v27  ;;  %6966 = vst [vmem:[#allocation75_spill] sm:$0xff] %v5266_v0  ;;  %v158_v27 = vlaneseq }
  0xe9   :  { %1351 = vmatpush1.bf16.msra.mxu0 %v5250_v31  ;;  %1392 = vmatpush1.bf16.msra.mxu1 %v5254_v29  ;;  %v5273_v31 = vshrl.u32 %v158_v27, 7 }
  0xea   :  { %1352 = vmatprep.subr.bf16.mxu0 %v5256_v32  ;;  %1393 = vmatprep.subr.bf16.mxu1 %v5259_v30  ;;  %v156_v30 = vld [vmem:[%s6633_s3] sm:$0xf] }
  0xeb   :  { %6967 = vst [vmem:[#allocation76_spill] sm:$0xff] %v5273_v31  ;;  %v6706_v28 = vsub.s32 2, %v5273_v31  ;;  %v6715_v29 = vsub.s32 3, %v5273_v31  ;;  %v6716_v32 = vsub.s32 0, %v5273_v31 }
  0xed   :  { %1353 = vmatpush1.bf16.msra.mxu0 %v5262_v53  ;;  %1394 = vmatpush1.bf16.msra.mxu1 %v5266_v0  ;;  %v6723_v53 = vsub.s32 1, %v5273_v31  ;;  %v5292_v0 = vrot.slane %v156_v30, %v6715_v29  ;;  %v161_v62 = vrot.slane %v156_v30, %v6716_v32 }
  0xee   :  { %1455 = vmatprep.subr.bf16.mxu0 %v4967_v33  ;;  %1496 = vmatprep.subr.bf16.mxu1 %v4969_v34  ;;  %v5284_v33 = vrot.slane %v156_v30, %v6706_v28 }
  0xef   :  { %v165_v25 = vrot.slane %v156_v30, %v6723_v53 }
 0x162   :  { %v5286_v34 = vpop.f32.mrb[0].mxu0  ;;  %v5288_v27 = vpop.f32.mrb[0].mxu1 }
 0x163   :  { %v398_v44 = vpop.f32.mrb[1].mxu0  ;;  %v471_v26 = vpop.f32.mrb[1].mxu1 }
 0x164   :  { %v400_v24 = vpop.f32.mrb[2].mxu0  ;;  %v473_v23 = vpop.f32.mrb[2].mxu1 }
 0x165   :  { %v5298_v28 = vadd.f32 %v400_v24, %v161_v62  ;;  %v402_v22 = vpop.f32.mrb[3].mxu0  ;;  %v5301_v21 = vadd.f32 %v473_v23, %v5284_v33  ;;  %v475_v20 = vpop.f32.mrb[3].mxu1 }
 0x166   :  { %v5303_v19 = vadd.f32 %v402_v22, %v165_v25  ;;  %v5306_v29 = vadd.f32 %v475_v20, %v5292_v0 }
 0x167   :  { %6968 = vst [vmem:[#allocation77_spill] sm:$0xff] %v5298_v28  ;;  %6969 = vst [vmem:[#allocation78_spill] sm:$0xff] %v5301_v21 }
 0x168   :  { %6970 = vst [vmem:[#allocation79_spill] sm:$0xff] %v5303_v19  ;;  %6971 = vst [vmem:[#allocation80_spill] sm:$0xff] %v5306_v29 }
 0x16a   :  { %v406_v32 = vpop.f32.mrb[4].mxu0  ;;  %v479_v18 = vpop.f32.mrb[4].mxu1 }
 0x16b   :  { %v5308_v17 = vadd.f32 %v406_v32, %v161_v62  ;;  %v408_v31 = vpop.f32.mrb[5].mxu0  ;;  %v5311_v30 = vadd.f32 %v479_v18, %v5284_v33  ;;  %v481_v24 = vpop.f32.mrb[5].mxu1 }
 0x16c   :  { %v5313_v53 = vadd.f32 %v408_v31, %v165_v25  ;;  %v410_v28 = vpop.f32.mrb[6].mxu0  ;;  %v5316_v23 = vadd.f32 %v481_v24, %v5292_v0  ;;  %v483_v22 = vpop.f32.mrb[6].mxu1 }
 0x16d   :  { %6972 = vst [vmem:[#allocation81_spill] sm:$0xff] %v5308_v17  ;;  %6973 = vst [vmem:[#allocation82_spill] sm:$0xff] %v5311_v30  ;;  %v5318_v19 = vadd.f32 %v410_v28, %v161_v62  ;;  %v412_v20 = vpop.f32.mrb[7].mxu0  ;;  %v5321_v29 = vadd.f32 %v483_v22, %v5284_v33  ;;  %v485_v32 = vpop.f32.mrb[7].mxu1 }
 0x16e   :  { %6974 = vst [vmem:[#allocation83_spill] sm:$0xff] %v5313_v53  ;;  %6975 = vst [vmem:[#allocation84_spill] sm:$0xff] %v5316_v23  ;;  %v5323_v17 = vadd.f32 %v412_v20, %v165_v25  ;;  %v5326_v18 = vadd.f32 %v485_v32, %v5292_v0 }
 0x16f   :  { %6976 = vst [vmem:[#allocation85_spill] sm:$0xff] %v5318_v19  ;;  %6977 = vst [vmem:[#allocation86_spill] sm:$0xff] %v5321_v29 }
 0x170   :  { %6978 = vst [vmem:[#allocation87_spill] sm:$0xff] %v5323_v17  ;;  %6979 = vst [vmem:[#allocation88_spill] sm:$0xff] %v5326_v18 }
 0x172   :  { %v416_v30 = vpop.f32.mrb[8].mxu0  ;;  %v489_v31 = vpop.f32.mrb[8].mxu1 }
 0x173   :  { %v5328_v53 = vadd.f32 %v416_v30, %v161_v62  ;;  %v418_v21 = vpop.f32.mrb[9].mxu0  ;;  %v5331_v24 = vadd.f32 %v489_v31, %v5284_v33  ;;  %v491_v28 = vpop.f32.mrb[9].mxu1 }
 0x174   :  { %v5333_v19 = vadd.f32 %v418_v21, %v165_v25  ;;  %v420_v23 = vpop.f32.mrb[10].mxu0  ;;  %v5336_v22 = vadd.f32 %v491_v28, %v5292_v0  ;;  %v493_v20 = vpop.f32.mrb[10].mxu1 }
 0x175   :  { %6980 = vst [vmem:[#allocation89_spill] sm:$0xff] %v5328_v53  ;;  %6981 = vst [vmem:[#allocation90_spill] sm:$0xff] %v5331_v24  ;;  %v5338_v17 = vadd.f32 %v420_v23, %v161_v62  ;;  %v422_v32 = vpop.f32.mrb[11].mxu0  ;;  %v5341_v18 = vadd.f32 %v493_v20, %v5284_v33  ;;  %v495_v30 = vpop.f32.mrb[11].mxu1 }
 0x176   :  { %6982 = vst [vmem:[#allocation91_spill] sm:$0xff] %v5333_v19  ;;  %6983 = vst [vmem:[#allocation92_spill] sm:$0xff] %v5336_v22  ;;  %v5343_v53 = vadd.f32 %v422_v32, %v165_v25  ;;  %v5346_v31 = vadd.f32 %v495_v30, %v5292_v0 }
 0x177   :  { %6984 = vst [vmem:[#allocation93_spill] sm:$0xff] %v5338_v17  ;;  %6985 = vst [vmem:[#allocation94_spill] sm:$0xff] %v5341_v18 }
 0x178   :  { %6986 = vst [vmem:[#allocation95_spill] sm:$0xff] %v5343_v53  ;;  %6987 = vst [vmem:[#allocation96_spill] sm:$0xff] %v5346_v31 }
 0x17a   :  { %v426_v24 = vpop.f32.mrb[12].mxu0  ;;  %v499_v21 = vpop.f32.mrb[12].mxu1 }
 0x17b   :  { %v5348_v19 = vadd.f32 %v426_v24, %v161_v62  ;;  %v428_v29 = vpop.f32.mrb[13].mxu0  ;;  %v5351_v28 = vadd.f32 %v499_v21, %v5284_v33  ;;  %v501_v23 = vpop.f32.mrb[13].mxu1 }
 0x17c   :  { %v5353_v17 = vadd.f32 %v428_v29, %v165_v25  ;;  %v430_v22 = vpop.f32.mrb[14].mxu0  ;;  %v5356_v20 = vadd.f32 %v501_v23, %v5292_v0  ;;  %v503_v32 = vpop.f32.mrb[14].mxu1  ;;  %v397_v29 = vadd.f32 %v5286_v34, %v161_v62  ;;  %v399_v23 = vadd.f32 %v398_v44, %v165_v25 }
 0x17d   :  { %6988 = vst [vmem:[#allocation97_spill] sm:$0xff] %v5348_v19  ;;  %6989 = vst [vmem:[#allocation98_spill] sm:$0xff] %v5351_v28  ;;  %v5358_v53 = vadd.f32 %v430_v22, %v161_v62  ;;  %v432_v30 = vpop.f32.mrb[15].mxu0  ;;  %v5361_v31 = vadd.f32 %v503_v32, %v5284_v33  ;;  %v505_v24 = vpop.f32.mrb[15].mxu1 }
 0x17e   :  { %6990 = vst [vmem:[#allocation99_spill] sm:$0xff] %v5353_v17  ;;  %6991 = vst [vmem:[#allocation100_spill] sm:$0xff] %v5356_v20  ;;  %v5363_v19 = vadd.f32 %v432_v30, %v165_v25  ;;  %v5366_v21 = vadd.f32 %v505_v24, %v5292_v0  ;;  %v470_v17 = vadd.f32 %v5288_v27, %v5284_v33 }
 0x17f   :  { %6992 = vst [vmem:[#allocation101_spill] sm:$0xff] %v5358_v53  ;;  %6993 = vst [vmem:[#allocation102_spill] sm:$0xff] %v5361_v31  ;;  %v472_v20 = vadd.f32 %v471_v26, %v5292_v0 }
 0x180   :  { %6994 = vst [vmem:[#allocation103_spill] sm:$0xff] %v5363_v19  ;;  %6995 = vst [vmem:[#allocation104_spill] sm:$0xff] %v5366_v21 }
 0x182   :  { %v795_v22 = vpop.f32.mrb[16].mxu0  ;;  %v836_v53 = vpop.f32.mrb[16].mxu1 }
 0x183   :  { %v843_v28 = vadd.f32 %v795_v22, %v397_v29  ;;  %v845_v18 = vadd.f32 %v836_v53, %v470_v17  ;;  %v797_v32 = vpop.f32.mrb[17].mxu0  ;;  %v838_v31 = vpop.f32.mrb[17].mxu1  ;;  %v7019_v29 = vld [vmem:[#allocation43_spill] sm:$0xff]  ;;  %v7021_v22 = vld [vmem:[#allocation45_spill] sm:$0xff] }
 0x184   :  { %v844_v16 = vadd.f32 %v797_v32, %v399_v23  ;;  %v846_v30 = vadd.f32 %v838_v31, %v472_v20  ;;  %v799_v19 = vpop.f32.mrb[18].mxu0  ;;  %v840_v15 = vpop.f32.mrb[18].mxu1  ;;  %v7020_v23 = vld [vmem:[#allocation44_spill] sm:$0xff]  ;;  %v540_v32 = vld [vmem:[%s6636_s6] sm:$0xf] }
 0x185   :  { %v3831_v24 = vmul.f32 -1.442695, %v843_v28  ;;  %v800_v21 = vpop.f32.mrb[19].mxu0  ;;  %v841_v14 = vpop.f32.mrb[19].mxu1  ;;  %v3833_v33 = vmul.f32 -1.442695, %v845_v18 }
 0x186   :  { %v3832_v62 = vmul.f32 -1.442695, %v844_v16  ;;  %v7018_v21 = vld [vmem:[#allocation42_spill] sm:$0xff] }
 0x187   :  { %4199 = vpow2.f32 %v3831_v24 }
 0x188   :  { %4201 = vpow2.f32 %v3832_v62 }
 0x189   :  { %4203 = vtanh.f32 %v846_v30  ;;  %v7022_v30 = vld [vmem:[#allocation76_spill] sm:$0xff] }
 0x18a   :  { %4205 = vpow2.f32 %v3833_v33  ;;  %v7023_v24 = vsub.s32 0, %v7022_v30 }
 0x18c   :  { %v5448_v62 = vrot.slane %v540_v32, %v7023_v24 }
 0x191   :  { %v4200_v25 = vpop.eup %4199 }
 0x192   :  { %v856_v44 = vadd.f32 1.0, %v4200_v25  ;;  %v4202_v0 = vpop.eup %4201 }
 0x193   :  { %v857_v17 = vadd.f32 1.0, %v4202_v0  ;;  %v4204_v26 = vpop.eup %4203 }
 0x194   :  { %4207 = vrcp.f32 %v856_v44  ;;  %v4206_v53 = vpop.eup %4205  ;;  %v7024_v44 = vsub.s32 1, %v7022_v30 }
 0x195   :  { %4209 = vrcp.f32 %v857_v17  ;;  %v858_v27 = vadd.f32 1.0, %v4206_v53 }
 0x196   :  { %v5452_v0 = vrot.slane %v540_v32, %v7024_v44 }
 0x197   :  { %4211 = vrcp.f32 %v858_v27 }
 0x19e   :  { %v4208_v34 = vpop.eup %4207 }
 0x19f   :  { %v867_v19 = vmul.f32 %v4208_v34, %v4204_v26  ;;  %v4210_v15 = vpop.eup %4209 }
 0x1a0   :  { %v866_v31 = vmul.f32 0.0, %v4210_v15 }
 0x1a1   :  { %v4212_v16 = vpop.eup %4211 }
 0x1a2   :  { %v5372_v14 = vadd.f32 %v867_v19, %v866_v31 }
 0x1a4   :  { %4213 = vtanh.f32 %v5372_v14 }
 0x1ae   :  { %v4214_v18 = vpop.eup %4213 }
 0x1af   :  { %v870_v28 = vmul.f32 %v4214_v18, %v4212_v16 }
 0x1b1   :  { %v871_v20 = vpack.c.bf16 %v870_v28, %v870_v28 }
 0x1b3   :  { %1371 = vmatmul.mubr.bf16.vlgmr.msra.gmra.mrb[24].mxu0 %v871_v20  ;;  %1412 = vmatmul.mubr.bf16.vlgmr.msra.gmra.mrb[24].mxu1 %v871_v20 }
 0x1b4   :  { %1456 = vmatpush1.bf16.msra.mxu0 %v4971_v36  ;;  %1497 = vmatpush1.bf16.msra.mxu1 %v4973_v37  ;;  %v6996_v36 = vld [vmem:[#allocation20_spill] sm:$0xff]  ;;  %v6997_v37 = vld [vmem:[#allocation21_spill] sm:$0xff] }
 0x1b5   :  { %1457 = vmatprep.subr.bf16.mxu0 %v4977_v38  ;;  %1498 = vmatprep.subr.bf16.mxu1 %v4979_v39  ;;  %v6998_v38 = vld [vmem:[#allocation22_spill] sm:$0xff]  ;;  %v6999_v39 = vld [vmem:[#allocation23_spill] sm:$0xff] }
 0x1b6   :  { %1487 = vmatprep.mubr.bf16.mxu0 %v6936_v35  ;;  %1528 = vmatprep.mubr.bf16.mxu1 %v6936_v35 }
 0x1b8   :  { %1458 = vmatpush1.bf16.msra.mxu0 %v4981_v40  ;;  %1499 = vmatpush1.bf16.msra.mxu1 %v4985_v41  ;;  %v7000_v40 = vld [vmem:[#allocation24_spill] sm:$0xff]  ;;  %v7001_v41 = vld [vmem:[#allocation25_spill] sm:$0xff] }
 0x1b9   :  { %1459 = vmatprep.subr.bf16.mxu0 %v4989_v42  ;;  %1500 = vmatprep.subr.bf16.mxu1 %v4991_v43  ;;  %v7002_v42 = vld [vmem:[#allocation26_spill] sm:$0xff]  ;;  %v7003_v43 = vld [vmem:[#allocation27_spill] sm:$0xff] }
 0x1bc   :  { %1460 = vmatpush1.bf16.msra.mxu0 %v4995_v45  ;;  %1501 = vmatpush1.bf16.msra.mxu1 %v4997_v46  ;;  %v7004_v45 = vld [vmem:[#allocation28_spill] sm:$0xff]  ;;  %v7005_v46 = vld [vmem:[#allocation29_spill] sm:$0xff] }
 0x1bd   :  { %1461 = vmatprep.subr.bf16.mxu0 %v5001_v47  ;;  %1502 = vmatprep.subr.bf16.mxu1 %v5005_v48  ;;  %v1130_v47 = vpop.f32.mrb[20].mxu0  ;;  %v7006_v48 = vld [vmem:[#allocation30_spill] sm:$0xff] }
 0x1c0   :  { %1462 = vmatpush1.bf16.msra.mxu0 %v5007_v49  ;;  %1503 = vmatpush1.bf16.msra.mxu1 %v5009_v50  ;;  %v7007_v49 = vld [vmem:[#allocation31_spill] sm:$0xff]  ;;  %v1132_v50 = vpop.f32.mrb[21].mxu0 }
 0x1c1   :  { %1463 = vmatprep.subr.bf16.mxu0 %v5013_v51  ;;  %1504 = vmatprep.subr.bf16.mxu1 %v5017_v52  ;;  %v7008_v51 = vld [vmem:[#allocation32_spill] sm:$0xff]  ;;  %v7009_v52 = vld [vmem:[#allocation33_spill] sm:$0xff] }
 0x1c4   :  { %1464 = vmatpush1.bf16.msra.mxu0 %v5021_v54  ;;  %1505 = vmatpush1.bf16.msra.mxu1 %v5023_v55  ;;  %v1134_v54 = vpop.f32.mrb[22].mxu0  ;;  %v1171_v55 = vpop.f32.mrb[20].mxu1 }
 0x1c5   :  { %1465 = vmatprep.subr.bf16.mxu0 %v5025_v56  ;;  %1506 = vmatprep.subr.bf16.mxu1 %v5027_v57  ;;  %v1135_v56 = vpop.f32.mrb[23].mxu0  ;;  %v1173_v57 = vpop.f32.mrb[21].mxu1 }
 0x1c8   :  { %1466 = vmatpush1.bf16.msra.mxu0 %v5033_v58  ;;  %1507 = vmatpush1.bf16.msra.mxu1 %v5035_v59  ;;  %v1175_v58 = vpop.f32.mrb[22].mxu1  ;;  %v7010_v59 = vld [vmem:[#allocation34_spill] sm:$0xff] }
 0x1c9   :  { %1467 = vmatprep.subr.bf16.mxu0 %v5037_v60  ;;  %1508 = vmatprep.subr.bf16.mxu1 %v5039_v61  ;;  %v7011_v60 = vld [vmem:[#allocation35_spill] sm:$0xff]  ;;  %v1176_v61 = vpop.f32.mrb[23].mxu1  ;;  %v7025_v58 = vsub.s32 2, %v7022_v30 }
 0x1cb   :  { %v5458_v61 = vrot.slane %v540_v32, %v7025_v58  ;;  %v7031_v58 = vld [vmem:[#allocation79_spill] sm:$0xff] }
 0x1cc   :  { %1468 = vmatpush1.bf16.msra.mxu0 %v5047_v63  ;;  %1509 = vmatpush1.bf16.msra.mxu1 %v5049_v1  ;;  %v7012_v63 = vld [vmem:[#allocation36_spill] sm:$0xff]  ;;  %v7013_v1 = vld [vmem:[#allocation37_spill] sm:$0xff] }
 0x1cd   :  { %1469 = vmatprep.subr.bf16.mxu0 %v5051_v2  ;;  %1510 = vmatprep.subr.bf16.mxu1 %v5053_v3  ;;  %v7014_v2 = vld [vmem:[#allocation38_spill] sm:$0xff]  ;;  %v7015_v3 = vld [vmem:[#allocation39_spill] sm:$0xff]  ;;  %7026 = vst [vmem:[#allocation20_spill] sm:$0xff] %v5458_v61 }
 0x1d0   :  { %1470 = vmatpush1.bf16.msra.mxu0 %v5059_v4  ;;  %1511 = vmatpush1.bf16.msra.mxu1 %v5061_v5  ;;  %v7016_v4 = vld [vmem:[#allocation40_spill] sm:$0xff]  ;;  %v7017_v5 = vld [vmem:[#allocation41_spill] sm:$0xff] }
 0x1d1   :  { %1567 = vmatprep.subr.bf16.mxu0 %v5075_v6  ;;  %1608 = vmatprep.subr.bf16.mxu1 %v5077_v7 }
 0x1d3   :  { %1488 = vmatmul.mubr.bf16.vlgmr.msra.gmra.mrb[28].mxu0 %v871_v20  ;;  %1529 = vmatmul.mubr.bf16.vlgmr.msra.gmra.mrb[28].mxu1 %v871_v20 }
 0x1d4   :  { %1568 = vmatpush1.bf16.msra.mxu0 %v5079_v8  ;;  %1609 = vmatpush1.bf16.msra.mxu1 %v5082_v9 }
 0x1d5   :  { %1569 = vmatprep.subr.bf16.mxu0 %v5087_v10  ;;  %1610 = vmatprep.subr.bf16.mxu1 %v5089_v11 }
 0x1d6   :  { %1599 = vmatprep.mubr.bf16.mxu0 %v6936_v35  ;;  %1640 = vmatprep.mubr.bf16.mxu1 %v6936_v35 }
 0x1d8   :  { %1570 = vmatpush1.bf16.msra.mxu0 %v5091_v12  ;;  %1611 = vmatpush1.bf16.msra.mxu1 %v5094_v13 }
 0x1d9   :  { %1571 = vmatprep.subr.bf16.mxu0 %v6996_v36  ;;  %1612 = vmatprep.subr.bf16.mxu1 %v6997_v37 }
 0x1dc   :  { %1572 = vmatpush1.bf16.msra.mxu0 %v6998_v38  ;;  %1613 = vmatpush1.bf16.msra.mxu1 %v6999_v39 }
 0x1dd   :  { %1573 = vmatprep.subr.bf16.mxu0 %v7000_v40  ;;  %1614 = vmatprep.subr.bf16.mxu1 %v7001_v41 }
 0x1e0   :  { %1574 = vmatpush1.bf16.msra.mxu0 %v7002_v42  ;;  %1615 = vmatpush1.bf16.msra.mxu1 %v7003_v43 }
 0x1e1   :  { %1575 = vmatprep.subr.bf16.mxu0 %v7004_v45  ;;  %1616 = vmatprep.subr.bf16.mxu1 %v7005_v46 }
 0x1e4   :  { %1576 = vmatpush1.bf16.msra.mxu0 %v7006_v48  ;;  %1617 = vmatpush1.bf16.msra.mxu1 %v7007_v49 }
 0x1e5   :  { %1577 = vmatprep.subr.bf16.mxu0 %v7008_v51  ;;  %1618 = vmatprep.subr.bf16.mxu1 %v7009_v52 }
 0x1e8   :  { %1578 = vmatpush1.bf16.msra.mxu0 %v7010_v59  ;;  %1619 = vmatpush1.bf16.msra.mxu1 %v7011_v60 }
 0x1e9   :  { %1579 = vmatprep.subr.bf16.mxu0 %v7012_v63  ;;  %1620 = vmatprep.subr.bf16.mxu1 %v7013_v1 }
 0x1ec   :  { %1580 = vmatpush1.bf16.msra.mxu0 %v7014_v2  ;;  %1621 = vmatpush1.bf16.msra.mxu1 %v7015_v3 }
 0x1ed   :  { %1581 = vmatprep.subr.bf16.mxu0 %v7016_v4  ;;  %1622 = vmatprep.subr.bf16.mxu1 %v7017_v5 }
 0x1f0   :  { %1582 = vmatpush1.bf16.msra.mxu0 %v7018_v21  ;;  %1623 = vmatpush1.bf16.msra.mxu1 %v7019_v29 }
 0x1f1   :  { %1649 = vmatprep.subr.bf16.mxu0 %v7020_v23  ;;  %1690 = vmatprep.subr.bf16.mxu1 %v7021_v22 }
 0x286   :  { %v1372_v33 = vpop.f32.mrb[24].mxu0  ;;  %v1413_v25 = vpop.f32.mrb[24].mxu1 }
 0x287   :  { %v1373_v17 = vadd.f32 %v1372_v33, %v1130_v47  ;;  %v1414_v26 = vadd.f32 %v1413_v25, %v1171_v55  ;;  %v1374_v53 = vpop.f32.mrb[25].mxu0  ;;  %v1415_v34 = vpop.f32.mrb[25].mxu1  ;;  %v7027_v47 = vsub.s32 3, %v7022_v30 }
 0x288   :  { %v1375_v19 = vadd.f32 %v1374_v53, %v1132_v50  ;;  %v1416_v15 = vadd.f32 %v1415_v34, %v1173_v57  ;;  %v1376_v27 = vpop.f32.mrb[26].mxu0  ;;  %v1417_v31 = vpop.f32.mrb[26].mxu1 }
 0x289   :  { %v1420_v16 = vadd.f32 %v1373_v17, %v5448_v62  ;;  %v1377_v18 = vpop.f32.mrb[27].mxu0  ;;  %v1418_v28 = vpop.f32.mrb[27].mxu1  ;;  %v5462_v50 = vrot.slane %v540_v32, %v7027_v47  ;;  %v1422_v55 = vadd.f32 %v1414_v26, %v5458_v61 }
 0x28a   :  { %v1421_v20 = vadd.f32 %v1375_v19, %v5452_v0  ;;  %v7029_v18 = vld [vmem:[#allocation77_spill] sm:$0xff]  ;;  %v7030_v28 = vld [vmem:[#allocation78_spill] sm:$0xff] }
 0x28b   :  { %v3898_v54 = vmul.f32 -1.442695, %v1420_v16  ;;  %7028 = vst [vmem:[#allocation21_spill] sm:$0xff] %v5462_v50  ;;  %v1423_v57 = vadd.f32 %v1416_v15, %v5462_v50  ;;  %v3900_v24 = vmul.f32 -1.442695, %v1422_v55  ;;  %v7032_v55 = vld [vmem:[#allocation80_spill] sm:$0xff] }
 0x28c   :  { %v3899_v56 = vmul.f32 -1.442695, %v1421_v20 }
 0x28d   :  { %4215 = vpow2.f32 %v3898_v54 }
 0x28e   :  { %4217 = vpow2.f32 %v3899_v56 }
 0x28f   :  { %4219 = vtanh.f32 %v1423_v57 }
 0x290   :  { %4221 = vpow2.f32 %v3900_v24 }
 0x297   :  { %v4216_v33 = vpop.eup %4215 }
 0x298   :  { %v1433_v25 = vadd.f32 1.0, %v4216_v33  ;;  %v4218_v44 = vpop.eup %4217 }
 0x299   :  { %v1434_v17 = vadd.f32 1.0, %v4218_v44  ;;  %v4220_v53 = vpop.eup %4219 }
 0x29a   :  { %4223 = vrcp.f32 %v1433_v25  ;;  %v4222_v34 = vpop.eup %4221 }
 0x29b   :  { %4225 = vrcp.f32 %v1434_v17  ;;  %v1435_v32 = vadd.f32 1.0, %v4222_v34 }
 0x29d   :  { %4227 = vrcp.f32 %v1435_v32  ;;  %v7033_v32 = vld [vmem:[#allocation46_spill] sm:$0xff] }
 0x2a4   :  { %v4224_v19 = vpop.eup %4223 }
 0x2a5   :  { %v1444_v27 = vmul.f32 %v4224_v19, %v4220_v53  ;;  %v4226_v30 = vpop.eup %4225 }
 0x2a6   :  { %v1489_v31 = vpop.f32.mrb[28].mxu0  ;;  %v1530_v16 = vpop.f32.mrb[28].mxu1  ;;  %v1443_v26 = vmul.f32 0.0, %v4226_v30 }
 0x2a7   :  { %v1537_v15 = vadd.f32 %v1489_v31, %v7029_v18  ;;  %v1539_v20 = vadd.f32 %v1530_v16, %v7030_v28  ;;  %v1491_v54 = vpop.f32.mrb[29].mxu0  ;;  %v1532_v56 = vpop.f32.mrb[29].mxu1 }
 0x2a8   :  { %v1538_v47 = vadd.f32 %v1491_v54, %v7031_v58  ;;  %v1540_v57 = vadd.f32 %v1532_v56, %v7032_v55  ;;  %v1493_v24 = vpop.f32.mrb[30].mxu0  ;;  %v1534_v33 = vpop.f32.mrb[30].mxu1  ;;  %v5470_v25 = vadd.f32 %v1444_v27, %v1443_v26  ;;  %v7035_v56 = vld [vmem:[#allocation48_spill] sm:$0xff]  ;;  %v7037_v58 = vld [vmem:[#allocation50_spill] sm:$0xff] }
 0x2a9   :  { %v3901_v44 = vmul.f32 -1.442695, %v1537_v15  ;;  %v1494_v17 = vpop.f32.mrb[31].mxu0  ;;  %v1535_v53 = vpop.f32.mrb[31].mxu1  ;;  %v3903_v30 = vmul.f32 -1.442695, %v1539_v20 }
 0x2aa   :  { %v3902_v34 = vmul.f32 -1.442695, %v1538_v47  ;;  %4229 = vtanh.f32 %v5470_v25  ;;  %v4228_v19 = vpop.eup %4227  ;;  %v7034_v15 = vld [vmem:[#allocation47_spill] sm:$0xff]  ;;  %v7036_v20 = vld [vmem:[#allocation49_spill] sm:$0xff]  ;;  %v7039_v55 = vld [vmem:[#allocation52_spill] sm:$0xff] }
 0x2ab   :  { %4231 = vpow2.f32 %v3901_v44  ;;  %v7038_v47 = vld [vmem:[#allocation51_spill] sm:$0xff]  ;;  %v7041_v17 = vld [vmem:[#allocation54_spill] sm:$0xff] }
 0x2ac   :  { %4233 = vpow2.f32 %v3902_v34  ;;  %v7042_v53 = vld [vmem:[#allocation55_spill] sm:$0xff] }
 0x2ad   :  { %4235 = vtanh.f32 %v1540_v57  ;;  %v7040_v57 = vld [vmem:[#allocation53_spill] sm:$0xff] }
 0x2ae   :  { %4237 = vpow2.f32 %v3903_v30  ;;  %v7044_v30 = vld [vmem:[#allocation57_spill] sm:$0xff] }
 0x2b4   :  { %v4230_v31 = vpop.eup %4229 }
 0x2b5   :  { %v4232_v16 = vpop.eup %4231  ;;  %v1447_v18 = vmul.f32 %v4230_v31, %v4228_v19  ;;  %v7043_v19 = vld [vmem:[#allocation56_spill] sm:$0xff] }
 0x2b6   :  { %v1550_v28 = vadd.f32 1.0, %v4232_v16  ;;  %v4234_v54 = vpop.eup %4233 }
 0x2b7   :  { %v1566_v27 = vpack.c.bf16 %v1447_v18, %v1447_v18  ;;  %v1551_v26 = vadd.f32 1.0, %v4234_v54  ;;  %v4236_v24 = vpop.eup %4235  ;;  %v7046_v54 = vld [vmem:[#allocation59_spill] sm:$0xff] }
 0x2b8   :  { %4239 = vrcp.f32 %v1550_v28  ;;  %v4238_v33 = vpop.eup %4237  ;;  %v7045_v28 = vld [vmem:[#allocation58_spill] sm:$0xff] }
 0x2b9   :  { %1600 = vmatmul.mubr.bf16.vlgmr.msra.gmra.mrb[32].mxu0 %v1566_v27  ;;  %1641 = vmatmul.mubr.bf16.vlgmr.msra.gmra.mrb[32].mxu1 %v1566_v27  ;;  %4241 = vrcp.f32 %v1551_v26  ;;  %v1552_v16 = vadd.f32 1.0, %v4238_v33  ;;  %v7047_v26 = vld [vmem:[#allocation60_spill] sm:$0xff]  ;;  %v7057_v33 = vld [vmem:[#allocation70_spill] sm:$0xff] }
 0x2ba   :  { %1650 = vmatpush1.bf16.msra.mxu0 %v7033_v32  ;;  %1691 = vmatpush1.bf16.msra.mxu1 %v7034_v15  ;;  %v7048_v32 = vld [vmem:[#allocation61_spill] sm:$0xff]  ;;  %v7049_v15 = vld [vmem:[#allocation62_spill] sm:$0xff] }
 0x2bb   :  { %1651 = vmatprep.subr.bf16.mxu0 %v7035_v56  ;;  %1692 = vmatprep.subr.bf16.mxu1 %v7036_v20  ;;  %4243 = vrcp.f32 %v1552_v16  ;;  %v7050_v56 = vld [vmem:[#allocation63_spill] sm:$0xff]  ;;  %v7051_v20 = vld [vmem:[#allocation64_spill] sm:$0xff] }
 0x2bc   :  { %1681 = vmatprep.mubr.bf16.mxu0 %v6936_v35  ;;  %1722 = vmatprep.mubr.bf16.mxu1 %v6936_v35 }
 0x2be   :  { %1652 = vmatpush1.bf16.msra.mxu0 %v7037_v58  ;;  %1693 = vmatpush1.bf16.msra.mxu1 %v7038_v47  ;;  %v7053_v58 = vld [vmem:[#allocation66_spill] sm:$0xff]  ;;  %v7054_v47 = vld [vmem:[#allocation67_spill] sm:$0xff] }
 0x2bf   :  { %1653 = vmatprep.subr.bf16.mxu0 %v7039_v55  ;;  %1694 = vmatprep.subr.bf16.mxu1 %v7040_v57  ;;  %v7055_v55 = vld [vmem:[#allocation68_spill] sm:$0xff]  ;;  %v7056_v57 = vld [vmem:[#allocation69_spill] sm:$0xff] }
 0x2c2   :  { %v4240_v44 = vpop.eup %4239  ;;  %1654 = vmatpush1.bf16.msra.mxu0 %v7041_v17  ;;  %1695 = vmatpush1.bf16.msra.mxu1 %v7042_v53  ;;  %v7059_v53 = vld [vmem:[#allocation72_spill] sm:$0xff] }
 0x2c3   :  { %v1561_v34 = vmul.f32 %v4240_v44, %v4236_v24  ;;  %1655 = vmatprep.subr.bf16.mxu0 %v7043_v19  ;;  %1696 = vmatprep.subr.bf16.mxu1 %v7044_v30  ;;  %v4242_v31 = vpop.eup %4241  ;;  %v7058_v44 = vld [vmem:[#allocation71_spill] sm:$0xff]  ;;  %v7061_v30 = vld [vmem:[#allocation74_spill] sm:$0xff] }
 0x2c4   :  { %v1560_v18 = vmul.f32 %v4242_v31, %v5372_v14  ;;  %v7052_v14 = vld [vmem:[#allocation65_spill] sm:$0xff]  ;;  %v7062_v31 = vld [vmem:[#allocation75_spill] sm:$0xff] }
 0x2c5   :  { %v4244_v24 = vpop.eup %4243 }
 0x2c6   :  { %1656 = vmatpush1.bf16.msra.mxu0 %v7045_v28  ;;  %1697 = vmatpush1.bf16.msra.mxu1 %v7046_v54  ;;  %v5490_v27 = vadd.f32 %v1561_v34, %v1560_v18  ;;  %v7060_v34 = vld [vmem:[#allocation73_spill] sm:$0xff]  ;;  %v5514_v28 = vld [vmem:[#allocation8 + $0xc] ss:$16 sps:$4 sm:$0xff]  }
 0x2c7   :  { %1657 = vmatprep.subr.bf16.mxu0 %v7047_v26  ;;  %1698 = vmatprep.subr.bf16.mxu1 %v7048_v32  ;;  %v5511_v18 = vld [vmem:[#allocation8 + $0x4] ss:$16 sps:$4 sm:$0xff]   ;;  %v5519_v54 = vld [vmem:[#allocation8] ss:$16 sps:$4 sm:$0xff]   ;;  %v5522_v26 = vld [vmem:[#allocation8 + $0x8] ss:$16 sps:$4 sm:$0xff]  }
 0x2c8   :  { %4245 = vtanh.f32 %v5490_v27  ;;  %v5525_v32 = vld [vmem:[#allocation8 + $0x24] ss:$16 sps:$4 sm:$0xff]  }
 0x2ca   :  { %1658 = vmatpush1.bf16.msra.mxu0 %v7049_v15  ;;  %1699 = vmatpush1.bf16.msra.mxu1 %v7050_v56  ;;  %v5528_v15 = vld [vmem:[#allocation8 + $0x2c] ss:$16 sps:$4 sm:$0xff]   ;;  %v5533_v56 = vld [vmem:[#allocation8 + $0x20] ss:$16 sps:$4 sm:$0xff]  }
 0x2cb   :  { %1659 = vmatprep.subr.bf16.mxu0 %v7051_v20  ;;  %1700 = vmatprep.subr.bf16.mxu1 %v7052_v14  ;;  %7063 = vst [vmem:[#allocation22_spill] sm:$0xff] %v5528_v15  ;;  %7064 = vst [vmem:[#allocation23_spill] sm:$0xff] %v5533_v56  ;;  %v5536_v20 = vld [vmem:[#allocation8 + $0x28] ss:$16 sps:$4 sm:$0xff]   ;;  %v5539_v14 = vld [vmem:[#allocation8 + $0x44] ss:$16 sps:$4 sm:$0xff]  }
 0x2cc   :  { %7065 = vst [vmem:[#allocation24_spill] sm:$0xff] %v5536_v20  ;;  %7066 = vst [vmem:[#allocation25_spill] sm:$0xff] %v5539_v14 }
 0x2ce   :  { %1660 = vmatpush1.bf16.msra.mxu0 %v7053_v58  ;;  %1701 = vmatpush1.bf16.msra.mxu1 %v7054_v47  ;;  %v5542_v58 = vld [vmem:[#allocation8 + $0x4c] ss:$16 sps:$4 sm:$0xff]   ;;  %v5545_v47 = vld [vmem:[#allocation8 + $0x40] ss:$16 sps:$4 sm:$0xff]  }
 0x2cf   :  { %1661 = vmatprep.subr.bf16.mxu0 %v7055_v55  ;;  %1702 = vmatprep.subr.bf16.mxu1 %v7056_v57  ;;  %7067 = vst [vmem:[#allocation26_spill] sm:$0xff] %v5542_v58  ;;  %7068 = vst [vmem:[#allocation27_spill] sm:$0xff] %v5545_v47  ;;  %v5548_v55 = vld [vmem:[#allocation8 + $0x48] ss:$16 sps:$4 sm:$0xff]   ;;  %v5551_v57 = vld [vmem:[#allocation8 + $0x64] ss:$16 sps:$4 sm:$0xff]  }
 0x2d0   :  { %7069 = vst [vmem:[#allocation28_spill] sm:$0xff] %v5548_v55  ;;  %7070 = vst [vmem:[#allocation29_spill] sm:$0xff] %v5551_v57 }
 0x2d2   :  { %1662 = vmatpush1.bf16.msra.mxu0 %v7057_v33  ;;  %1703 = vmatpush1.bf16.msra.mxu1 %v7058_v44  ;;  %v4246_v17 = vpop.eup %4245  ;;  %v5557_v33 = vld [vmem:[#allocation8 + $0x60] ss:$16 sps:$4 sm:$0xff]   ;;  %v5560_v44 = vld [vmem:[#allocation8 + $0x68] ss:$16 sps:$4 sm:$0xff]  }
 0x2d3   :  { %1663 = vmatprep.subr.bf16.mxu0 %v7059_v53  ;;  %1704 = vmatprep.subr.bf16.mxu1 %v7060_v34  ;;  %v1564_v19 = vmul.f32 %v4246_v17, %v4244_v24  ;;  %v5554_v24 = vld [vmem:[#allocation8 + $0x6c] ss:$16 sps:$4 sm:$0xff]   ;;  %7072 = vst [vmem:[#allocation31_spill] sm:$0xff] %v5557_v33  ;;  %7073 = vst [vmem:[#allocation32_spill] sm:$0xff] %v5560_v44  ;;  %v5563_v17 = vld [vmem:[#allocation8 + $0x84] ss:$16 sps:$4 sm:$0xff]  }
 0x2d4   :  { %7071 = vst [vmem:[#allocation30_spill] sm:$0xff] %v5554_v24  ;;  %7074 = vst [vmem:[#allocation33_spill] sm:$0xff] %v5563_v17  ;;  %v5566_v53 = vld [vmem:[#allocation8 + $0x8c] ss:$16 sps:$4 sm:$0xff]   ;;  %v5569_v34 = vld [vmem:[#allocation8 + $0x80] ss:$16 sps:$4 sm:$0xff]  }
 0x2d5   :  { %v5509_v16 = vpack.c.bf16 %v1564_v19, %v1564_v19  ;;  %7075 = vst [vmem:[#allocation34_spill] sm:$0xff] %v5566_v53  ;;  %7076 = vst [vmem:[#allocation35_spill] sm:$0xff] %v5569_v34  ;;  %v5572_v19 = vld [vmem:[#allocation8 + $0x88] ss:$16 sps:$4 sm:$0xff]  }
 0x2d6   :  { %1664 = vmatpush1.bf16.msra.mxu0 %v7061_v30  ;;  %1705 = vmatpush1.bf16.msra.mxu1 %v7062_v31  ;;  %7077 = vst [vmem:[#allocation36_spill] sm:$0xff] %v5572_v19  ;;  %v5575_v30 = vld [vmem:[#allocation8 + $0xa4] ss:$16 sps:$4 sm:$0xff]   ;;  %v5578_v31 = vld [vmem:[#allocation8 + $0xac] ss:$16 sps:$4 sm:$0xff]  }
 0x2d7   :  { %1766 = vmatprep.subr.bf16.mxu0 %v5511_v18  ;;  %1807 = vmatprep.subr.bf16.mxu1 %v5514_v28  ;;  %7078 = vst [vmem:[#allocation37_spill] sm:$0xff] %v5575_v30  ;;  %7079 = vst [vmem:[#allocation38_spill] sm:$0xff] %v5578_v31 }
 0x2d9   :  { %1682 = vmatmul.mubr.bf16.vlgmr.msra.gmra.mrb[36].mxu0 %v5509_v16  ;;  %1723 = vmatmul.mubr.bf16.vlgmr.msra.gmra.mrb[36].mxu1 %v5509_v16 }
 0x2da   :  { %1767 = vmatpush1.bf16.msra.mxu0 %v5519_v54  ;;  %1808 = vmatpush1.bf16.msra.mxu1 %v5522_v26 }
 0x2db   :  { %1768 = vmatprep.subr.bf16.mxu0 %v5525_v32  ;;  %1809 = vmatprep.subr.bf16.mxu1 %v5528_v15 }
 0x2dc   :  { %1798 = vmatprep.mubr.bf16.mxu0 %v6936_v35  ;;  %1839 = vmatprep.mubr.bf16.mxu1 %v6936_v35 }
 0x2de   :  { %1769 = vmatpush1.bf16.msra.mxu0 %v5533_v56  ;;  %1810 = vmatpush1.bf16.msra.mxu1 %v5536_v20 }
 0x2df   :  { %1770 = vmatprep.subr.bf16.mxu0 %v5539_v14  ;;  %1811 = vmatprep.subr.bf16.mxu1 %v5542_v58 }
 0x2e2   :  { %1771 = vmatpush1.bf16.msra.mxu0 %v5545_v47  ;;  %1812 = vmatpush1.bf16.msra.mxu1 %v5548_v55 }
 0x2e3   :  { %1772 = vmatprep.subr.bf16.mxu0 %v5551_v57  ;;  %1813 = vmatprep.subr.bf16.mxu1 %v5554_v24 }
 0x2e6   :  { %1773 = vmatpush1.bf16.msra.mxu0 %v5557_v33  ;;  %1814 = vmatpush1.bf16.msra.mxu1 %v5560_v44 }
 0x2e7   :  { %1774 = vmatprep.subr.bf16.mxu0 %v5563_v17  ;;  %1815 = vmatprep.subr.bf16.mxu1 %v5566_v53  ;;  %v5581_v17 = vld [vmem:[#allocation8 + $0xa0] ss:$16 sps:$4 sm:$0xff]   ;;  %v5584_v53 = vld [vmem:[#allocation8 + $0xa8] ss:$16 sps:$4 sm:$0xff]  }
 0x2e8   :  { %7080 = vst [vmem:[#allocation39_spill] sm:$0xff] %v5581_v17  ;;  %7081 = vst [vmem:[#allocation40_spill] sm:$0xff] %v5584_v53 }
 0x2ea   :  { %1775 = vmatpush1.bf16.msra.mxu0 %v5569_v34  ;;  %1816 = vmatpush1.bf16.msra.mxu1 %v5572_v19  ;;  %v5587_v34 = vld [vmem:[#allocation8 + $0xc4] ss:$16 sps:$4 sm:$0xff]   ;;  %v5590_v19 = vld [vmem:[#allocation8 + $0xcc] ss:$16 sps:$4 sm:$0xff]  }
 0x2eb   :  { %1776 = vmatprep.subr.bf16.mxu0 %v5575_v30  ;;  %1817 = vmatprep.subr.bf16.mxu1 %v5578_v31  ;;  %7082 = vst [vmem:[#allocation41_spill] sm:$0xff] %v5587_v34  ;;  %7083 = vst [vmem:[#allocation42_spill] sm:$0xff] %v5590_v19  ;;  %v5593_v30 = vld [vmem:[#allocation8 + $0xc0] ss:$16 sps:$4 sm:$0xff]   ;;  %v5596_v31 = vld [vmem:[#allocation8 + $0xc8] ss:$16 sps:$4 sm:$0xff]  }
 0x2ec   :  { %7084 = vst [vmem:[#allocation43_spill] sm:$0xff] %v5593_v30  ;;  %7085 = vst [vmem:[#allocation44_spill] sm:$0xff] %v5596_v31 }
 0x2ee   :  { %1777 = vmatpush1.bf16.msra.mxu0 %v5581_v17  ;;  %1818 = vmatpush1.bf16.msra.mxu1 %v5584_v53  ;;  %v5599_v17 = vld [vmem:[#allocation8 + $0xe4] ss:$16 sps:$4 sm:$0xff]   ;;  %v5602_v53 = vld [vmem:[#allocation8 + $0xec] ss:$16 sps:$4 sm:$0xff]  }
 0x2ef   :  { %1778 = vmatprep.subr.bf16.mxu0 %v5587_v34  ;;  %1819 = vmatprep.subr.bf16.mxu1 %v5590_v19  ;;  %7086 = vst [vmem:[#allocation45_spill] sm:$0xff] %v5599_v17  ;;  %7087 = vst [vmem:[#allocation76_spill] sm:$0xff] %v5602_v53  ;;  %v5605_v34 = vld [vmem:[#allocation8 + $0xe0] ss:$16 sps:$4 sm:$0xff]   ;;  %v5608_v19 = vld [vmem:[#allocation8 + $0xe8] ss:$16 sps:$4 sm:$0xff]  }
 0x2f0   :  { %7088 = vst [vmem:[#allocation77_spill] sm:$0xff] %v5605_v34  ;;  %7089 = vst [vmem:[#allocation78_spill] sm:$0xff] %v5608_v19 }
 0x2f2   :  { %1779 = vmatpush1.bf16.msra.mxu0 %v5593_v30  ;;  %1820 = vmatpush1.bf16.msra.mxu1 %v5596_v31 }
 0x2f3   :  { %1780 = vmatprep.subr.bf16.mxu0 %v5599_v17  ;;  %1821 = vmatprep.subr.bf16.mxu1 %v5602_v53 }
 0x2f6   :  { %1781 = vmatpush1.bf16.msra.mxu0 %v5605_v34  ;;  %1822 = vmatpush1.bf16.msra.mxu1 %v5608_v19 }
 0x2f7   :  { %1878 = vmatprep.subr.bf16.mxu0 %v5075_v6  ;;  %1919 = vmatprep.subr.bf16.mxu1 %v5077_v7 }
 0x2f9   :  { %1799 = vmatmul.mubr.bf16.vlgmr.msra.gmra.mrb[40].mxu0 %v5509_v16  ;;  %1840 = vmatmul.mubr.bf16.vlgmr.msra.gmra.mrb[40].mxu1 %v5509_v16 }
 0x2fa   :  { %1879 = vmatpush1.bf16.msra.mxu0 %v5079_v8  ;;  %1920 = vmatpush1.bf16.msra.mxu1 %v5082_v9 }
 0x2fb   :  { %1880 = vmatprep.subr.bf16.mxu0 %v5087_v10  ;;  %1921 = vmatprep.subr.bf16.mxu1 %v5089_v11 }
 0x2fc   :  { %1910 = vmatprep.mubr.bf16.mxu0 %v6936_v35  ;;  %1951 = vmatprep.mubr.bf16.mxu1 %v6936_v35 }
 0x2fe   :  { %1881 = vmatpush1.bf16.msra.mxu0 %v5091_v12  ;;  %1922 = vmatpush1.bf16.msra.mxu1 %v5094_v13 }
 0x2ff   :  { %1882 = vmatprep.subr.bf16.mxu0 %v6996_v36  ;;  %1923 = vmatprep.subr.bf16.mxu1 %v6997_v37 }
 0x302   :  { %1883 = vmatpush1.bf16.msra.mxu0 %v6998_v38  ;;  %1924 = vmatpush1.bf16.msra.mxu1 %v6999_v39 }
 0x303   :  { %1884 = vmatprep.subr.bf16.mxu0 %v7000_v40  ;;  %1925 = vmatprep.subr.bf16.mxu1 %v7001_v41 }
 0x306   :  { %1885 = vmatpush1.bf16.msra.mxu0 %v7002_v42  ;;  %1926 = vmatpush1.bf16.msra.mxu1 %v7003_v43 }
 0x307   :  { %1886 = vmatprep.subr.bf16.mxu0 %v7004_v45  ;;  %1927 = vmatprep.subr.bf16.mxu1 %v7005_v46 }
 0x30a   :  { %1887 = vmatpush1.bf16.msra.mxu0 %v7006_v48  ;;  %1928 = vmatpush1.bf16.msra.mxu1 %v7007_v49 }
 0x30b   :  { %1888 = vmatprep.subr.bf16.mxu0 %v7008_v51  ;;  %1929 = vmatprep.subr.bf16.mxu1 %v7009_v52 }
 0x30e   :  { %1889 = vmatpush1.bf16.msra.mxu0 %v7010_v59  ;;  %1930 = vmatpush1.bf16.msra.mxu1 %v7011_v60 }
 0x30f   :  { %1890 = vmatprep.subr.bf16.mxu0 %v7012_v63  ;;  %1931 = vmatprep.subr.bf16.mxu1 %v7013_v1 }
 0x312   :  { %1891 = vmatpush1.bf16.msra.mxu0 %v7014_v2  ;;  %1932 = vmatpush1.bf16.msra.mxu1 %v7015_v3 }
 0x313   :  { %1892 = vmatprep.subr.bf16.mxu0 %v7016_v4  ;;  %1933 = vmatprep.subr.bf16.mxu1 %v7017_v5 }
 0x316   :  { %1893 = vmatpush1.bf16.msra.mxu0 %v7018_v21  ;;  %1934 = vmatpush1.bf16.msra.mxu1 %v7019_v29 }
 0x317   :  { %1960 = vmatprep.subr.bf16.mxu0 %v7020_v23  ;;  %2001 = vmatprep.subr.bf16.mxu1 %v7021_v22 }
 0x38c   :  { %v1601_v6 = vpop.f32.mrb[32].mxu0  ;;  %v1642_v7 = vpop.f32.mrb[32].mxu1 }
 0x38d   :  { %v1603_v8 = vpop.f32.mrb[33].mxu0  ;;  %v1644_v9 = vpop.f32.mrb[33].mxu1 }
 0x38e   :  { %v1605_v10 = vpop.f32.mrb[34].mxu0  ;;  %v1646_v11 = vpop.f32.mrb[34].mxu1 }
 0x38f   :  { %v1606_v12 = vpop.f32.mrb[35].mxu0  ;;  %v1647_v13 = vpop.f32.mrb[35].mxu1  ;;  %v7090_v11 = vld [vmem:[#allocation81_spill] sm:$0xff] }
 0x390   :  { %v7091_v13 = vld [vmem:[#allocation82_spill] sm:$0xff] }
 0x3ac   :  { %v1683_v36 = vpop.f32.mrb[36].mxu0  ;;  %v1724_v37 = vpop.f32.mrb[36].mxu1 }
 0x3ad   :  { %v1684_v38 = vadd.f32 %v1683_v36, %v1601_v6  ;;  %v1725_v39 = vadd.f32 %v1724_v37, %v1642_v7  ;;  %v1685_v40 = vpop.f32.mrb[37].mxu0  ;;  %v1726_v41 = vpop.f32.mrb[37].mxu1 }
 0x3ae   :  { %v1686_v42 = vadd.f32 %v1685_v40, %v1603_v8  ;;  %v1727_v43 = vadd.f32 %v1726_v41, %v1644_v9  ;;  %v1687_v45 = vpop.f32.mrb[38].mxu0  ;;  %v1728_v46 = vpop.f32.mrb[38].mxu1  ;;  %v7093_v41 = vld [vmem:[#allocation84_spill] sm:$0xff] }
 0x3af   :  { %v1731_v48 = vadd.f32 %v1684_v38, %v5448_v62  ;;  %v1688_v49 = vpop.f32.mrb[39].mxu0  ;;  %v1729_v51 = vpop.f32.mrb[39].mxu1  ;;  %v1733_v63 = vadd.f32 %v1725_v39, %v5458_v61  ;;  %v7092_v39 = vld [vmem:[#allocation83_spill] sm:$0xff] }
 0x3b0   :  { %v1732_v52 = vadd.f32 %v1686_v42, %v5452_v0  ;;  %v1734_v1 = vadd.f32 %v1727_v43, %v5462_v50 }
 0x3b1   :  { %v3904_v59 = vmul.f32 -1.442695, %v1731_v48  ;;  %v3906_v2 = vmul.f32 -1.442695, %v1733_v63 }
 0x3b2   :  { %v3905_v60 = vmul.f32 -1.442695, %v1732_v52 }
 0x3b3   :  { %4247 = vpow2.f32 %v3904_v59 }
 0x3b4   :  { %4249 = vpow2.f32 %v3905_v60 }
 0x3b5   :  { %4251 = vtanh.f32 %v1734_v1 }
 0x3b6   :  { %4253 = vpow2.f32 %v3906_v2 }
 0x3bd   :  { %v4248_v3 = vpop.eup %4247 }
 0x3be   :  { %v1744_v4 = vadd.f32 1.0, %v4248_v3  ;;  %v4250_v5 = vpop.eup %4249 }
 0x3bf   :  { %v1745_v21 = vadd.f32 1.0, %v4250_v5  ;;  %v4252_v29 = vpop.eup %4251 }
 0x3c0   :  { %4255 = vrcp.f32 %v1744_v4  ;;  %v4254_v23 = vpop.eup %4253 }
 0x3c1   :  { %4257 = vrcp.f32 %v1745_v21  ;;  %v1746_v7 = vadd.f32 1.0, %v4254_v23  ;;  %v5661_v21 = vld [vmem:[#allocation9] ss:$16 sps:$4 sm:$0xff]   ;;  %v5667_v23 = vld [vmem:[#allocation9 + $0x24] ss:$16 sps:$4 sm:$0xff]  }
 0x3c3   :  { %4259 = vrcp.f32 %v1746_v7  ;;  %v5681_v7 = vld [vmem:[#allocation9 + $0x44] ss:$16 sps:$4 sm:$0xff]  }
 0x3ca   :  { %v4256_v22 = vpop.eup %4255 }
 0x3cb   :  { %v1755_v16 = vmul.f32 %v4256_v22, %v4252_v29  ;;  %v4258_v6 = vpop.eup %4257  ;;  %v5664_v29 = vld [vmem:[#allocation9 + $0x8] ss:$16 sps:$4 sm:$0xff]   ;;  %v5670_v22 = vld [vmem:[#allocation9 + $0x2c] ss:$16 sps:$4 sm:$0xff]  }
 0x3cc   :  { %v1800_v8 = vpop.f32.mrb[40].mxu0  ;;  %v1841_v9 = vpop.f32.mrb[40].mxu1  ;;  %v1754_v10 = vmul.f32 %v4258_v6, %v5470_v25  ;;  %v5678_v6 = vld [vmem:[#allocation9 + $0x28] ss:$16 sps:$4 sm:$0xff]  }
 0x3cd   :  { %v1848_v12 = vadd.f32 %v1800_v8, %v7090_v11  ;;  %v1850_v36 = vadd.f32 %v1841_v9, %v7091_v13  ;;  %v1802_v37 = vpop.f32.mrb[41].mxu0  ;;  %v1843_v38 = vpop.f32.mrb[41].mxu1  ;;  %v5684_v8 = vld [vmem:[#allocation9 + $0x4c] ss:$16 sps:$4 sm:$0xff]   ;;  %v5690_v13 = vld [vmem:[#allocation9 + $0x48] ss:$16 sps:$4 sm:$0xff]  }
 0x3ce   :  { %v1849_v40 = vadd.f32 %v1802_v37, %v7092_v39  ;;  %v1851_v42 = vadd.f32 %v1843_v38, %v7093_v41  ;;  %v1804_v43 = vpop.f32.mrb[42].mxu0  ;;  %v1845_v45 = vpop.f32.mrb[42].mxu1  ;;  %v5658_v46 = vadd.f32 %v1755_v16, %v1754_v10  ;;  %v5675_v16 = vld [vmem:[#allocation9 + $0x20] ss:$16 sps:$4 sm:$0xff]   ;;  %v5693_v37 = vld [vmem:[#allocation9 + $0x64] ss:$16 sps:$4 sm:$0xff]  }
 0x3cf   :  { %v3907_v48 = vmul.f32 -1.442695, %v1848_v12  ;;  %v1805_v49 = vpop.f32.mrb[43].mxu0  ;;  %v1846_v51 = vpop.f32.mrb[43].mxu1  ;;  %v3909_v59 = vmul.f32 -1.442695, %v1850_v36 }
 0x3d0   :  { %v3908_v52 = vmul.f32 -1.442695, %v1849_v40  ;;  %4261 = vtanh.f32 %v5658_v46  ;;  %v4260_v25 = vpop.eup %4259  ;;  %v5687_v12 = vld [vmem:[#allocation9 + $0x40] ss:$16 sps:$4 sm:$0xff]   ;;  %v5696_v38 = vld [vmem:[#allocation9 + $0x6c] ss:$16 sps:$4 sm:$0xff]  }
 0x3d1   :  { %4263 = vpow2.f32 %v3907_v48  ;;  %v5703_v43 = vld [vmem:[#allocation9 + $0x68] ss:$16 sps:$4 sm:$0xff]   ;;  %v5708_v48 = vld [vmem:[#allocation9 + $0x84] ss:$16 sps:$4 sm:$0xff]   ;;  %v5711_v49 = vld [vmem:[#allocation9 + $0x8c] ss:$16 sps:$4 sm:$0xff]  }
 0x3d2   :  { %4265 = vpow2.f32 %v3908_v52  ;;  %v5718_v51 = vld [vmem:[#allocation9 + $0x88] ss:$16 sps:$4 sm:$0xff]   ;;  %v5721_v52 = vld [vmem:[#allocation9 + $0xa4] ss:$16 sps:$4 sm:$0xff]  }
 0x3d3   :  { %4267 = vtanh.f32 %v1851_v42  ;;  %v5700_v42 = vld [vmem:[#allocation9 + $0x60] ss:$16 sps:$4 sm:$0xff]  }
 0x3d4   :  { %4269 = vpow2.f32 %v3909_v59  ;;  %v5727_v59 = vld [vmem:[#allocation9 + $0xa0] ss:$16 sps:$4 sm:$0xff]  }
 0x3da   :  { %v4262_v60 = vpop.eup %4261 }
 0x3db   :  { %v4264_v63 = vpop.eup %4263  ;;  %v1758_v1 = vmul.f32 %v4262_v60, %v4260_v25  ;;  %v5724_v25 = vld [vmem:[#allocation9 + $0xac] ss:$16 sps:$4 sm:$0xff]   ;;  %v5730_v60 = vld [vmem:[#allocation9 + $0xa8] ss:$16 sps:$4 sm:$0xff]  }
 0x3dc   :  { %v1861_v2 = vadd.f32 1.0, %v4264_v63  ;;  %v4266_v3 = vpop.eup %4265  ;;  %v5733_v63 = vld [vmem:[#allocation9 + $0xc4] ss:$16 sps:$4 sm:$0xff]  }
 0x3dd   :  { %v1877_v4 = vpack.c.bf16 %v1758_v1, %v1758_v1  ;;  %v1862_v5 = vadd.f32 1.0, %v4266_v3  ;;  %v4268_v9 = vpop.eup %4267  ;;  %v5736_v1 = vld [vmem:[#allocation9 + $0xcc] ss:$16 sps:$4 sm:$0xff]   ;;  %v5739_v3 = vld [vmem:[#allocation9 + $0xc0] ss:$16 sps:$4 sm:$0xff]  }
 0x3de   :  { %4271 = vrcp.f32 %v1861_v2  ;;  %v4270_v10 = vpop.eup %4269 }
 0x3df   :  { %1911 = vmatmul.mubr.bf16.vlgmr.msra.gmra.mrb[44].mxu0 %v1877_v4  ;;  %1952 = vmatmul.mubr.bf16.vlgmr.msra.gmra.mrb[44].mxu1 %v1877_v4  ;;  %4273 = vrcp.f32 %v1862_v5  ;;  %v1863_v40 = vadd.f32 1.0, %v4270_v10  ;;  %v5742_v4 = vld [vmem:[#allocation9 + $0xc8] ss:$16 sps:$4 sm:$0xff]   ;;  %v5748_v10 = vld [vmem:[#allocation9 + $0xec] ss:$16 sps:$4 sm:$0xff]  }
 0x3e0   :  { %1961 = vmatpush1.bf16.msra.mxu0 %v5661_v21  ;;  %2002 = vmatpush1.bf16.msra.mxu1 %v5664_v29 }
 0x3e1   :  { %1962 = vmatprep.subr.bf16.mxu0 %v5667_v23  ;;  %2003 = vmatprep.subr.bf16.mxu1 %v5670_v22  ;;  %4275 = vrcp.f32 %v1863_v40 }
 0x3e2   :  { %1992 = vmatprep.mubr.bf16.mxu0 %v6936_v35  ;;  %2033 = vmatprep.mubr.bf16.mxu1 %v6936_v35 }
 0x3e4   :  { %1963 = vmatpush1.bf16.msra.mxu0 %v5675_v16  ;;  %2004 = vmatpush1.bf16.msra.mxu1 %v5678_v6 }
 0x3e5   :  { %1964 = vmatprep.subr.bf16.mxu0 %v5681_v7  ;;  %2005 = vmatprep.subr.bf16.mxu1 %v5684_v8 }
 0x3e8   :  { %v4272_v11 = vpop.eup %4271  ;;  %1965 = vmatpush1.bf16.msra.mxu0 %v5687_v12  ;;  %2006 = vmatpush1.bf16.msra.mxu1 %v5690_v13 }
 0x3e9   :  { %v1872_v36 = vmul.f32 %v4272_v11, %v4268_v9  ;;  %1966 = vmatprep.subr.bf16.mxu0 %v5693_v37  ;;  %2007 = vmatprep.subr.bf16.mxu1 %v5696_v38  ;;  %v4274_v39 = vpop.eup %4273  ;;  %v5745_v9 = vld [vmem:[#allocation9 + $0xe4] ss:$16 sps:$4 sm:$0xff]  }
 0x3ea   :  { %v1871_v41 = vmul.f32 %v4274_v39, %v5490_v27  ;;  %v5715_v27 = vld [vmem:[#allocation9 + $0x80] ss:$16 sps:$4 sm:$0xff]   ;;  %v5754_v39 = vld [vmem:[#allocation9 + $0xe8] ss:$16 sps:$4 sm:$0xff]  }
 0x3eb   :  { %v4276_v2 = vpop.eup %4275 }
 0x3ec   :  { %1967 = vmatpush1.bf16.msra.mxu0 %v5700_v42  ;;  %2008 = vmatpush1.bf16.msra.mxu1 %v5703_v43  ;;  %v5706_v45 = vadd.f32 %v1872_v36, %v1871_v41  ;;  %v5751_v36 = vld [vmem:[#allocation9 + $0xe0] ss:$16 sps:$4 sm:$0xff]  }
 0x3ed   :  { %1968 = vmatprep.subr.bf16.mxu0 %v5708_v48  ;;  %2009 = vmatprep.subr.bf16.mxu1 %v5711_v49  ;;  %v7094_v41 = vld [vmem:[#allocation33_spill] sm:$0xff] }
 0x3ee   :  { %4277 = vtanh.f32 %v5706_v45 }
 0x3f0   :  { %1969 = vmatpush1.bf16.msra.mxu0 %v5715_v27  ;;  %2010 = vmatpush1.bf16.msra.mxu1 %v5718_v51 }
 0x3f1   :  { %1970 = vmatprep.subr.bf16.mxu0 %v5721_v52  ;;  %2011 = vmatprep.subr.bf16.mxu1 %v5724_v25 }
 0x3f4   :  { %1971 = vmatpush1.bf16.msra.mxu0 %v5727_v59  ;;  %2012 = vmatpush1.bf16.msra.mxu1 %v5730_v60 }
 0x3f5   :  { %1972 = vmatprep.subr.bf16.mxu0 %v5733_v63  ;;  %2013 = vmatprep.subr.bf16.mxu1 %v5736_v1 }
 0x3f8   :  { %1973 = vmatpush1.bf16.msra.mxu0 %v5739_v3  ;;  %2014 = vmatpush1.bf16.msra.mxu1 %v5742_v4  ;;  %v4278_v5 = vpop.eup %4277 }
 0x3f9   :  { %1974 = vmatprep.subr.bf16.mxu0 %v5745_v9  ;;  %2015 = vmatprep.subr.bf16.mxu1 %v5748_v10  ;;  %v1875_v11 = vmul.f32 %v4278_v5, %v4276_v2  ;;  %v7095_v2 = vld [vmem:[#allocation34_spill] sm:$0xff]  ;;  %v7096_v5 = vld [vmem:[#allocation35_spill] sm:$0xff] }
 0x3fb   :  { %v1876_v40 = vpack.c.bf16 %v1875_v11, %v1875_v11  ;;  %v7097_v11 = vld [vmem:[#allocation36_spill] sm:$0xff] }
 0x3fc   :  { %1975 = vmatpush1.bf16.msra.mxu0 %v5751_v36  ;;  %2016 = vmatpush1.bf16.msra.mxu1 %v5754_v39 }
 0x3fd   :  { %2077 = vmatprep.subr.bf16.mxu0 %v5511_v18  ;;  %2118 = vmatprep.subr.bf16.mxu1 %v5514_v28 }
 0x3ff   :  { %1993 = vmatmul.mubr.bf16.vlgmr.msra.gmra.mrb[48].mxu0 %v1876_v40  ;;  %2034 = vmatmul.mubr.bf16.vlgmr.msra.gmra.mrb[48].mxu1 %v1876_v40 }
 0x400   :  { %2078 = vmatpush1.bf16.msra.mxu0 %v5519_v54  ;;  %2119 = vmatpush1.bf16.msra.mxu1 %v5522_v26 }
 0x401   :  { %2079 = vmatprep.subr.bf16.mxu0 %v5525_v32  ;;  %2120 = vmatprep.subr.bf16.mxu1 %v5528_v15 }
 0x402   :  { %2109 = vmatprep.mubr.bf16.mxu0 %v6936_v35  ;;  %2150 = vmatprep.mubr.bf16.mxu1 %v6936_v35 }
 0x404   :  { %2080 = vmatpush1.bf16.msra.mxu0 %v5533_v56  ;;  %2121 = vmatpush1.bf16.msra.mxu1 %v5536_v20 }
 0x405   :  { %2081 = vmatprep.subr.bf16.mxu0 %v5539_v14  ;;  %2122 = vmatprep.subr.bf16.mxu1 %v5542_v58  ;;  %v7098_v58 = vld [vmem:[#allocation37_spill] sm:$0xff] }
 0x408   :  { %2082 = vmatpush1.bf16.msra.mxu0 %v5545_v47  ;;  %2123 = vmatpush1.bf16.msra.mxu1 %v5548_v55  ;;  %v7099_v47 = vld [vmem:[#allocation38_spill] sm:$0xff]  ;;  %v7100_v55 = vld [vmem:[#allocation39_spill] sm:$0xff] }
 0x409   :  { %2083 = vmatprep.subr.bf16.mxu0 %v5551_v57  ;;  %2124 = vmatprep.subr.bf16.mxu1 %v5554_v24  ;;  %v7101_v57 = vld [vmem:[#allocation40_spill] sm:$0xff]  ;;  %v7102_v24 = vld [vmem:[#allocation41_spill] sm:$0xff] }
 0x40c   :  { %2084 = vmatpush1.bf16.msra.mxu0 %v5557_v33  ;;  %2125 = vmatpush1.bf16.msra.mxu1 %v5560_v44  ;;  %v7103_v33 = vld [vmem:[#allocation42_spill] sm:$0xff] }
 0x40d   :  { %2085 = vmatprep.subr.bf16.mxu0 %v7094_v41  ;;  %2126 = vmatprep.subr.bf16.mxu1 %v7095_v2 }
 0x410   :  { %2086 = vmatpush1.bf16.msra.mxu0 %v7096_v5  ;;  %2127 = vmatpush1.bf16.msra.mxu1 %v7097_v11 }
 0x411   :  { %2087 = vmatprep.subr.bf16.mxu0 %v7098_v58  ;;  %2128 = vmatprep.subr.bf16.mxu1 %v7099_v47  ;;  %v5791_v47 = vld [vmem:[#allocation11 + $0x4] ss:$16 sps:$4 sm:$0xff]  }
 0x412   :  { %7104 = vst [vmem:[#allocation79_spill] sm:$0xff] %v5791_v47 }
 0x414   :  { %2088 = vmatpush1.bf16.msra.mxu0 %v7100_v55  ;;  %2129 = vmatpush1.bf16.msra.mxu1 %v7101_v57  ;;  %v5794_v57 = vld [vmem:[#allocation11 + $0xc] ss:$16 sps:$4 sm:$0xff]  }
 0x415   :  { %2089 = vmatprep.subr.bf16.mxu0 %v7102_v24  ;;  %2130 = vmatprep.subr.bf16.mxu1 %v7103_v33  ;;  %7105 = vst [vmem:[#allocation80_spill] sm:$0xff] %v5794_v57 }
 0x418   :  { %2090 = vmatpush1.bf16.msra.mxu0 %v5593_v30  ;;  %2131 = vmatpush1.bf16.msra.mxu1 %v5596_v31  ;;  %v5797_v30 = vld [vmem:[#allocation11] ss:$16 sps:$4 sm:$0xff]  }
 0x419   :  { %2091 = vmatprep.subr.bf16.mxu0 %v5599_v17  ;;  %2132 = vmatprep.subr.bf16.mxu1 %v5602_v53  ;;  %7106 = vst [vmem:[#allocation46_spill] sm:$0xff] %v5797_v30  ;;  %v5800_v17 = vld [vmem:[#allocation11 + $0x8] ss:$16 sps:$4 sm:$0xff]  }
 0x41a   :  { %7107 = vst [vmem:[#allocation47_spill] sm:$0xff] %v5800_v17 }
 0x41c   :  { %2092 = vmatpush1.bf16.msra.mxu0 %v5605_v34  ;;  %2133 = vmatpush1.bf16.msra.mxu1 %v5608_v19  ;;  %v5803_v34 = vld [vmem:[#allocation11 + $0x24] ss:$16 sps:$4 sm:$0xff]   ;;  %v5806_v19 = vld [vmem:[#allocation11 + $0x2c] ss:$16 sps:$4 sm:$0xff]  }
 0x41d   :  { %2189 = vmatprep.subr.bf16.mxu0 %v5791_v47  ;;  %2230 = vmatprep.subr.bf16.mxu1 %v5794_v57  ;;  %7108 = vst [vmem:[#allocation48_spill] sm:$0xff] %v5803_v34  ;;  %7109 = vst [vmem:[#allocation49_spill] sm:$0xff] %v5806_v19  ;;  %v5826_v57 = vld [vmem:[#allocation11 + $0x48] ss:$16 sps:$4 sm:$0xff]  }
 0x41e   :  { %7115 = vst [vmem:[#allocation55_spill] sm:$0xff] %v5826_v57 }
 0x41f   :  { %2110 = vmatmul.mubr.bf16.vlgmr.msra.gmra.mrb[52].mxu0 %v1876_v40  ;;  %2151 = vmatmul.mubr.bf16.vlgmr.msra.gmra.mrb[52].mxu1 %v1876_v40  ;;  %v5811_v40 = vld [vmem:[#allocation11 + $0x20] ss:$16 sps:$4 sm:$0xff]  }
 0x420   :  { %2190 = vmatpush1.bf16.msra.mxu0 %v5797_v30  ;;  %2231 = vmatpush1.bf16.msra.mxu1 %v5800_v17  ;;  %7110 = vst [vmem:[#allocation50_spill] sm:$0xff] %v5811_v40  ;;  %v5814_v30 = vld [vmem:[#allocation11 + $0x28] ss:$16 sps:$4 sm:$0xff]   ;;  %v5817_v17 = vld [vmem:[#allocation11 + $0x44] ss:$16 sps:$4 sm:$0xff]  }
 0x421   :  { %2191 = vmatprep.subr.bf16.mxu0 %v5803_v34  ;;  %2232 = vmatprep.subr.bf16.mxu1 %v5806_v19  ;;  %7111 = vst [vmem:[#allocation51_spill] sm:$0xff] %v5814_v30  ;;  %7112 = vst [vmem:[#allocation52_spill] sm:$0xff] %v5817_v17  ;;  %v5820_v34 = vld [vmem:[#allocation11 + $0x4c] ss:$16 sps:$4 sm:$0xff]   ;;  %v5823_v19 = vld [vmem:[#allocation11 + $0x40] ss:$16 sps:$4 sm:$0xff]  }
 0x422   :  { %2221 = vmatprep.mubr.bf16.mxu0 %v6936_v35  ;;  %2262 = vmatprep.mubr.bf16.mxu1 %v6936_v35  ;;  %7113 = vst [vmem:[#allocation53_spill] sm:$0xff] %v5820_v34  ;;  %7114 = vst [vmem:[#allocation54_spill] sm:$0xff] %v5823_v19 }
 0x424   :  { %2192 = vmatpush1.bf16.msra.mxu0 %v5811_v40  ;;  %2233 = vmatpush1.bf16.msra.mxu1 %v5814_v30  ;;  %v5829_v40 = vld [vmem:[#allocation11 + $0x64] ss:$16 sps:$4 sm:$0xff]   ;;  %v5832_v30 = vld [vmem:[#allocation11 + $0x6c] ss:$16 sps:$4 sm:$0xff]  }
 0x425   :  { %2193 = vmatprep.subr.bf16.mxu0 %v5817_v17  ;;  %2234 = vmatprep.subr.bf16.mxu1 %v5820_v34  ;;  %7116 = vst [vmem:[#allocation56_spill] sm:$0xff] %v5829_v40  ;;  %7117 = vst [vmem:[#allocation57_spill] sm:$0xff] %v5832_v30  ;;  %v5835_v17 = vld [vmem:[#allocation11 + $0x60] ss:$16 sps:$4 sm:$0xff]   ;;  %v5838_v34 = vld [vmem:[#allocation11 + $0x68] ss:$16 sps:$4 sm:$0xff]  }
 0x426   :  { %7118 = vst [vmem:[#allocation58_spill] sm:$0xff] %v5835_v17  ;;  %7119 = vst [vmem:[#allocation59_spill] sm:$0xff] %v5838_v34 }
 0x428   :  { %2194 = vmatpush1.bf16.msra.mxu0 %v5823_v19  ;;  %2235 = vmatpush1.bf16.msra.mxu1 %v5826_v57  ;;  %v5841_v19 = vld [vmem:[#allocation11 + $0x84] ss:$16 sps:$4 sm:$0xff]   ;;  %v5844_v57 = vld [vmem:[#allocation11 + $0x8c] ss:$16 sps:$4 sm:$0xff]  }
 0x429   :  { %2195 = vmatprep.subr.bf16.mxu0 %v5829_v40  ;;  %2236 = vmatprep.subr.bf16.mxu1 %v5832_v30  ;;  %7120 = vst [vmem:[#allocation60_spill] sm:$0xff] %v5841_v19  ;;  %7121 = vst [vmem:[#allocation61_spill] sm:$0xff] %v5844_v57  ;;  %v5847_v40 = vld [vmem:[#allocation11 + $0x80] ss:$16 sps:$4 sm:$0xff]   ;;  %v5850_v30 = vld [vmem:[#allocation11 + $0x88] ss:$16 sps:$4 sm:$0xff]  }
 0x42a   :  { %7122 = vst [vmem:[#allocation62_spill] sm:$0xff] %v5847_v40  ;;  %7123 = vst [vmem:[#allocation63_spill] sm:$0xff] %v5850_v30 }
 0x42c   :  { %2196 = vmatpush1.bf16.msra.mxu0 %v5835_v17  ;;  %2237 = vmatpush1.bf16.msra.mxu1 %v5838_v34  ;;  %v5853_v17 = vld [vmem:[#allocation11 + $0xa4] ss:$16 sps:$4 sm:$0xff]   ;;  %v5856_v34 = vld [vmem:[#allocation11 + $0xac] ss:$16 sps:$4 sm:$0xff]  }
 0x42d   :  { %2197 = vmatprep.subr.bf16.mxu0 %v5841_v19  ;;  %2238 = vmatprep.subr.bf16.mxu1 %v5844_v57  ;;  %7124 = vst [vmem:[#allocation64_spill] sm:$0xff] %v5853_v17  ;;  %7125 = vst [vmem:[#allocation65_spill] sm:$0xff] %v5856_v34  ;;  %v5859_v19 = vld [vmem:[#allocation11 + $0xa0] ss:$16 sps:$4 sm:$0xff]   ;;  %v5862_v57 = vld [vmem:[#allocation11 + $0xa8] ss:$16 sps:$4 sm:$0xff]  }
 0x42e   :  { %7126 = vst [vmem:[#allocation66_spill] sm:$0xff] %v5859_v19  ;;  %7127 = vst [vmem:[#allocation67_spill] sm:$0xff] %v5862_v57 }
 0x430   :  { %2198 = vmatpush1.bf16.msra.mxu0 %v5847_v40  ;;  %2239 = vmatpush1.bf16.msra.mxu1 %v5850_v30  ;;  %v5865_v40 = vld [vmem:[#allocation11 + $0xc4] ss:$16 sps:$4 sm:$0xff]   ;;  %v5868_v30 = vld [vmem:[#allocation11 + $0xcc] ss:$16 sps:$4 sm:$0xff]  }
 0x431   :  { %2199 = vmatprep.subr.bf16.mxu0 %v5853_v17  ;;  %2240 = vmatprep.subr.bf16.mxu1 %v5856_v34  ;;  %7128 = vst [vmem:[#allocation68_spill] sm:$0xff] %v5865_v40  ;;  %7129 = vst [vmem:[#allocation69_spill] sm:$0xff] %v5868_v30  ;;  %v5871_v17 = vld [vmem:[#allocation11 + $0xc0] ss:$16 sps:$4 sm:$0xff]   ;;  %v5874_v34 = vld [vmem:[#allocation11 + $0xc8] ss:$16 sps:$4 sm:$0xff]  }
 0x432   :  { %7130 = vst [vmem:[#allocation70_spill] sm:$0xff] %v5871_v17  ;;  %7131 = vst [vmem:[#allocation71_spill] sm:$0xff] %v5874_v34 }
 0x434   :  { %2200 = vmatpush1.bf16.msra.mxu0 %v5859_v19  ;;  %2241 = vmatpush1.bf16.msra.mxu1 %v5862_v57  ;;  %v5877_v19 = vld [vmem:[#allocation11 + $0xe4] ss:$16 sps:$4 sm:$0xff]   ;;  %v5880_v57 = vld [vmem:[#allocation11 + $0xec] ss:$16 sps:$4 sm:$0xff]  }
 0x435   :  { %2201 = vmatprep.subr.bf16.mxu0 %v5865_v40  ;;  %2242 = vmatprep.subr.bf16.mxu1 %v5868_v30  ;;  %7132 = vst [vmem:[#allocation72_spill] sm:$0xff] %v5877_v19  ;;  %7133 = vst [vmem:[#allocation73_spill] sm:$0xff] %v5880_v57  ;;  %v5883_v40 = vld [vmem:[#allocation11 + $0xe0] ss:$16 sps:$4 sm:$0xff]   ;;  %v5886_v30 = vld [vmem:[#allocation11 + $0xe8] ss:$16 sps:$4 sm:$0xff]  }
 0x436   :  { %7134 = vst [vmem:[#allocation74_spill] sm:$0xff] %v5883_v40  ;;  %7135 = vst [vmem:[#allocation75_spill] sm:$0xff] %v5886_v30 }
 0x438   :  { %2202 = vmatpush1.bf16.msra.mxu0 %v5871_v17  ;;  %2243 = vmatpush1.bf16.msra.mxu1 %v5874_v34  ;;  %v5889_v17 = vld [vmem:[#allocation9 + $0x4] ss:$16 sps:$4 sm:$0xff]   ;;  %v5892_v34 = vld [vmem:[#allocation9 + $0xc] ss:$16 sps:$4 sm:$0xff]  }
 0x439   :  { %2203 = vmatprep.subr.bf16.mxu0 %v5877_v19  ;;  %2244 = vmatprep.subr.bf16.mxu1 %v5880_v57  ;;  %7136 = vst [vmem:[#allocation81_spill] sm:$0xff] %v5889_v17  ;;  %7137 = vst [vmem:[#allocation82_spill] sm:$0xff] %v5892_v34 }
 0x43c   :  { %2204 = vmatpush1.bf16.msra.mxu0 %v5883_v40  ;;  %2245 = vmatpush1.bf16.msra.mxu1 %v5886_v30 }
 0x43d   :  { %2271 = vmatprep.subr.bf16.mxu0 %v5889_v17  ;;  %2312 = vmatprep.subr.bf16.mxu1 %v5892_v34 }
 0x4b2   :  { %v1912_v19 = vpop.f32.mrb[44].mxu0  ;;  %v1953_v47 = vpop.f32.mrb[44].mxu1 }
 0x4b3   :  { %v1914_v53 = vpop.f32.mrb[45].mxu0  ;;  %v1955_v57 = vpop.f32.mrb[45].mxu1 }
 0x4b4   :  { %v1916_v31 = vpop.f32.mrb[46].mxu0  ;;  %v1957_v33 = vpop.f32.mrb[46].mxu1 }
 0x4b5   :  { %v1917_v24 = vpop.f32.mrb[47].mxu0  ;;  %v1958_v40 = vpop.f32.mrb[47].mxu1 }
 0x4d2   :  { %v1994_v55 = vpop.f32.mrb[48].mxu0  ;;  %v2035_v58 = vpop.f32.mrb[48].mxu1 }
 0x4d3   :  { %v1995_v11 = vadd.f32 %v1994_v55, %v1912_v19  ;;  %v2036_v30 = vadd.f32 %v2035_v58, %v1953_v47  ;;  %v1996_v5 = vpop.f32.mrb[49].mxu0  ;;  %v2037_v2 = vpop.f32.mrb[49].mxu1 }
 0x4d4   :  { %v1997_v41 = vadd.f32 %v1996_v5, %v1914_v53  ;;  %v2038_v17 = vadd.f32 %v2037_v2, %v1955_v57  ;;  %v1998_v44 = vpop.f32.mrb[50].mxu0  ;;  %v2039_v14 = vpop.f32.mrb[50].mxu1 }
 0x4d5   :  { %v2042_v34 = vadd.f32 %v1995_v11, %v5448_v62  ;;  %v1999_v20 = vpop.f32.mrb[51].mxu0  ;;  %v2040_v56 = vpop.f32.mrb[51].mxu1  ;;  %v2044_v24 = vadd.f32 %v2036_v30, %v5458_v61  ;;  %v7139_v11 = vld [vmem:[#allocation86_spill] sm:$0xff] }
 0x4d6   :  { %v2043_v15 = vadd.f32 %v1997_v41, %v5452_v0  ;;  %v2045_v58 = vadd.f32 %v2038_v17, %v5462_v50  ;;  %v7138_v17 = vld [vmem:[#allocation85_spill] sm:$0xff] }
 0x4d7   :  { %v3910_v31 = vmul.f32 -1.442695, %v2042_v34  ;;  %v3912_v47 = vmul.f32 -1.442695, %v2044_v24  ;;  %v7140_v24 = vld [vmem:[#allocation87_spill] sm:$0xff] }
 0x4d8   :  { %v3911_v33 = vmul.f32 -1.442695, %v2043_v15 }
 0x4d9   :  { %4279 = vpow2.f32 %v3910_v31 }
 0x4da   :  { %4281 = vpow2.f32 %v3911_v33 }
 0x4db   :  { %4283 = vtanh.f32 %v2045_v58 }
 0x4dc   :  { %4285 = vpow2.f32 %v3912_v47  ;;  %v7141_v47 = vld [vmem:[#allocation88_spill] sm:$0xff] }
 0x4e3   :  { %v4280_v55 = vpop.eup %4279 }
 0x4e4   :  { %v2055_v53 = vadd.f32 1.0, %v4280_v55  ;;  %v4282_v57 = vpop.eup %4281 }
 0x4e5   :  { %v2056_v14 = vadd.f32 1.0, %v4282_v57  ;;  %v4284_v56 = vpop.eup %4283 }
 0x4e6   :  { %4287 = vrcp.f32 %v2055_v53  ;;  %v4286_v20 = vpop.eup %4285 }
 0x4e7   :  { %4289 = vrcp.f32 %v2056_v14  ;;  %v2057_v19 = vadd.f32 1.0, %v4286_v20 }
 0x4e9   :  { %4291 = vrcp.f32 %v2057_v19 }
 0x4f0   :  { %v4288_v44 = vpop.eup %4287 }
 0x4f1   :  { %v2066_v34 = vmul.f32 %v4288_v44, %v4284_v56  ;;  %v4290_v15 = vpop.eup %4289 }
 0x4f2   :  { %v2111_v41 = vpop.f32.mrb[52].mxu0  ;;  %v2152_v2 = vpop.f32.mrb[52].mxu1  ;;  %v2065_v30 = vmul.f32 %v4290_v15, %v5658_v46 }
 0x4f3   :  { %v2159_v5 = vadd.f32 %v2111_v41, %v7138_v17  ;;  %v2161_v40 = vadd.f32 %v2152_v2, %v7139_v11  ;;  %v2113_v31 = vpop.f32.mrb[53].mxu0  ;;  %v2154_v33 = vpop.f32.mrb[53].mxu1 }
 0x4f4   :  { %v2160_v58 = vadd.f32 %v2113_v31, %v7140_v24  ;;  %v2162_v55 = vadd.f32 %v2154_v33, %v7141_v47  ;;  %v2115_v53 = vpop.f32.mrb[54].mxu0  ;;  %v2156_v57 = vpop.f32.mrb[54].mxu1  ;;  %v5904_v14 = vadd.f32 %v2066_v34, %v2065_v30 }
 0x4f5   :  { %v3913_v56 = vmul.f32 -1.442695, %v2159_v5  ;;  %v2116_v20 = vpop.f32.mrb[55].mxu0  ;;  %v2157_v44 = vpop.f32.mrb[55].mxu1  ;;  %v3915_v15 = vmul.f32 -1.442695, %v2161_v40 }
 0x4f6   :  { %v3914_v50 = vmul.f32 -1.442695, %v2160_v58  ;;  %4293 = vtanh.f32 %v5904_v14  ;;  %v4292_v46 = vpop.eup %4291  ;;  %v7143_v20 = vld [vmem:[#allocation23_spill] sm:$0xff]  ;;  %v7144_v44 = vld [vmem:[#allocation24_spill] sm:$0xff] }
 0x4f7   :  { %4295 = vpow2.f32 %v3913_v56  ;;  %v7142_v56 = vld [vmem:[#allocation22_spill] sm:$0xff] }
 0x4f8   :  { %4297 = vpow2.f32 %v3914_v50 }
 0x4f9   :  { %4299 = vtanh.f32 %v2162_v55 }
 0x4fa   :  { %4301 = vpow2.f32 %v3915_v15  ;;  %v7151_v15 = vld [vmem:[#allocation31_spill] sm:$0xff] }
 0x500   :  { %v4294_v41 = vpop.eup %4293 }
 0x501   :  { %v4296_v2 = vpop.eup %4295  ;;  %v2069_v17 = vmul.f32 %v4294_v41, %v4292_v46  ;;  %v7147_v46 = vld [vmem:[#allocation27_spill] sm:$0xff]  ;;  %v7152_v41 = vld [vmem:[#allocation32_spill] sm:$0xff] }
 0x502   :  { %v2172_v11 = vadd.f32 1.0, %v4296_v2  ;;  %v4298_v31 = vpop.eup %4297  ;;  %v7153_v2 = vld [vmem:[#allocation33_spill] sm:$0xff] }
 0x503   :  { %v2188_v34 = vpack.c.bf16 %v2069_v17, %v2069_v17  ;;  %v2173_v30 = vadd.f32 1.0, %v4298_v31  ;;  %v4300_v50 = vpop.eup %4299  ;;  %v7154_v17 = vld [vmem:[#allocation34_spill] sm:$0xff]  ;;  %v7156_v31 = vld [vmem:[#allocation36_spill] sm:$0xff] }
 0x504   :  { %4303 = vrcp.f32 %v2172_v11  ;;  %v4302_v19 = vpop.eup %4301  ;;  %v7155_v11 = vld [vmem:[#allocation35_spill] sm:$0xff] }
 0x505   :  { %2222 = vmatmul.mubr.bf16.vlgmr.msra.gmra.mrb[56].mxu0 %v2188_v34  ;;  %2263 = vmatmul.mubr.bf16.vlgmr.msra.gmra.mrb[56].mxu1 %v2188_v34  ;;  %4305 = vrcp.f32 %v2173_v30  ;;  %v2174_v24 = vadd.f32 1.0, %v4302_v19  ;;  %v7157_v34 = vld [vmem:[#allocation37_spill] sm:$0xff]  ;;  %v7158_v30 = vld [vmem:[#allocation38_spill] sm:$0xff]  ;;  %v7160_v19 = vld [vmem:[#allocation40_spill] sm:$0xff] }
 0x506   :  { %2272 = vmatpush1.bf16.msra.mxu0 %v5661_v21  ;;  %2313 = vmatpush1.bf16.msra.mxu1 %v5664_v29 }
 0x507   :  { %2273 = vmatprep.subr.bf16.mxu0 %v5667_v23  ;;  %2314 = vmatprep.subr.bf16.mxu1 %v5670_v22  ;;  %4307 = vrcp.f32 %v2174_v24  ;;  %v7164_v24 = vld [vmem:[#allocation44_spill] sm:$0xff] }
 0x508   :  { %2303 = vmatprep.mubr.bf16.mxu0 %v6936_v35  ;;  %2344 = vmatprep.mubr.bf16.mxu1 %v6936_v35 }
 0x50a   :  { %2274 = vmatpush1.bf16.msra.mxu0 %v5675_v16  ;;  %2315 = vmatpush1.bf16.msra.mxu1 %v5678_v6 }
 0x50b   :  { %2275 = vmatprep.subr.bf16.mxu0 %v5681_v7  ;;  %2316 = vmatprep.subr.bf16.mxu1 %v5684_v8 }
 0x50e   :  { %v4304_v5 = vpop.eup %4303  ;;  %2276 = vmatpush1.bf16.msra.mxu0 %v5687_v12  ;;  %2317 = vmatpush1.bf16.msra.mxu1 %v5690_v13 }
 0x50f   :  { %v2183_v40 = vmul.f32 %v4304_v5, %v4300_v50  ;;  %2277 = vmatprep.subr.bf16.mxu0 %v5693_v37  ;;  %2318 = vmatprep.subr.bf16.mxu1 %v5696_v38  ;;  %v4306_v33 = vpop.eup %4305  ;;  %v7159_v50 = vld [vmem:[#allocation39_spill] sm:$0xff]  ;;  %v7161_v5 = vld [vmem:[#allocation41_spill] sm:$0xff] }
 0x510   :  { %v2182_v58 = vmul.f32 %v4306_v33, %v5706_v45  ;;  %v7163_v33 = vld [vmem:[#allocation43_spill] sm:$0xff] }
 0x511   :  { %v4308_v45 = vpop.eup %4307 }
 0x512   :  { %2278 = vmatpush1.bf16.msra.mxu0 %v5700_v42  ;;  %2319 = vmatpush1.bf16.msra.mxu1 %v5703_v43  ;;  %v5924_v47 = vadd.f32 %v2183_v40, %v2182_v58  ;;  %v7162_v40 = vld [vmem:[#allocation42_spill] sm:$0xff]  ;;  %v7165_v58 = vld [vmem:[#allocation45_spill] sm:$0xff] }
 0x513   :  { %2279 = vmatprep.subr.bf16.mxu0 %v5708_v48  ;;  %2320 = vmatprep.subr.bf16.mxu1 %v5711_v49 }
 0x514   :  { %4309 = vtanh.f32 %v5924_v47 }
 0x516   :  { %2280 = vmatpush1.bf16.msra.mxu0 %v5715_v27  ;;  %2321 = vmatpush1.bf16.msra.mxu1 %v5718_v51 }
 0x517   :  { %2281 = vmatprep.subr.bf16.mxu0 %v5721_v52  ;;  %2322 = vmatprep.subr.bf16.mxu1 %v5724_v25 }
 0x51a   :  { %2282 = vmatpush1.bf16.msra.mxu0 %v5727_v59  ;;  %2323 = vmatpush1.bf16.msra.mxu1 %v5730_v60 }
 0x51b   :  { %2283 = vmatprep.subr.bf16.mxu0 %v5733_v63  ;;  %2324 = vmatprep.subr.bf16.mxu1 %v5736_v1 }
 0x51e   :  { %2284 = vmatpush1.bf16.msra.mxu0 %v5739_v3  ;;  %2325 = vmatpush1.bf16.msra.mxu1 %v5742_v4  ;;  %v4310_v55 = vpop.eup %4309 }
 0x51f   :  { %2285 = vmatprep.subr.bf16.mxu0 %v5745_v9  ;;  %2326 = vmatprep.subr.bf16.mxu1 %v5748_v10  ;;  %v2186_v53 = vmul.f32 %v4310_v55, %v4308_v45  ;;  %v7166_v45 = vld [vmem:[#allocation76_spill] sm:$0xff]  ;;  %v7167_v55 = vld [vmem:[#allocation77_spill] sm:$0xff] }
 0x521   :  { %v2187_v57 = vpack.c.bf16 %v2186_v53, %v2186_v53  ;;  %v7168_v53 = vld [vmem:[#allocation78_spill] sm:$0xff] }
 0x522   :  { %2286 = vmatpush1.bf16.msra.mxu0 %v5751_v36  ;;  %2327 = vmatpush1.bf16.msra.mxu1 %v5754_v39 }
 0x523   :  { %2388 = vmatprep.subr.bf16.mxu0 %v5511_v18  ;;  %2429 = vmatprep.subr.bf16.mxu1 %v5514_v28  ;;  %v7145_v18 = vld [vmem:[#allocation25_spill] sm:$0xff]  ;;  %v7146_v28 = vld [vmem:[#allocation26_spill] sm:$0xff] }
 0x525   :  { %2304 = vmatmul.mubr.bf16.vlgmr.msra.gmra.mrb[60].mxu0 %v2187_v57  ;;  %2345 = vmatmul.mubr.bf16.vlgmr.msra.gmra.mrb[60].mxu1 %v2187_v57 }
 0x526   :  { %2389 = vmatpush1.bf16.msra.mxu0 %v5519_v54  ;;  %2430 = vmatpush1.bf16.msra.mxu1 %v5522_v26  ;;  %v7148_v54 = vld [vmem:[#allocation28_spill] sm:$0xff]  ;;  %v7149_v26 = vld [vmem:[#allocation29_spill] sm:$0xff] }
 0x527   :  { %2390 = vmatprep.subr.bf16.mxu0 %v5525_v32  ;;  %2431 = vmatprep.subr.bf16.mxu1 %v7142_v56  ;;  %v7150_v32 = vld [vmem:[#allocation30_spill] sm:$0xff]  ;;  %v7169_v56 = vld [vmem:[#allocation79_spill] sm:$0xff] }
 0x528   :  { %2420 = vmatprep.mubr.bf16.mxu0 %v6936_v35  ;;  %2461 = vmatprep.mubr.bf16.mxu1 %v6936_v35 }
 0x52a   :  { %2391 = vmatpush1.bf16.msra.mxu0 %v7143_v20  ;;  %2432 = vmatpush1.bf16.msra.mxu1 %v7144_v44  ;;  %v7170_v20 = vld [vmem:[#allocation80_spill] sm:$0xff]  ;;  %v7171_v44 = vld [vmem:[#allocation46_spill] sm:$0xff] }
 0x52b   :  { %2392 = vmatprep.subr.bf16.mxu0 %v7145_v18  ;;  %2433 = vmatprep.subr.bf16.mxu1 %v7146_v28  ;;  %v7172_v18 = vld [vmem:[#allocation47_spill] sm:$0xff]  ;;  %v7173_v28 = vld [vmem:[#allocation48_spill] sm:$0xff] }
 0x52e   :  { %2393 = vmatpush1.bf16.msra.mxu0 %v7147_v46  ;;  %2434 = vmatpush1.bf16.msra.mxu1 %v7148_v54  ;;  %v7174_v46 = vld [vmem:[#allocation49_spill] sm:$0xff]  ;;  %v7175_v54 = vld [vmem:[#allocation50_spill] sm:$0xff] }
 0x52f   :  { %2394 = vmatprep.subr.bf16.mxu0 %v7149_v26  ;;  %2435 = vmatprep.subr.bf16.mxu1 %v7150_v32  ;;  %v7176_v26 = vld [vmem:[#allocation51_spill] sm:$0xff]  ;;  %v7177_v32 = vld [vmem:[#allocation52_spill] sm:$0xff] }
 0x532   :  { %2395 = vmatpush1.bf16.msra.mxu0 %v7151_v15  ;;  %2436 = vmatpush1.bf16.msra.mxu1 %v7152_v41  ;;  %v7178_v15 = vld [vmem:[#allocation53_spill] sm:$0xff]  ;;  %v7180_v41 = vld [vmem:[#allocation55_spill] sm:$0xff] }
 0x533   :  { %2396 = vmatprep.subr.bf16.mxu0 %v7153_v2  ;;  %2437 = vmatprep.subr.bf16.mxu1 %v7154_v17  ;;  %v7181_v2 = vld [vmem:[#allocation56_spill] sm:$0xff]  ;;  %v7182_v17 = vld [vmem:[#allocation57_spill] sm:$0xff] }
 0x536   :  { %2397 = vmatpush1.bf16.msra.mxu0 %v7155_v11  ;;  %2438 = vmatpush1.bf16.msra.mxu1 %v7156_v31  ;;  %v7183_v11 = vld [vmem:[#allocation58_spill] sm:$0xff]  ;;  %v7184_v31 = vld [vmem:[#allocation59_spill] sm:$0xff] }
 0x537   :  { %2398 = vmatprep.subr.bf16.mxu0 %v7157_v34  ;;  %2439 = vmatprep.subr.bf16.mxu1 %v7158_v30  ;;  %v7185_v34 = vld [vmem:[#allocation60_spill] sm:$0xff]  ;;  %v7186_v30 = vld [vmem:[#allocation61_spill] sm:$0xff] }
 0x53a   :  { %2399 = vmatpush1.bf16.msra.mxu0 %v7159_v50  ;;  %2440 = vmatpush1.bf16.msra.mxu1 %v7160_v19  ;;  %v7187_v50 = vld [vmem:[#allocation62_spill] sm:$0xff]  ;;  %v7188_v19 = vld [vmem:[#allocation63_spill] sm:$0xff] }
 0x53b   :  { %2400 = vmatprep.subr.bf16.mxu0 %v7161_v5  ;;  %2441 = vmatprep.subr.bf16.mxu1 %v7162_v40  ;;  %v7189_v5 = vld [vmem:[#allocation64_spill] sm:$0xff]  ;;  %v7190_v40 = vld [vmem:[#allocation65_spill] sm:$0xff] }
 0x53e   :  { %2401 = vmatpush1.bf16.msra.mxu0 %v7163_v33  ;;  %2442 = vmatpush1.bf16.msra.mxu1 %v7164_v24  ;;  %v7191_v33 = vld [vmem:[#allocation66_spill] sm:$0xff]  ;;  %v7192_v24 = vld [vmem:[#allocation67_spill] sm:$0xff] }
 0x53f   :  { %2402 = vmatprep.subr.bf16.mxu0 %v7165_v58  ;;  %2443 = vmatprep.subr.bf16.mxu1 %v7166_v45  ;;  %v7193_v58 = vld [vmem:[#allocation68_spill] sm:$0xff]  ;;  %v7194_v45 = vld [vmem:[#allocation69_spill] sm:$0xff] }
 0x542   :  { %2403 = vmatpush1.bf16.msra.mxu0 %v7167_v55  ;;  %2444 = vmatpush1.bf16.msra.mxu1 %v7168_v53  ;;  %v7195_v55 = vld [vmem:[#allocation70_spill] sm:$0xff]  ;;  %v7196_v53 = vld [vmem:[#allocation71_spill] sm:$0xff] }
 0x543   :  { %2500 = vmatprep.subr.bf16.mxu0 %v7169_v56  ;;  %2541 = vmatprep.subr.bf16.mxu1 %v7170_v20 }
 0x545   :  { %2421 = vmatmul.mubr.bf16.vlgmr.msra.gmra.mrb[64].mxu0 %v2187_v57  ;;  %2462 = vmatmul.mubr.bf16.vlgmr.msra.gmra.mrb[64].mxu1 %v2187_v57  ;;  %v7179_v57 = vld [vmem:[#allocation54_spill] sm:$0xff] }
 0x546   :  { %2501 = vmatpush1.bf16.msra.mxu0 %v7171_v44  ;;  %2542 = vmatpush1.bf16.msra.mxu1 %v7172_v18 }
 0x547   :  { %2502 = vmatprep.subr.bf16.mxu0 %v7173_v28  ;;  %2543 = vmatprep.subr.bf16.mxu1 %v7174_v46 }
 0x548   :  { %2532 = vmatprep.mubr.bf16.mxu0 %v6936_v35  ;;  %2573 = vmatprep.mubr.bf16.mxu1 %v6936_v35 }
 0x54a   :  { %2503 = vmatpush1.bf16.msra.mxu0 %v7175_v54  ;;  %2544 = vmatpush1.bf16.msra.mxu1 %v7176_v26 }
 0x54b   :  { %2504 = vmatprep.subr.bf16.mxu0 %v7177_v32  ;;  %2545 = vmatprep.subr.bf16.mxu1 %v7178_v15 }
 0x54e   :  { %2505 = vmatpush1.bf16.msra.mxu0 %v7179_v57  ;;  %2546 = vmatpush1.bf16.msra.mxu1 %v7180_v41 }
 0x54f   :  { %2506 = vmatprep.subr.bf16.mxu0 %v7181_v2  ;;  %2547 = vmatprep.subr.bf16.mxu1 %v7182_v17 }
 0x552   :  { %2507 = vmatpush1.bf16.msra.mxu0 %v7183_v11  ;;  %2548 = vmatpush1.bf16.msra.mxu1 %v7184_v31 }
 0x553   :  { %2508 = vmatprep.subr.bf16.mxu0 %v7185_v34  ;;  %2549 = vmatprep.subr.bf16.mxu1 %v7186_v30  ;;  %v7197_v30 = vld [vmem:[#allocation72_spill] sm:$0xff] }
 0x556   :  { %2509 = vmatpush1.bf16.msra.mxu0 %v7187_v50  ;;  %2550 = vmatpush1.bf16.msra.mxu1 %v7188_v19  ;;  %v7198_v50 = vld [vmem:[#allocation73_spill] sm:$0xff]  ;;  %v7199_v19 = vld [vmem:[#allocation74_spill] sm:$0xff] }
 0x557   :  { %2510 = vmatprep.subr.bf16.mxu0 %v7189_v5  ;;  %2551 = vmatprep.subr.bf16.mxu1 %v7190_v40  ;;  %v7200_v5 = vld [vmem:[#allocation75_spill] sm:$0xff]  ;;  %v7201_v40 = vld [vmem:[#allocation81_spill] sm:$0xff] }
 0x55a   :  { %2511 = vmatpush1.bf16.msra.mxu0 %v7191_v33  ;;  %2552 = vmatpush1.bf16.msra.mxu1 %v7192_v24  ;;  %v7202_v33 = vld [vmem:[#allocation82_spill] sm:$0xff] }
 0x55b   :  { %2512 = vmatprep.subr.bf16.mxu0 %v7193_v58  ;;  %2553 = vmatprep.subr.bf16.mxu1 %v7194_v45 }
 0x55e   :  { %2513 = vmatpush1.bf16.msra.mxu0 %v7195_v55  ;;  %2554 = vmatpush1.bf16.msra.mxu1 %v7196_v53 }
 0x55f   :  { %2514 = vmatprep.subr.bf16.mxu0 %v7197_v30  ;;  %2555 = vmatprep.subr.bf16.mxu1 %v7198_v50 }
 0x562   :  { %2515 = vmatpush1.bf16.msra.mxu0 %v7199_v19  ;;  %2556 = vmatpush1.bf16.msra.mxu1 %v7200_v5 }
 0x563   :  { %2582 = vmatprep.subr.bf16.mxu0 %v7201_v40  ;;  %2623 = vmatprep.subr.bf16.mxu1 %v7202_v33 }
 0x5d8   :  { %v2223_v24 = vpop.f32.mrb[56].mxu0  ;;  %v2264_v58 = vpop.f32.mrb[56].mxu1 }
 0x5d9   :  { %v2225_v34 = vpop.f32.mrb[57].mxu0  ;;  %v2266_v45 = vpop.f32.mrb[57].mxu1 }
 0x5da   :  { %v2227_v31 = vpop.f32.mrb[58].mxu0  ;;  %v2268_v55 = vpop.f32.mrb[58].mxu1 }
 0x5db   :  { %v2228_v11 = vpop.f32.mrb[59].mxu0  ;;  %v2269_v53 = vpop.f32.mrb[59].mxu1 }
 0x5dc   :  { %v7205_v53 = vld [vmem:[#allocation90_spill] sm:$0xff] }
 0x5f8   :  { %v2305_v17 = vpop.f32.mrb[60].mxu0  ;;  %v2346_v30 = vpop.f32.mrb[60].mxu1 }
 0x5f9   :  { %v2306_v2 = vadd.f32 %v2305_v17, %v2223_v24  ;;  %v2347_v50 = vadd.f32 %v2346_v30, %v2264_v58  ;;  %v2307_v41 = vpop.f32.mrb[61].mxu0  ;;  %v2348_v19 = vpop.f32.mrb[61].mxu1  ;;  %v7203_v17 = vld [vmem:[#allocation21_spill] sm:$0xff] }
 0x5fa   :  { %v2308_v57 = vadd.f32 %v2307_v41, %v2225_v34  ;;  %v2349_v5 = vadd.f32 %v2348_v19, %v2266_v45  ;;  %v2309_v15 = vpop.f32.mrb[62].mxu0  ;;  %v2350_v40 = vpop.f32.mrb[62].mxu1 }
 0x5fb   :  { %v2353_v33 = vadd.f32 %v2306_v2, %v5448_v62  ;;  %v2310_v32 = vpop.f32.mrb[63].mxu0  ;;  %v2351_v26 = vpop.f32.mrb[63].mxu1  ;;  %v2355_v11 = vadd.f32 %v2347_v50, %v5458_v61 }
 0x5fc   :  { %v2354_v54 = vadd.f32 %v2308_v57, %v5452_v0  ;;  %v2356_v30 = vadd.f32 %v2349_v5, %v7203_v17  ;;  %v7204_v5 = vld [vmem:[#allocation89_spill] sm:$0xff] }
 0x5fd   :  { %v3916_v31 = vmul.f32 -1.442695, %v2353_v33  ;;  %v3918_v24 = vmul.f32 -1.442695, %v2355_v11 }
 0x5fe   :  { %v3917_v55 = vmul.f32 -1.442695, %v2354_v54 }
 0x5ff   :  { %4311 = vpow2.f32 %v3916_v31 }
 0x600   :  { %4313 = vpow2.f32 %v3917_v55 }
 0x601   :  { %4315 = vtanh.f32 %v2356_v30  ;;  %v7206_v30 = vld [vmem:[#allocation91_spill] sm:$0xff] }
 0x602   :  { %4317 = vpow2.f32 %v3918_v24 }
 0x609   :  { %v4312_v58 = vpop.eup %4311 }
 0x60a   :  { %v2366_v41 = vadd.f32 1.0, %v4312_v58  ;;  %v4314_v15 = vpop.eup %4313  ;;  %v7207_v58 = vld [vmem:[#allocation92_spill] sm:$0xff] }
 0x60b   :  { %v2367_v2 = vadd.f32 1.0, %v4314_v15  ;;  %v4316_v26 = vpop.eup %4315 }
 0x60c   :  { %4319 = vrcp.f32 %v2366_v41  ;;  %v4318_v32 = vpop.eup %4317 }
 0x60d   :  { %4321 = vrcp.f32 %v2367_v2  ;;  %v2368_v19 = vadd.f32 1.0, %v4318_v32 }
 0x60f   :  { %4323 = vrcp.f32 %v2368_v19 }
 0x616   :  { %v4320_v57 = vpop.eup %4319 }
 0x617   :  { %v2377_v34 = vmul.f32 %v4320_v57, %v4316_v26  ;;  %v4322_v54 = vpop.eup %4321 }
 0x618   :  { %v2422_v40 = vpop.f32.mrb[64].mxu0  ;;  %v2463_v33 = vpop.f32.mrb[64].mxu1  ;;  %v2376_v50 = vmul.f32 %v4322_v54, %v5904_v14 }
 0x619   :  { %v2470_v45 = vadd.f32 %v2422_v40, %v7204_v5  ;;  %v2472_v31 = vadd.f32 %v2463_v33, %v7205_v53  ;;  %v2424_v55 = vpop.f32.mrb[65].mxu0  ;;  %v2465_v11 = vpop.f32.mrb[65].mxu1 }
 0x61a   :  { %v2471_v24 = vadd.f32 %v2424_v55, %v7206_v30  ;;  %v2473_v41 = vadd.f32 %v2465_v11, %v7207_v58  ;;  %v2426_v15 = vpop.f32.mrb[66].mxu0  ;;  %v2467_v2 = vpop.f32.mrb[66].mxu1  ;;  %v6022_v17 = vadd.f32 %v2377_v34, %v2376_v50  ;;  %v6136_v11 = vld [vmem:[#allocation8 + $0xa8] ss:$16 sps:$4 sm:$0xff]   ;;  %v6139_v30 = vld [vmem:[#allocation8 + $0xc4] ss:$16 sps:$4 sm:$0xff]  }
 0x61b   :  { %v3919_v26 = vmul.f32 -1.442695, %v2470_v45  ;;  %v2427_v32 = vpop.f32.mrb[67].mxu0  ;;  %v2468_v57 = vpop.f32.mrb[67].mxu1  ;;  %v3921_v54 = vmul.f32 -1.442695, %v2472_v31 }
 0x61c   :  { %v3920_v61 = vmul.f32 -1.442695, %v2471_v24  ;;  %4325 = vtanh.f32 %v6022_v17  ;;  %v4324_v14 = vpop.eup %4323  ;;  %v6130_v45 = vld [vmem:[#allocation8 + $0xac] ss:$16 sps:$4 sm:$0xff]   ;;  %v6133_v31 = vld [vmem:[#allocation8 + $0xa0] ss:$16 sps:$4 sm:$0xff]  }
 0x61d   :  { %4327 = vpow2.f32 %v3919_v26  ;;  %7215 = vst [vmem:[#allocation23_spill] sm:$0xff] %v6130_v45  ;;  %7216 = vst [vmem:[#allocation24_spill] sm:$0xff] %v6133_v31  ;;  %v6142_v24 = vld [vmem:[#allocation8 + $0xcc] ss:$16 sps:$4 sm:$0xff]   ;;  %v6145_v58 = vld [vmem:[#allocation8 + $0xc0] ss:$16 sps:$4 sm:$0xff]  }
 0x61e   :  { %4329 = vpow2.f32 %v3920_v61  ;;  %7217 = vst [vmem:[#allocation25_spill] sm:$0xff] %v6136_v11  ;;  %7218 = vst [vmem:[#allocation26_spill] sm:$0xff] %v6139_v30  ;;  %v6151_v15 = vld [vmem:[#allocation8 + $0xe4] ss:$16 sps:$4 sm:$0xff]   ;;  %v6154_v2 = vld [vmem:[#allocation8 + $0xec] ss:$16 sps:$4 sm:$0xff]  }
 0x61f   :  { %4331 = vtanh.f32 %v2473_v41  ;;  %7219 = vst [vmem:[#allocation27_spill] sm:$0xff] %v6142_v24  ;;  %7220 = vst [vmem:[#allocation28_spill] sm:$0xff] %v6145_v58  ;;  %v6148_v41 = vld [vmem:[#allocation8 + $0xc8] ss:$16 sps:$4 sm:$0xff]   ;;  %v6157_v26 = vld [vmem:[#allocation8 + $0xe0] ss:$16 sps:$4 sm:$0xff]  }
 0x620   :  { %4333 = vpow2.f32 %v3921_v54  ;;  %7221 = vst [vmem:[#allocation29_spill] sm:$0xff] %v6148_v41  ;;  %7222 = vst [vmem:[#allocation30_spill] sm:$0xff] %v6151_v15  ;;  %v6160_v32 = vld [vmem:[#allocation8 + $0xe8] ss:$16 sps:$4 sm:$0xff]  }
 0x621   :  { %7223 = vst [vmem:[#allocation31_spill] sm:$0xff] %v6154_v2  ;;  %7224 = vst [vmem:[#allocation32_spill] sm:$0xff] %v6157_v26  ;;  %v7226_v57 = vld [vmem:[#allocation50_spill] sm:$0xff] }
 0x622   :  { %7225 = vst [vmem:[#allocation33_spill] sm:$0xff] %v6160_v32  ;;  %v7230_v54 = vld [vmem:[#allocation54_spill] sm:$0xff] }
 0x626   :  { %v4326_v40 = vpop.eup %4325 }
 0x627   :  { %v4328_v33 = vpop.eup %4327  ;;  %v2380_v5 = vmul.f32 %v4326_v40, %v4324_v14  ;;  %v7229_v14 = vld [vmem:[#allocation53_spill] sm:$0xff]  ;;  %v7235_v40 = vld [vmem:[#allocation59_spill] sm:$0xff] }
 0x628   :  { %v2483_v53 = vadd.f32 1.0, %v4328_v33  ;;  %v4330_v55 = vpop.eup %4329  ;;  %v7236_v33 = vld [vmem:[#allocation60_spill] sm:$0xff] }
 0x629   :  { %v2499_v34 = vpack.c.bf16 %v2380_v5, %v2380_v5  ;;  %v2484_v50 = vadd.f32 1.0, %v4330_v55  ;;  %v4332_v61 = vpop.eup %4331  ;;  %v7237_v5 = vld [vmem:[#allocation61_spill] sm:$0xff]  ;;  %v7239_v55 = vld [vmem:[#allocation63_spill] sm:$0xff] }
 0x62a   :  { %4335 = vrcp.f32 %v2483_v53  ;;  %v7238_v53 = vld [vmem:[#allocation62_spill] sm:$0xff] }
 0x62b   :  { %2533 = vmatmul.mubr.bf16.vlgmr.msra.gmra.mrb[68].mxu0 %v2499_v34  ;;  %2574 = vmatmul.mubr.bf16.vlgmr.msra.gmra.mrb[68].mxu1 %v2499_v34  ;;  %4337 = vrcp.f32 %v2484_v50  ;;  %v7240_v34 = vld [vmem:[#allocation64_spill] sm:$0xff]  ;;  %v7241_v50 = vld [vmem:[#allocation65_spill] sm:$0xff] }
 0x62c   :  { %2583 = vmatpush1.bf16.msra.mxu0 %v5661_v21  ;;  %2624 = vmatpush1.bf16.msra.mxu1 %v5664_v29  ;;  %v4334_v21 = vpop.eup %4333 }
 0x62d   :  { %2584 = vmatprep.subr.bf16.mxu0 %v5667_v23  ;;  %2625 = vmatprep.subr.bf16.mxu1 %v5670_v22  ;;  %v2485_v22 = vadd.f32 1.0, %v4334_v21  ;;  %v7243_v21 = vld [vmem:[#allocation67_spill] sm:$0xff] }
 0x62e   :  { %2614 = vmatprep.mubr.bf16.mxu0 %v6936_v35  ;;  %2655 = vmatprep.mubr.bf16.mxu1 %v6936_v35 }
 0x62f   :  { %4339 = vrcp.f32 %v2485_v22  ;;  %v7247_v22 = vld [vmem:[#allocation71_spill] sm:$0xff] }
 0x630   :  { %2585 = vmatpush1.bf16.msra.mxu0 %v5675_v16  ;;  %2626 = vmatpush1.bf16.msra.mxu1 %v5678_v6 }
 0x631   :  { %2586 = vmatprep.subr.bf16.mxu0 %v5681_v7  ;;  %2627 = vmatprep.subr.bf16.mxu1 %v5684_v8 }
 0x634   :  { %v4336_v19 = vpop.eup %4335  ;;  %2587 = vmatpush1.bf16.msra.mxu0 %v5687_v12  ;;  %2628 = vmatpush1.bf16.msra.mxu1 %v5690_v13 }
 0x635   :  { %v2494_v29 = vmul.f32 %v4336_v19, %v4332_v61  ;;  %2588 = vmatprep.subr.bf16.mxu0 %v5693_v37  ;;  %2629 = vmatprep.subr.bf16.mxu1 %v5696_v38  ;;  %v4338_v23 = vpop.eup %4337  ;;  %v6063_v37 = vld [vmem:[#allocation8 + $0x4] ss:$16 sps:$4 sm:$0xff]   ;;  %v6066_v38 = vld [vmem:[#allocation8 + $0xc] ss:$16 sps:$4 sm:$0xff]  }
 0x636   :  { %v2493_v16 = vmul.f32 %v4338_v23, %v5924_v47  ;;  %v6127_v47 = vld [vmem:[#allocation8 + $0xa4] ss:$16 sps:$4 sm:$0xff]   ;;  %v7242_v61 = vld [vmem:[#allocation66_spill] sm:$0xff]  ;;  %v7244_v19 = vld [vmem:[#allocation68_spill] sm:$0xff] }
 0x637   :  { %7214 = vst [vmem:[#allocation22_spill] sm:$0xff] %v6127_v47  ;;  %v7246_v23 = vld [vmem:[#allocation70_spill] sm:$0xff] }
 0x638   :  { %2589 = vmatpush1.bf16.msra.mxu0 %v5700_v42  ;;  %2630 = vmatpush1.bf16.msra.mxu1 %v5703_v43  ;;  %v6042_v6 = vadd.f32 %v2494_v29, %v2493_v16  ;;  %v6071_v42 = vld [vmem:[#allocation8] ss:$16 sps:$4 sm:$0xff]   ;;  %v6074_v43 = vld [vmem:[#allocation8 + $0x8] ss:$16 sps:$4 sm:$0xff]  }
 0x639   :  { %2590 = vmatprep.subr.bf16.mxu0 %v5708_v48  ;;  %2631 = vmatprep.subr.bf16.mxu1 %v5711_v49  ;;  %v4340_v7 = vpop.eup %4339  ;;  %v6077_v48 = vld [vmem:[#allocation8 + $0x24] ss:$16 sps:$4 sm:$0xff]   ;;  %v6080_v49 = vld [vmem:[#allocation8 + $0x2c] ss:$16 sps:$4 sm:$0xff]  }
 0x63a   :  { %4341 = vtanh.f32 %v6042_v6  ;;  %v7245_v29 = vld [vmem:[#allocation69_spill] sm:$0xff]  ;;  %v7248_v16 = vld [vmem:[#allocation72_spill] sm:$0xff] }
 0x63c   :  { %2591 = vmatpush1.bf16.msra.mxu0 %v5715_v27  ;;  %2632 = vmatpush1.bf16.msra.mxu1 %v5718_v51  ;;  %v6085_v27 = vld [vmem:[#allocation8 + $0x20] ss:$16 sps:$4 sm:$0xff]   ;;  %v6088_v51 = vld [vmem:[#allocation8 + $0x28] ss:$16 sps:$4 sm:$0xff]  }
 0x63d   :  { %2592 = vmatprep.subr.bf16.mxu0 %v5721_v52  ;;  %2633 = vmatprep.subr.bf16.mxu1 %v5724_v25  ;;  %v6091_v52 = vld [vmem:[#allocation8 + $0x44] ss:$16 sps:$4 sm:$0xff]   ;;  %v6094_v25 = vld [vmem:[#allocation8 + $0x4c] ss:$16 sps:$4 sm:$0xff]  }
 0x640   :  { %2593 = vmatpush1.bf16.msra.mxu0 %v5727_v59  ;;  %2634 = vmatpush1.bf16.msra.mxu1 %v5730_v60  ;;  %v6097_v59 = vld [vmem:[#allocation8 + $0x40] ss:$16 sps:$4 sm:$0xff]   ;;  %v6100_v60 = vld [vmem:[#allocation8 + $0x48] ss:$16 sps:$4 sm:$0xff]  }
 0x641   :  { %2594 = vmatprep.subr.bf16.mxu0 %v5733_v63  ;;  %2635 = vmatprep.subr.bf16.mxu1 %v5736_v1  ;;  %v6103_v63 = vld [vmem:[#allocation8 + $0x64] ss:$16 sps:$4 sm:$0xff]   ;;  %v6106_v1 = vld [vmem:[#allocation8 + $0x6c] ss:$16 sps:$4 sm:$0xff]  }
 0x644   :  { %2595 = vmatpush1.bf16.msra.mxu0 %v5739_v3  ;;  %2636 = vmatpush1.bf16.msra.mxu1 %v5742_v4  ;;  %v4342_v8 = vpop.eup %4341  ;;  %v6109_v3 = vld [vmem:[#allocation8 + $0x60] ss:$16 sps:$4 sm:$0xff]   ;;  %v6112_v4 = vld [vmem:[#allocation8 + $0x68] ss:$16 sps:$4 sm:$0xff]  }
 0x645   :  { %2596 = vmatprep.subr.bf16.mxu0 %v5745_v9  ;;  %2637 = vmatprep.subr.bf16.mxu1 %v5748_v10  ;;  %v2497_v12 = vmul.f32 %v4342_v8, %v4340_v7  ;;  %7208 = vst [vmem:[#allocation83_spill] sm:$0xff] %v6109_v3  ;;  %7209 = vst [vmem:[#allocation84_spill] sm:$0xff] %v6112_v4  ;;  %v6115_v9 = vld [vmem:[#allocation8 + $0x84] ss:$16 sps:$4 sm:$0xff]   ;;  %v6118_v10 = vld [vmem:[#allocation8 + $0x8c] ss:$16 sps:$4 sm:$0xff]  }
 0x646   :  { %7210 = vst [vmem:[#allocation85_spill] sm:$0xff] %v6115_v9  ;;  %7211 = vst [vmem:[#allocation86_spill] sm:$0xff] %v6118_v10  ;;  %v7249_v7 = vld [vmem:[#allocation73_spill] sm:$0xff]  ;;  %v7250_v8 = vld [vmem:[#allocation74_spill] sm:$0xff] }
 0x647   :  { %v6061_v13 = vpack.c.bf16 %v2497_v12, %v2497_v12  ;;  %v7251_v12 = vld [vmem:[#allocation75_spill] sm:$0xff] }
 0x648   :  { %2597 = vmatpush1.bf16.msra.mxu0 %v5751_v36  ;;  %2638 = vmatpush1.bf16.msra.mxu1 %v5754_v39  ;;  %v6121_v36 = vld [vmem:[#allocation8 + $0x80] ss:$16 sps:$4 sm:$0xff]   ;;  %v6124_v39 = vld [vmem:[#allocation8 + $0x88] ss:$16 sps:$4 sm:$0xff]  }
 0x649   :  { %2699 = vmatprep.subr.bf16.mxu0 %v6063_v37  ;;  %2740 = vmatprep.subr.bf16.mxu1 %v6066_v38  ;;  %7212 = vst [vmem:[#allocation87_spill] sm:$0xff] %v6121_v36  ;;  %7213 = vst [vmem:[#allocation88_spill] sm:$0xff] %v6124_v39 }
 0x64b   :  { %2615 = vmatmul.mubr.bf16.vlgmr.msra.gmra.mrb[72].mxu0 %v6061_v13  ;;  %2656 = vmatmul.mubr.bf16.vlgmr.msra.gmra.mrb[72].mxu1 %v6061_v13 }
 0x64c   :  { %2700 = vmatpush1.bf16.msra.mxu0 %v6071_v42  ;;  %2741 = vmatpush1.bf16.msra.mxu1 %v6074_v43 }
 0x64d   :  { %2701 = vmatprep.subr.bf16.mxu0 %v6077_v48  ;;  %2742 = vmatprep.subr.bf16.mxu1 %v6080_v49 }
 0x64e   :  { %2731 = vmatprep.mubr.bf16.mxu0 %v6936_v35  ;;  %2772 = vmatprep.mubr.bf16.mxu1 %v6936_v35 }
 0x650   :  { %2702 = vmatpush1.bf16.msra.mxu0 %v6085_v27  ;;  %2743 = vmatpush1.bf16.msra.mxu1 %v6088_v51 }
 0x651   :  { %2703 = vmatprep.subr.bf16.mxu0 %v6091_v52  ;;  %2744 = vmatprep.subr.bf16.mxu1 %v6094_v25 }
 0x654   :  { %2704 = vmatpush1.bf16.msra.mxu0 %v6097_v59  ;;  %2745 = vmatpush1.bf16.msra.mxu1 %v6100_v60 }
 0x655   :  { %2705 = vmatprep.subr.bf16.mxu0 %v6103_v63  ;;  %2746 = vmatprep.subr.bf16.mxu1 %v6106_v1 }
 0x658   :  { %2706 = vmatpush1.bf16.msra.mxu0 %v6109_v3  ;;  %2747 = vmatpush1.bf16.msra.mxu1 %v6112_v4 }
 0x659   :  { %2707 = vmatprep.subr.bf16.mxu0 %v6115_v9  ;;  %2748 = vmatprep.subr.bf16.mxu1 %v6118_v10 }
 0x65c   :  { %2708 = vmatpush1.bf16.msra.mxu0 %v6121_v36  ;;  %2749 = vmatpush1.bf16.msra.mxu1 %v6124_v39 }
 0x65d   :  { %2709 = vmatprep.subr.bf16.mxu0 %v6127_v47  ;;  %2750 = vmatprep.subr.bf16.mxu1 %v6130_v45 }
 0x660   :  { %2710 = vmatpush1.bf16.msra.mxu0 %v6133_v31  ;;  %2751 = vmatpush1.bf16.msra.mxu1 %v6136_v11 }
 0x661   :  { %2711 = vmatprep.subr.bf16.mxu0 %v6139_v30  ;;  %2752 = vmatprep.subr.bf16.mxu1 %v6142_v24 }
 0x664   :  { %2712 = vmatpush1.bf16.msra.mxu0 %v6145_v58  ;;  %2753 = vmatpush1.bf16.msra.mxu1 %v6148_v41 }
 0x665   :  { %2713 = vmatprep.subr.bf16.mxu0 %v6151_v15  ;;  %2754 = vmatprep.subr.bf16.mxu1 %v6154_v2 }
 0x668   :  { %2714 = vmatpush1.bf16.msra.mxu0 %v6157_v26  ;;  %2755 = vmatpush1.bf16.msra.mxu1 %v6160_v32 }
 0x669   :  { %2811 = vmatprep.subr.bf16.mxu0 %v7169_v56  ;;  %2852 = vmatprep.subr.bf16.mxu1 %v7170_v20  ;;  %v7227_v56 = vld [vmem:[#allocation51_spill] sm:$0xff]  ;;  %v7228_v20 = vld [vmem:[#allocation52_spill] sm:$0xff] }
 0x66b   :  { %2732 = vmatmul.mubr.bf16.vlgmr.msra.gmra.mrb[76].mxu0 %v6061_v13  ;;  %2773 = vmatmul.mubr.bf16.vlgmr.msra.gmra.mrb[76].mxu1 %v6061_v13  ;;  %v7252_v13 = vld [vmem:[#allocation81_spill] sm:$0xff] }
 0x66c   :  { %2812 = vmatpush1.bf16.msra.mxu0 %v7171_v44  ;;  %2853 = vmatpush1.bf16.msra.mxu1 %v7172_v18  ;;  %v7231_v44 = vld [vmem:[#allocation55_spill] sm:$0xff]  ;;  %v7232_v18 = vld [vmem:[#allocation56_spill] sm:$0xff] }
 0x66d   :  { %2813 = vmatprep.subr.bf16.mxu0 %v7173_v28  ;;  %2854 = vmatprep.subr.bf16.mxu1 %v7174_v46  ;;  %v7233_v28 = vld [vmem:[#allocation57_spill] sm:$0xff]  ;;  %v7234_v46 = vld [vmem:[#allocation58_spill] sm:$0xff] }
 0x66e   :  { %2843 = vmatprep.mubr.bf16.mxu0 %v6936_v35  ;;  %2884 = vmatprep.mubr.bf16.mxu1 %v6936_v35 }
 0x670   :  { %2814 = vmatpush1.bf16.msra.mxu0 %v7226_v57  ;;  %2855 = vmatpush1.bf16.msra.mxu1 %v7227_v56  ;;  %v7253_v57 = vld [vmem:[#allocation82_spill] sm:$0xff] }
 0x671   :  { %2815 = vmatprep.subr.bf16.mxu0 %v7228_v20  ;;  %2856 = vmatprep.subr.bf16.mxu1 %v7229_v14 }
 0x674   :  { %2816 = vmatpush1.bf16.msra.mxu0 %v7230_v54  ;;  %2857 = vmatpush1.bf16.msra.mxu1 %v7231_v44 }
 0x675   :  { %2817 = vmatprep.subr.bf16.mxu0 %v7232_v18  ;;  %2858 = vmatprep.subr.bf16.mxu1 %v7233_v28 }
 0x678   :  { %2818 = vmatpush1.bf16.msra.mxu0 %v7234_v46  ;;  %2859 = vmatpush1.bf16.msra.mxu1 %v7235_v40 }
 0x679   :  { %2819 = vmatprep.subr.bf16.mxu0 %v7236_v33  ;;  %2860 = vmatprep.subr.bf16.mxu1 %v7237_v5 }
 0x67c   :  { %2820 = vmatpush1.bf16.msra.mxu0 %v7238_v53  ;;  %2861 = vmatpush1.bf16.msra.mxu1 %v7239_v55 }
 0x67d   :  { %2821 = vmatprep.subr.bf16.mxu0 %v7240_v34  ;;  %2862 = vmatprep.subr.bf16.mxu1 %v7241_v50 }
 0x680   :  { %2822 = vmatpush1.bf16.msra.mxu0 %v7242_v61  ;;  %2863 = vmatpush1.bf16.msra.mxu1 %v7243_v21 }
 0x681   :  { %2823 = vmatprep.subr.bf16.mxu0 %v7244_v19  ;;  %2864 = vmatprep.subr.bf16.mxu1 %v7245_v29 }
 0x684   :  { %2824 = vmatpush1.bf16.msra.mxu0 %v7246_v23  ;;  %2865 = vmatpush1.bf16.msra.mxu1 %v7247_v22 }
 0x685   :  { %2825 = vmatprep.subr.bf16.mxu0 %v7248_v16  ;;  %2866 = vmatprep.subr.bf16.mxu1 %v7249_v7 }
 0x688   :  { %2826 = vmatpush1.bf16.msra.mxu0 %v7250_v8  ;;  %2867 = vmatpush1.bf16.msra.mxu1 %v7251_v12  ;;  %v7254_v12 = vld [vmem:[#allocation20_spill] sm:$0xff] }
 0x689   :  { %2893 = vmatprep.subr.bf16.mxu0 %v7252_v13  ;;  %2934 = vmatprep.subr.bf16.mxu1 %v7253_v57  ;;  %v7255_v57 = vld [vmem:[#allocation21_spill] sm:$0xff] }
 0x6fe   :  { %v2534_v56 = vpop.f32.mrb[68].mxu0  ;;  %v2575_v20 = vpop.f32.mrb[68].mxu1 }
 0x6ff   :  { %v2536_v14 = vpop.f32.mrb[69].mxu0  ;;  %v2577_v54 = vpop.f32.mrb[69].mxu1 }
 0x700   :  { %v2538_v44 = vpop.f32.mrb[70].mxu0  ;;  %v2579_v18 = vpop.f32.mrb[70].mxu1 }
 0x701   :  { %v2539_v28 = vpop.f32.mrb[71].mxu0  ;;  %v2580_v46 = vpop.f32.mrb[71].mxu1 }
 0x71e   :  { %v2616_v40 = vpop.f32.mrb[72].mxu0  ;;  %v2657_v33 = vpop.f32.mrb[72].mxu1 }
 0x71f   :  { %v2617_v5 = vadd.f32 %v2616_v40, %v2534_v56  ;;  %v2658_v53 = vadd.f32 %v2657_v33, %v2575_v20  ;;  %v2618_v55 = vpop.f32.mrb[73].mxu0  ;;  %v2659_v34 = vpop.f32.mrb[73].mxu1 }
 0x720   :  { %v2619_v50 = vadd.f32 %v2618_v55, %v2536_v14  ;;  %v2660_v61 = vadd.f32 %v2659_v34, %v2577_v54  ;;  %v2620_v21 = vpop.f32.mrb[74].mxu0  ;;  %v2661_v19 = vpop.f32.mrb[74].mxu1 }
 0x721   :  { %v2664_v29 = vadd.f32 %v2617_v5, %v5448_v62  ;;  %v2621_v23 = vpop.f32.mrb[75].mxu0  ;;  %v2662_v22 = vpop.f32.mrb[75].mxu1  ;;  %v2666_v13 = vadd.f32 %v2658_v53, %v7254_v12  ;;  %v7257_v19 = vld [vmem:[#allocation94_spill] sm:$0xff] }
 0x722   :  { %v2665_v16 = vadd.f32 %v2619_v50, %v5452_v0  ;;  %v2667_v56 = vadd.f32 %v2660_v61, %v7255_v57  ;;  %v7256_v61 = vld [vmem:[#allocation93_spill] sm:$0xff] }
 0x723   :  { %v3922_v7 = vmul.f32 -1.442695, %v2664_v29  ;;  %v3924_v20 = vmul.f32 -1.442695, %v2666_v13 }
 0x724   :  { %v3923_v8 = vmul.f32 -1.442695, %v2665_v16  ;;  %v7258_v16 = vld [vmem:[#allocation95_spill] sm:$0xff] }
 0x725   :  { %4343 = vpow2.f32 %v3922_v7 }
 0x726   :  { %4345 = vpow2.f32 %v3923_v8  ;;  %v7259_v8 = vld [vmem:[#allocation96_spill] sm:$0xff] }
 0x727   :  { %4347 = vtanh.f32 %v2667_v56 }
 0x728   :  { %4349 = vpow2.f32 %v3924_v20 }
 0x72f   :  { %v4344_v44 = vpop.eup %4343 }
 0x730   :  { %v2677_v14 = vadd.f32 1.0, %v4344_v44  ;;  %v4346_v54 = vpop.eup %4345 }
 0x731   :  { %v2678_v18 = vadd.f32 1.0, %v4346_v54  ;;  %v4348_v28 = vpop.eup %4347 }
 0x732   :  { %4351 = vrcp.f32 %v2677_v14  ;;  %v4350_v46 = vpop.eup %4349 }
 0x733   :  { %4353 = vrcp.f32 %v2678_v18  ;;  %v2679_v55 = vadd.f32 1.0, %v4350_v46 }
 0x735   :  { %4355 = vrcp.f32 %v2679_v55  ;;  %v6213_v55 = vld [vmem:[#allocation9] ss:$16 sps:$4 sm:$0xff]  }
 0x73c   :  { %v4352_v40 = vpop.eup %4351 }
 0x73d   :  { %v2688_v33 = vmul.f32 %v4352_v40, %v4348_v28  ;;  %v4354_v5 = vpop.eup %4353 }
 0x73e   :  { %v2733_v34 = vpop.f32.mrb[76].mxu0  ;;  %v2774_v50 = vpop.f32.mrb[76].mxu1  ;;  %v2687_v53 = vmul.f32 %v4354_v5, %v6022_v17 }
 0x73f   :  { %v2781_v21 = vadd.f32 %v2733_v34, %v7256_v61  ;;  %v2783_v29 = vadd.f32 %v2774_v50, %v7257_v19  ;;  %v2735_v23 = vpop.f32.mrb[77].mxu0  ;;  %v2776_v22 = vpop.f32.mrb[77].mxu1  ;;  %v6219_v19 = vld [vmem:[#allocation9 + $0x24] ss:$16 sps:$4 sm:$0xff]  }
 0x740   :  { %v2782_v7 = vadd.f32 %v2735_v23, %v7258_v16  ;;  %v2784_v13 = vadd.f32 %v2776_v22, %v7259_v8  ;;  %v2737_v56 = vpop.f32.mrb[78].mxu0  ;;  %v2778_v20 = vpop.f32.mrb[78].mxu1  ;;  %v6210_v44 = vadd.f32 %v2688_v33, %v2687_v53  ;;  %v6227_v23 = vld [vmem:[#allocation9 + $0x20] ss:$16 sps:$4 sm:$0xff]   ;;  %v6230_v22 = vld [vmem:[#allocation9 + $0x28] ss:$16 sps:$4 sm:$0xff]  }
 0x741   :  { %v3925_v14 = vmul.f32 -1.442695, %v2781_v21  ;;  %v2738_v54 = vpop.f32.mrb[79].mxu0  ;;  %v2779_v18 = vpop.f32.mrb[79].mxu1  ;;  %v3927_v46 = vmul.f32 -1.442695, %v2783_v29 }
 0x742   :  { %v3926_v28 = vmul.f32 -1.442695, %v2782_v7  ;;  %4357 = vtanh.f32 %v6210_v44  ;;  %v4356_v17 = vpop.eup %4355  ;;  %v6216_v21 = vld [vmem:[#allocation9 + $0x8] ss:$16 sps:$4 sm:$0xff]   ;;  %v6222_v29 = vld [vmem:[#allocation9 + $0x2c] ss:$16 sps:$4 sm:$0xff]  }
 0x743   :  { %4359 = vpow2.f32 %v3925_v14  ;;  %v6233_v16 = vld [vmem:[#allocation9 + $0x44] ss:$16 sps:$4 sm:$0xff]   ;;  %v6236_v7 = vld [vmem:[#allocation9 + $0x4c] ss:$16 sps:$4 sm:$0xff]   ;;  %v6239_v20 = vld [vmem:[#allocation9 + $0x40] ss:$16 sps:$4 sm:$0xff]  }
 0x744   :  { %4361 = vpow2.f32 %v3926_v28  ;;  %v6242_v14 = vld [vmem:[#allocation9 + $0x48] ss:$16 sps:$4 sm:$0xff]   ;;  %v6245_v18 = vld [vmem:[#allocation9 + $0x64] ss:$16 sps:$4 sm:$0xff]   ;;  %v6248_v28 = vld [vmem:[#allocation9 + $0x6c] ss:$16 sps:$4 sm:$0xff]  }
 0x745   :  { %4363 = vtanh.f32 %v2784_v13 }
 0x746   :  { %4365 = vpow2.f32 %v3927_v46 }
 0x74c   :  { %v4358_v40 = vpop.eup %4357 }
 0x74d   :  { %v4360_v5 = vpop.eup %4359  ;;  %v2691_v34 = vmul.f32 %v4358_v40, %v4356_v17 }
 0x74e   :  { %v2794_v50 = vadd.f32 1.0, %v4360_v5  ;;  %v4362_v61 = vpop.eup %4361  ;;  %v6252_v5 = vld [vmem:[#allocation9 + $0x60] ss:$16 sps:$4 sm:$0xff]  }
 0x74f   :  { %v2810_v33 = vpack.c.bf16 %v2691_v34, %v2691_v34  ;;  %v2795_v53 = vadd.f32 1.0, %v4362_v61  ;;  %v4364_v8 = vpop.eup %4363  ;;  %v6255_v34 = vld [vmem:[#allocation9 + $0x68] ss:$16 sps:$4 sm:$0xff]   ;;  %v6260_v61 = vld [vmem:[#allocation9 + $0x84] ss:$16 sps:$4 sm:$0xff]  }
 0x750   :  { %4367 = vrcp.f32 %v2794_v50  ;;  %v4366_v13 = vpop.eup %4365 }
 0x751   :  { %2844 = vmatmul.mubr.bf16.vlgmr.msra.gmra.mrb[80].mxu0 %v2810_v33  ;;  %2885 = vmatmul.mubr.bf16.vlgmr.msra.gmra.mrb[80].mxu1 %v2810_v33  ;;  %4369 = vrcp.f32 %v2795_v53  ;;  %v2796_v46 = vadd.f32 1.0, %v4366_v13  ;;  %v6263_v33 = vld [vmem:[#allocation9 + $0x8c] ss:$16 sps:$4 sm:$0xff]   ;;  %v6270_v53 = vld [vmem:[#allocation9 + $0x88] ss:$16 sps:$4 sm:$0xff]  }
 0x752   :  { %2894 = vmatpush1.bf16.msra.mxu0 %v6213_v55  ;;  %2935 = vmatpush1.bf16.msra.mxu1 %v6216_v21  ;;  %7261 = vst [vmem:[#allocation35_spill] sm:$0xff] %v6270_v53  ;;  %v6276_v13 = vld [vmem:[#allocation9 + $0xac] ss:$16 sps:$4 sm:$0xff]  }
 0x753   :  { %2895 = vmatprep.subr.bf16.mxu0 %v6219_v19  ;;  %2936 = vmatprep.subr.bf16.mxu1 %v6222_v29  ;;  %4371 = vrcp.f32 %v2796_v46  ;;  %7263 = vst [vmem:[#allocation37_spill] sm:$0xff] %v6276_v13  ;;  %v6288_v46 = vld [vmem:[#allocation9 + $0xcc] ss:$16 sps:$4 sm:$0xff]  }
 0x754   :  { %2925 = vmatprep.mubr.bf16.mxu0 %v6936_v35  ;;  %2966 = vmatprep.mubr.bf16.mxu1 %v6936_v35  ;;  %7267 = vst [vmem:[#allocation41_spill] sm:$0xff] %v6288_v46 }
 0x756   :  { %2896 = vmatpush1.bf16.msra.mxu0 %v6227_v23  ;;  %2937 = vmatpush1.bf16.msra.mxu1 %v6230_v22 }
 0x757   :  { %2897 = vmatprep.subr.bf16.mxu0 %v6233_v16  ;;  %2938 = vmatprep.subr.bf16.mxu1 %v6236_v7 }
 0x75a   :  { %v4368_v56 = vpop.eup %4367  ;;  %2898 = vmatpush1.bf16.msra.mxu0 %v6239_v20  ;;  %2939 = vmatpush1.bf16.msra.mxu1 %v6242_v14 }
 0x75b   :  { %v2805_v54 = vmul.f32 %v4368_v56, %v4364_v8  ;;  %2899 = vmatprep.subr.bf16.mxu0 %v6245_v18  ;;  %2940 = vmatprep.subr.bf16.mxu1 %v6248_v28  ;;  %v4370_v17 = vpop.eup %4369  ;;  %v6273_v8 = vld [vmem:[#allocation9 + $0xa4] ss:$16 sps:$4 sm:$0xff]   ;;  %v6279_v56 = vld [vmem:[#allocation9 + $0xa0] ss:$16 sps:$4 sm:$0xff]  }
 0x75c   :  { %v2804_v40 = vmul.f32 %v4370_v17, %v6042_v6  ;;  %v6267_v6 = vld [vmem:[#allocation9 + $0x80] ss:$16 sps:$4 sm:$0xff]   ;;  %7262 = vst [vmem:[#allocation36_spill] sm:$0xff] %v6273_v8  ;;  %7264 = vst [vmem:[#allocation38_spill] sm:$0xff] %v6279_v56  ;;  %v6285_v17 = vld [vmem:[#allocation9 + $0xc4] ss:$16 sps:$4 sm:$0xff]  }
 0x75d   :  { %7260 = vst [vmem:[#allocation34_spill] sm:$0xff] %v6267_v6  ;;  %7266 = vst [vmem:[#allocation40_spill] sm:$0xff] %v6285_v17 }
 0x75e   :  { %2900 = vmatpush1.bf16.msra.mxu0 %v6252_v5  ;;  %2941 = vmatpush1.bf16.msra.mxu1 %v6255_v34  ;;  %v6258_v50 = vadd.f32 %v2805_v54, %v2804_v40  ;;  %v6282_v54 = vld [vmem:[#allocation9 + $0xa8] ss:$16 sps:$4 sm:$0xff]   ;;  %v4372_v40 = vpop.eup %4371 }
 0x75f   :  { %2901 = vmatprep.subr.bf16.mxu0 %v6260_v61  ;;  %2942 = vmatprep.subr.bf16.mxu1 %v6263_v33  ;;  %7265 = vst [vmem:[#allocation39_spill] sm:$0xff] %v6282_v54 }
 0x760   :  { %4373 = vtanh.f32 %v6258_v50 }
 0x762   :  { %2902 = vmatpush1.bf16.msra.mxu0 %v6267_v6  ;;  %2943 = vmatpush1.bf16.msra.mxu1 %v6270_v53  ;;  %v6297_v53 = vld [vmem:[#allocation9 + $0xe4] ss:$16 sps:$4 sm:$0xff]   ;;  %v6306_v6 = vld [vmem:[#allocation9 + $0xe8] ss:$16 sps:$4 sm:$0xff]  }
 0x763   :  { %2903 = vmatprep.subr.bf16.mxu0 %v6273_v8  ;;  %2944 = vmatprep.subr.bf16.mxu1 %v6276_v13  ;;  %v6291_v8 = vld [vmem:[#allocation9 + $0xc0] ss:$16 sps:$4 sm:$0xff]   ;;  %v6294_v13 = vld [vmem:[#allocation9 + $0xc8] ss:$16 sps:$4 sm:$0xff]  }
 0x764   :  { %7268 = vst [vmem:[#allocation42_spill] sm:$0xff] %v6291_v8 }
 0x766   :  { %2904 = vmatpush1.bf16.msra.mxu0 %v6279_v56  ;;  %2945 = vmatpush1.bf16.msra.mxu1 %v6282_v54  ;;  %v6300_v54 = vld [vmem:[#allocation9 + $0xec] ss:$16 sps:$4 sm:$0xff]  }
 0x767   :  { %2905 = vmatprep.subr.bf16.mxu0 %v6285_v17  ;;  %2946 = vmatprep.subr.bf16.mxu1 %v6288_v46  ;;  %v6303_v46 = vld [vmem:[#allocation9 + $0xe0] ss:$16 sps:$4 sm:$0xff]  }
 0x76a   :  { %2906 = vmatpush1.bf16.msra.mxu0 %v6291_v8  ;;  %2947 = vmatpush1.bf16.msra.mxu1 %v6294_v13  ;;  %v4374_v56 = vpop.eup %4373 }
 0x76b   :  { %2907 = vmatprep.subr.bf16.mxu0 %v6297_v53  ;;  %2948 = vmatprep.subr.bf16.mxu1 %v6300_v54  ;;  %v2808_v17 = vmul.f32 %v4374_v56, %v4372_v40  ;;  %v6343_v56 = vld [vmem:[#allocation11 + $0x4] ss:$16 sps:$4 sm:$0xff]   ;;  %v6349_v40 = vld [vmem:[#allocation11] ss:$16 sps:$4 sm:$0xff]  }
 0x76c   :  { %7269 = vst [vmem:[#allocation43_spill] sm:$0xff] %v6343_v56  ;;  %7271 = vst [vmem:[#allocation45_spill] sm:$0xff] %v6349_v40 }
 0x76d   :  { %v2809_v8 = vpack.c.bf16 %v2808_v17, %v2808_v17  ;;  %v6346_v17 = vld [vmem:[#allocation11 + $0xc] ss:$16 sps:$4 sm:$0xff]  }
 0x76e   :  { %2908 = vmatpush1.bf16.msra.mxu0 %v6303_v46  ;;  %2949 = vmatpush1.bf16.msra.mxu1 %v6306_v6  ;;  %7270 = vst [vmem:[#allocation44_spill] sm:$0xff] %v6346_v17 }
 0x76f   :  { %3010 = vmatprep.subr.bf16.mxu0 %v6063_v37  ;;  %3051 = vmatprep.subr.bf16.mxu1 %v6066_v38 }
 0x771   :  { %2926 = vmatmul.mubr.bf16.vlgmr.msra.gmra.mrb[84].mxu0 %v2809_v8  ;;  %2967 = vmatmul.mubr.bf16.vlgmr.msra.gmra.mrb[84].mxu1 %v2809_v8 }
 0x772   :  { %3011 = vmatpush1.bf16.msra.mxu0 %v6071_v42  ;;  %3052 = vmatpush1.bf16.msra.mxu1 %v6074_v43 }
 0x773   :  { %3012 = vmatprep.subr.bf16.mxu0 %v6077_v48  ;;  %3053 = vmatprep.subr.bf16.mxu1 %v6080_v49 }
 0x774   :  { %3042 = vmatprep.mubr.bf16.mxu0 %v6936_v35  ;;  %3083 = vmatprep.mubr.bf16.mxu1 %v6936_v35 }
 0x776   :  { %3013 = vmatpush1.bf16.msra.mxu0 %v6085_v27  ;;  %3054 = vmatpush1.bf16.msra.mxu1 %v6088_v51 }
 0x777   :  { %3014 = vmatprep.subr.bf16.mxu0 %v6091_v52  ;;  %3055 = vmatprep.subr.bf16.mxu1 %v6094_v25 }
 0x77a   :  { %3015 = vmatpush1.bf16.msra.mxu0 %v6097_v59  ;;  %3056 = vmatpush1.bf16.msra.mxu1 %v6100_v60 }
 0x77b   :  { %3016 = vmatprep.subr.bf16.mxu0 %v6103_v63  ;;  %3057 = vmatprep.subr.bf16.mxu1 %v6106_v1 }
 0x77e   :  { %3017 = vmatpush1.bf16.msra.mxu0 %v6109_v3  ;;  %3058 = vmatpush1.bf16.msra.mxu1 %v6112_v4 }
 0x77f   :  { %3018 = vmatprep.subr.bf16.mxu0 %v6115_v9  ;;  %3059 = vmatprep.subr.bf16.mxu1 %v6118_v10 }
 0x782   :  { %3019 = vmatpush1.bf16.msra.mxu0 %v6121_v36  ;;  %3060 = vmatpush1.bf16.msra.mxu1 %v6124_v39 }
 0x783   :  { %3020 = vmatprep.subr.bf16.mxu0 %v6127_v47  ;;  %3061 = vmatprep.subr.bf16.mxu1 %v6130_v45 }
 0x786   :  { %3021 = vmatpush1.bf16.msra.mxu0 %v6133_v31  ;;  %3062 = vmatpush1.bf16.msra.mxu1 %v6136_v11 }
 0x787   :  { %3022 = vmatprep.subr.bf16.mxu0 %v6139_v30  ;;  %3063 = vmatprep.subr.bf16.mxu1 %v6142_v24 }
 0x78a   :  { %3023 = vmatpush1.bf16.msra.mxu0 %v6145_v58  ;;  %3064 = vmatpush1.bf16.msra.mxu1 %v6148_v41 }
 0x78b   :  { %3024 = vmatprep.subr.bf16.mxu0 %v6151_v15  ;;  %3065 = vmatprep.subr.bf16.mxu1 %v6154_v2  ;;  %v6352_v15 = vld [vmem:[#allocation11 + $0x8] ss:$16 sps:$4 sm:$0xff]  }
 0x78c   :  { %7272 = vst [vmem:[#allocation76_spill] sm:$0xff] %v6352_v15 }
 0x78e   :  { %3025 = vmatpush1.bf16.msra.mxu0 %v6157_v26  ;;  %3066 = vmatpush1.bf16.msra.mxu1 %v6160_v32  ;;  %v6355_v26 = vld [vmem:[#allocation11 + $0x24] ss:$16 sps:$4 sm:$0xff]   ;;  %v6358_v32 = vld [vmem:[#allocation11 + $0x2c] ss:$16 sps:$4 sm:$0xff]  }
 0x78f   :  { %3122 = vmatprep.subr.bf16.mxu0 %v6343_v56  ;;  %3163 = vmatprep.subr.bf16.mxu1 %v6346_v17  ;;  %7273 = vst [vmem:[#allocation77_spill] sm:$0xff] %v6355_v26  ;;  %7274 = vst [vmem:[#allocation78_spill] sm:$0xff] %v6358_v32  ;;  %v6378_v17 = vld [vmem:[#allocation11 + $0x48] ss:$16 sps:$4 sm:$0xff]  }
 0x790   :  { %7280 = vst [vmem:[#allocation49_spill] sm:$0xff] %v6378_v17 }
 0x791   :  { %3043 = vmatmul.mubr.bf16.vlgmr.msra.gmra.mrb[88].mxu0 %v2809_v8  ;;  %3084 = vmatmul.mubr.bf16.vlgmr.msra.gmra.mrb[88].mxu1 %v2809_v8  ;;  %v6363_v8 = vld [vmem:[#allocation11 + $0x20] ss:$16 sps:$4 sm:$0xff]  }
 0x792   :  { %3123 = vmatpush1.bf16.msra.mxu0 %v6349_v40  ;;  %3164 = vmatpush1.bf16.msra.mxu1 %v6352_v15  ;;  %7275 = vst [vmem:[#allocation79_spill] sm:$0xff] %v6363_v8  ;;  %v6366_v40 = vld [vmem:[#allocation11 + $0x28] ss:$16 sps:$4 sm:$0xff]   ;;  %v6369_v15 = vld [vmem:[#allocation11 + $0x44] ss:$16 sps:$4 sm:$0xff]  }
 0x793   :  { %3124 = vmatprep.subr.bf16.mxu0 %v6355_v26  ;;  %3165 = vmatprep.subr.bf16.mxu1 %v6358_v32  ;;  %7276 = vst [vmem:[#allocation80_spill] sm:$0xff] %v6366_v40  ;;  %7277 = vst [vmem:[#allocation46_spill] sm:$0xff] %v6369_v15  ;;  %v6372_v26 = vld [vmem:[#allocation11 + $0x4c] ss:$16 sps:$4 sm:$0xff]   ;;  %v6375_v32 = vld [vmem:[#allocation11 + $0x40] ss:$16 sps:$4 sm:$0xff]  }
 0x794   :  { %3154 = vmatprep.mubr.bf16.mxu0 %v6936_v35  ;;  %3195 = vmatprep.mubr.bf16.mxu1 %v6936_v35  ;;  %7278 = vst [vmem:[#allocation47_spill] sm:$0xff] %v6372_v26  ;;  %7279 = vst [vmem:[#allocation48_spill] sm:$0xff] %v6375_v32 }
 0x796   :  { %3125 = vmatpush1.bf16.msra.mxu0 %v6363_v8  ;;  %3166 = vmatpush1.bf16.msra.mxu1 %v6366_v40  ;;  %v6381_v8 = vld [vmem:[#allocation11 + $0x64] ss:$16 sps:$4 sm:$0xff]   ;;  %v6384_v40 = vld [vmem:[#allocation11 + $0x6c] ss:$16 sps:$4 sm:$0xff]  }
 0x797   :  { %3126 = vmatprep.subr.bf16.mxu0 %v6369_v15  ;;  %3167 = vmatprep.subr.bf16.mxu1 %v6372_v26  ;;  %7281 = vst [vmem:[#allocation89_spill] sm:$0xff] %v6381_v8  ;;  %7282 = vst [vmem:[#allocation90_spill] sm:$0xff] %v6384_v40  ;;  %v6387_v15 = vld [vmem:[#allocation11 + $0x60] ss:$16 sps:$4 sm:$0xff]   ;;  %v6390_v26 = vld [vmem:[#allocation11 + $0x68] ss:$16 sps:$4 sm:$0xff]  }
 0x798   :  { %7283 = vst [vmem:[#allocation91_spill] sm:$0xff] %v6387_v15  ;;  %7284 = vst [vmem:[#allocation92_spill] sm:$0xff] %v6390_v26 }
 0x79a   :  { %3127 = vmatpush1.bf16.msra.mxu0 %v6375_v32  ;;  %3168 = vmatpush1.bf16.msra.mxu1 %v6378_v17  ;;  %v6393_v32 = vld [vmem:[#allocation11 + $0x84] ss:$16 sps:$4 sm:$0xff]   ;;  %v6396_v17 = vld [vmem:[#allocation11 + $0x8c] ss:$16 sps:$4 sm:$0xff]  }
 0x79b   :  { %3128 = vmatprep.subr.bf16.mxu0 %v6381_v8  ;;  %3169 = vmatprep.subr.bf16.mxu1 %v6384_v40  ;;  %7285 = vst [vmem:[#allocation50_spill] sm:$0xff] %v6393_v32  ;;  %7286 = vst [vmem:[#allocation51_spill] sm:$0xff] %v6396_v17  ;;  %v6399_v8 = vld [vmem:[#allocation11 + $0x80] ss:$16 sps:$4 sm:$0xff]   ;;  %v6402_v40 = vld [vmem:[#allocation11 + $0x88] ss:$16 sps:$4 sm:$0xff]  }
 0x79c   :  { %7287 = vst [vmem:[#allocation52_spill] sm:$0xff] %v6399_v8  ;;  %7288 = vst [vmem:[#allocation53_spill] sm:$0xff] %v6402_v40 }
 0x79e   :  { %3129 = vmatpush1.bf16.msra.mxu0 %v6387_v15  ;;  %3170 = vmatpush1.bf16.msra.mxu1 %v6390_v26  ;;  %v6405_v15 = vld [vmem:[#allocation11 + $0xa4] ss:$16 sps:$4 sm:$0xff]   ;;  %v6408_v26 = vld [vmem:[#allocation11 + $0xac] ss:$16 sps:$4 sm:$0xff]  }
 0x79f   :  { %3130 = vmatprep.subr.bf16.mxu0 %v6393_v32  ;;  %3171 = vmatprep.subr.bf16.mxu1 %v6396_v17  ;;  %7289 = vst [vmem:[#allocation54_spill] sm:$0xff] %v6405_v15  ;;  %7290 = vst [vmem:[#allocation55_spill] sm:$0xff] %v6408_v26  ;;  %v6411_v32 = vld [vmem:[#allocation11 + $0xa0] ss:$16 sps:$4 sm:$0xff]   ;;  %v6414_v17 = vld [vmem:[#allocation11 + $0xa8] ss:$16 sps:$4 sm:$0xff]  }
 0x7a0   :  { %7291 = vst [vmem:[#allocation56_spill] sm:$0xff] %v6411_v32  ;;  %7292 = vst [vmem:[#allocation57_spill] sm:$0xff] %v6414_v17 }
 0x7a2   :  { %3131 = vmatpush1.bf16.msra.mxu0 %v6399_v8  ;;  %3172 = vmatpush1.bf16.msra.mxu1 %v6402_v40  ;;  %v6417_v8 = vld [vmem:[#allocation11 + $0xc4] ss:$16 sps:$4 sm:$0xff]   ;;  %v6420_v40 = vld [vmem:[#allocation11 + $0xcc] ss:$16 sps:$4 sm:$0xff]  }
 0x7a3   :  { %3132 = vmatprep.subr.bf16.mxu0 %v6405_v15  ;;  %3173 = vmatprep.subr.bf16.mxu1 %v6408_v26  ;;  %7293 = vst [vmem:[#allocation58_spill] sm:$0xff] %v6417_v8  ;;  %7294 = vst [vmem:[#allocation59_spill] sm:$0xff] %v6420_v40  ;;  %v6423_v15 = vld [vmem:[#allocation11 + $0xc0] ss:$16 sps:$4 sm:$0xff]   ;;  %v6426_v26 = vld [vmem:[#allocation11 + $0xc8] ss:$16 sps:$4 sm:$0xff]  }
 0x7a4   :  { %7295 = vst [vmem:[#allocation60_spill] sm:$0xff] %v6423_v15  ;;  %7296 = vst [vmem:[#allocation61_spill] sm:$0xff] %v6426_v26 }
 0x7a6   :  { %3133 = vmatpush1.bf16.msra.mxu0 %v6411_v32  ;;  %3174 = vmatpush1.bf16.msra.mxu1 %v6414_v17  ;;  %v6429_v32 = vld [vmem:[#allocation11 + $0xe4] ss:$16 sps:$4 sm:$0xff]   ;;  %v6432_v17 = vld [vmem:[#allocation11 + $0xec] ss:$16 sps:$4 sm:$0xff]  }
 0x7a7   :  { %3134 = vmatprep.subr.bf16.mxu0 %v6417_v8  ;;  %3175 = vmatprep.subr.bf16.mxu1 %v6420_v40  ;;  %7297 = vst [vmem:[#allocation62_spill] sm:$0xff] %v6429_v32  ;;  %7298 = vst [vmem:[#allocation63_spill] sm:$0xff] %v6432_v17  ;;  %v6435_v8 = vld [vmem:[#allocation11 + $0xe0] ss:$16 sps:$4 sm:$0xff]   ;;  %v6438_v40 = vld [vmem:[#allocation11 + $0xe8] ss:$16 sps:$4 sm:$0xff]  }
 0x7a8   :  { %7299 = vst [vmem:[#allocation64_spill] sm:$0xff] %v6435_v8  ;;  %7300 = vst [vmem:[#allocation65_spill] sm:$0xff] %v6438_v40 }
 0x7aa   :  { %3135 = vmatpush1.bf16.msra.mxu0 %v6423_v15  ;;  %3176 = vmatpush1.bf16.msra.mxu1 %v6426_v26  ;;  %v6441_v15 = vld [vmem:[#allocation9 + $0x4] ss:$16 sps:$4 sm:$0xff]   ;;  %v6444_v26 = vld [vmem:[#allocation9 + $0xc] ss:$16 sps:$4 sm:$0xff]  }
 0x7ab   :  { %3136 = vmatprep.subr.bf16.mxu0 %v6429_v32  ;;  %3177 = vmatprep.subr.bf16.mxu1 %v6432_v17  ;;  %7301 = vst [vmem:[#allocation66_spill] sm:$0xff] %v6441_v15  ;;  %7302 = vst [vmem:[#allocation67_spill] sm:$0xff] %v6444_v26 }
 0x7ae   :  { %3137 = vmatpush1.bf16.msra.mxu0 %v6435_v8  ;;  %3178 = vmatpush1.bf16.msra.mxu1 %v6438_v40 }
 0x7af   :  { %3204 = vmatprep.subr.bf16.mxu0 %v6441_v15  ;;  %3245 = vmatprep.subr.bf16.mxu1 %v6444_v26 }
 0x824   :  { %v2845_v32 = vpop.f32.mrb[80].mxu0  ;;  %v2886_v56 = vpop.f32.mrb[80].mxu1 }
 0x825   :  { %v2847_v2 = vpop.f32.mrb[81].mxu0  ;;  %v2888_v17 = vpop.f32.mrb[81].mxu1 }
 0x826   :  { %v2849_v41 = vpop.f32.mrb[82].mxu0  ;;  %v2890_v58 = vpop.f32.mrb[82].mxu1 }
 0x827   :  { %v2850_v24 = vpop.f32.mrb[83].mxu0  ;;  %v2891_v8 = vpop.f32.mrb[83].mxu1 }
 0x844   :  { %v2927_v30 = vpop.f32.mrb[84].mxu0  ;;  %v2968_v11 = vpop.f32.mrb[84].mxu1 }
 0x845   :  { %v2928_v31 = vadd.f32 %v2927_v30, %v2845_v32  ;;  %v2969_v40 = vadd.f32 %v2968_v11, %v2886_v56  ;;  %v2929_v45 = vpop.f32.mrb[85].mxu0  ;;  %v2970_v47 = vpop.f32.mrb[85].mxu1 }
 0x846   :  { %v2930_v39 = vadd.f32 %v2929_v45, %v2847_v2  ;;  %v2971_v15 = vadd.f32 %v2970_v47, %v2888_v17  ;;  %v2931_v36 = vpop.f32.mrb[86].mxu0  ;;  %v2972_v10 = vpop.f32.mrb[86].mxu1 }
 0x847   :  { %v2975_v26 = vadd.f32 %v2928_v31, %v5448_v62  ;;  %v2932_v9 = vpop.f32.mrb[87].mxu0  ;;  %v2973_v4 = vpop.f32.mrb[87].mxu1  ;;  %v2977_v24 = vadd.f32 %v2969_v40, %v7254_v12  ;;  %v7304_v40 = vld [vmem:[#allocation98_spill] sm:$0xff] }
 0x848   :  { %v2976_v3 = vadd.f32 %v2930_v39, %v5452_v0  ;;  %v2978_v11 = vadd.f32 %v2971_v15, %v7255_v57  ;;  %v7303_v15 = vld [vmem:[#allocation97_spill] sm:$0xff] }
 0x849   :  { %v3928_v41 = vmul.f32 -1.442695, %v2975_v26  ;;  %v3930_v30 = vmul.f32 -1.442695, %v2977_v24  ;;  %v7305_v24 = vld [vmem:[#allocation99_spill] sm:$0xff] }
 0x84a   :  { %v3929_v58 = vmul.f32 -1.442695, %v2976_v3 }
 0x84b   :  { %4375 = vpow2.f32 %v3928_v41 }
 0x84c   :  { %4377 = vpow2.f32 %v3929_v58 }
 0x84d   :  { %4379 = vtanh.f32 %v2978_v11 }
 0x84e   :  { %4381 = vpow2.f32 %v3930_v30  ;;  %v7306_v30 = vld [vmem:[#allocation100_spill] sm:$0xff] }
 0x855   :  { %v4376_v32 = vpop.eup %4375 }
 0x856   :  { %v2988_v45 = vadd.f32 1.0, %v4376_v32  ;;  %v4378_v36 = vpop.eup %4377 }
 0x857   :  { %v2989_v10 = vadd.f32 1.0, %v4378_v36  ;;  %v4380_v4 = vpop.eup %4379 }
 0x858   :  { %4383 = vrcp.f32 %v2988_v45  ;;  %v4382_v9 = vpop.eup %4381 }
 0x859   :  { %4385 = vrcp.f32 %v2989_v10  ;;  %v2990_v31 = vadd.f32 1.0, %v4382_v9 }
 0x85b   :  { %4387 = vrcp.f32 %v2990_v31 }
 0x862   :  { %v4384_v39 = vpop.eup %4383 }
 0x863   :  { %v2999_v47 = vmul.f32 %v4384_v39, %v4380_v4  ;;  %v4386_v3 = vpop.eup %4385 }
 0x864   :  { %v3044_v2 = vpop.f32.mrb[88].mxu0  ;;  %v3085_v26 = vpop.f32.mrb[88].mxu1  ;;  %v2998_v56 = vmul.f32 %v4386_v3, %v6210_v44 }
 0x865   :  { %v3092_v17 = vadd.f32 %v3044_v2, %v7303_v15  ;;  %v3094_v8 = vadd.f32 %v3085_v26, %v7304_v40  ;;  %v3046_v41 = vpop.f32.mrb[89].mxu0  ;;  %v3087_v58 = vpop.f32.mrb[89].mxu1 }
 0x866   :  { %v3093_v11 = vadd.f32 %v3046_v41, %v7305_v24  ;;  %v3095_v32 = vadd.f32 %v3087_v58, %v7306_v30  ;;  %v3048_v45 = vpop.f32.mrb[90].mxu0  ;;  %v3089_v36 = vpop.f32.mrb[90].mxu1  ;;  %v6456_v10 = vadd.f32 %v2999_v47, %v2998_v56 }
 0x867   :  { %v3931_v4 = vmul.f32 -1.442695, %v3092_v17  ;;  %v3049_v9 = vpop.f32.mrb[91].mxu0  ;;  %v3090_v39 = vpop.f32.mrb[91].mxu1  ;;  %v3933_v3 = vmul.f32 -1.442695, %v3094_v8 }
 0x868   :  { %v3932_v57 = vmul.f32 -1.442695, %v3093_v11  ;;  %4389 = vtanh.f32 %v6456_v10  ;;  %v4388_v44 = vpop.eup %4387  ;;  %v7308_v45 = vld [vmem:[#allocation35_spill] sm:$0xff]  ;;  %v7309_v36 = vld [vmem:[#allocation36_spill] sm:$0xff] }
 0x869   :  { %4391 = vpow2.f32 %v3931_v4  ;;  %v7311_v4 = vld [vmem:[#allocation38_spill] sm:$0xff]  ;;  %v7312_v9 = vld [vmem:[#allocation39_spill] sm:$0xff]  ;;  %v7313_v39 = vld [vmem:[#allocation40_spill] sm:$0xff] }
 0x86a   :  { %4393 = vpow2.f32 %v3932_v57 }
 0x86b   :  { %4395 = vtanh.f32 %v3095_v32  ;;  %v7307_v32 = vld [vmem:[#allocation34_spill] sm:$0xff] }
 0x86c   :  { %4397 = vpow2.f32 %v3933_v3 }
 0x872   :  { %v4390_v2 = vpop.eup %4389 }
 0x873   :  { %v4392_v26 = vpop.eup %4391  ;;  %v3002_v15 = vmul.f32 %v4390_v2, %v4388_v44  ;;  %v7314_v44 = vld [vmem:[#allocation41_spill] sm:$0xff]  ;;  %v7315_v2 = vld [vmem:[#allocation42_spill] sm:$0xff] }
 0x874   :  { %v3105_v40 = vadd.f32 1.0, %v4392_v26  ;;  %v4394_v41 = vpop.eup %4393 }
 0x875   :  { %v3121_v47 = vpack.c.bf16 %v3002_v15, %v3002_v15  ;;  %v3106_v56 = vadd.f32 1.0, %v4394_v41  ;;  %v4396_v57 = vpop.eup %4395  ;;  %v7330_v41 = vld [vmem:[#allocation30_spill] sm:$0xff] }
 0x876   :  { %4399 = vrcp.f32 %v3105_v40  ;;  %v4398_v31 = vpop.eup %4397 }
 0x877   :  { %3155 = vmatmul.mubr.bf16.vlgmr.msra.gmra.mrb[92].mxu0 %v3121_v47  ;;  %3196 = vmatmul.mubr.bf16.vlgmr.msra.gmra.mrb[92].mxu1 %v3121_v47  ;;  %4401 = vrcp.f32 %v3106_v56  ;;  %v3107_v24 = vadd.f32 1.0, %v4398_v31  ;;  %v7331_v47 = vld [vmem:[#allocation31_spill] sm:$0xff]  ;;  %v7332_v56 = vld [vmem:[#allocation32_spill] sm:$0xff] }
 0x878   :  { %3205 = vmatpush1.bf16.msra.mxu0 %v6213_v55  ;;  %3246 = vmatpush1.bf16.msra.mxu1 %v6216_v21  ;;  %v7334_v31 = vld [vmem:[#allocation43_spill] sm:$0xff] }
 0x879   :  { %3206 = vmatprep.subr.bf16.mxu0 %v6219_v19  ;;  %3247 = vmatprep.subr.bf16.mxu1 %v6222_v29  ;;  %4403 = vrcp.f32 %v3107_v24  ;;  %v7338_v24 = vld [vmem:[#allocation77_spill] sm:$0xff] }
 0x87a   :  { %3236 = vmatprep.mubr.bf16.mxu0 %v6936_v35  ;;  %3277 = vmatprep.mubr.bf16.mxu1 %v6936_v35 }
 0x87c   :  { %3207 = vmatpush1.bf16.msra.mxu0 %v6227_v23  ;;  %3248 = vmatpush1.bf16.msra.mxu1 %v6230_v22 }
 0x87d   :  { %3208 = vmatprep.subr.bf16.mxu0 %v6233_v16  ;;  %3249 = vmatprep.subr.bf16.mxu1 %v6236_v7 }
 0x880   :  { %v4400_v17 = vpop.eup %4399  ;;  %3209 = vmatpush1.bf16.msra.mxu0 %v6239_v20  ;;  %3250 = vmatpush1.bf16.msra.mxu1 %v6242_v14 }
 0x881   :  { %v3116_v8 = vmul.f32 %v4400_v17, %v4396_v57  ;;  %3210 = vmatprep.subr.bf16.mxu0 %v6245_v18  ;;  %3251 = vmatprep.subr.bf16.mxu1 %v6248_v28  ;;  %v4402_v58 = vpop.eup %4401  ;;  %v7333_v57 = vld [vmem:[#allocation33_spill] sm:$0xff]  ;;  %v7335_v17 = vld [vmem:[#allocation44_spill] sm:$0xff] }
 0x882   :  { %v3115_v11 = vmul.f32 %v4402_v58, %v6258_v50  ;;  %v7310_v50 = vld [vmem:[#allocation37_spill] sm:$0xff]  ;;  %v7337_v58 = vld [vmem:[#allocation76_spill] sm:$0xff] }
 0x883   :  { %v4404_v3 = vpop.eup %4403 }
 0x884   :  { %3211 = vmatpush1.bf16.msra.mxu0 %v6252_v5  ;;  %3252 = vmatpush1.bf16.msra.mxu1 %v6255_v34  ;;  %v6476_v30 = vadd.f32 %v3116_v8, %v3115_v11  ;;  %v7336_v8 = vld [vmem:[#allocation45_spill] sm:$0xff]  ;;  %v7339_v11 = vld [vmem:[#allocation78_spill] sm:$0xff] }
 0x885   :  { %3212 = vmatprep.subr.bf16.mxu0 %v6260_v61  ;;  %3253 = vmatprep.subr.bf16.mxu1 %v6263_v33 }
 0x886   :  { %4405 = vtanh.f32 %v6476_v30 }
 0x888   :  { %3213 = vmatpush1.bf16.msra.mxu0 %v7307_v32  ;;  %3254 = vmatpush1.bf16.msra.mxu1 %v7308_v45 }
 0x889   :  { %3214 = vmatprep.subr.bf16.mxu0 %v7309_v36  ;;  %3255 = vmatprep.subr.bf16.mxu1 %v7310_v50 }
 0x88c   :  { %3215 = vmatpush1.bf16.msra.mxu0 %v7311_v4  ;;  %3256 = vmatpush1.bf16.msra.mxu1 %v7312_v9 }
 0x88d   :  { %3216 = vmatprep.subr.bf16.mxu0 %v7313_v39  ;;  %3257 = vmatprep.subr.bf16.mxu1 %v7314_v44 }
 0x890   :  { %3217 = vmatpush1.bf16.msra.mxu0 %v7315_v2  ;;  %3258 = vmatpush1.bf16.msra.mxu1 %v6294_v13  ;;  %v4406_v26 = vpop.eup %4405 }
 0x891   :  { %3218 = vmatprep.subr.bf16.mxu0 %v6297_v53  ;;  %3259 = vmatprep.subr.bf16.mxu1 %v6300_v54  ;;  %v3119_v15 = vmul.f32 %v4406_v26, %v4404_v3  ;;  %v7340_v3 = vld [vmem:[#allocation79_spill] sm:$0xff]  ;;  %v7341_v26 = vld [vmem:[#allocation80_spill] sm:$0xff] }
 0x893   :  { %v3120_v40 = vpack.c.bf16 %v3119_v15, %v3119_v15  ;;  %v7342_v15 = vld [vmem:[#allocation46_spill] sm:$0xff] }
 0x894   :  { %3219 = vmatpush1.bf16.msra.mxu0 %v6303_v46  ;;  %3260 = vmatpush1.bf16.msra.mxu1 %v6306_v6 }
 0x895   :  { %3321 = vmatprep.subr.bf16.mxu0 %v6063_v37  ;;  %3362 = vmatprep.subr.bf16.mxu1 %v6066_v38  ;;  %v7316_v37 = vld [vmem:[#allocation83_spill] sm:$0xff]  ;;  %v7317_v38 = vld [vmem:[#allocation84_spill] sm:$0xff] }
 0x897   :  { %3237 = vmatmul.mubr.bf16.vlgmr.msra.gmra.mrb[96].mxu0 %v3120_v40  ;;  %3278 = vmatmul.mubr.bf16.vlgmr.msra.gmra.mrb[96].mxu1 %v3120_v40 }
 0x898   :  { %3322 = vmatpush1.bf16.msra.mxu0 %v6071_v42  ;;  %3363 = vmatpush1.bf16.msra.mxu1 %v6074_v43  ;;  %v7318_v42 = vld [vmem:[#allocation85_spill] sm:$0xff]  ;;  %v7319_v43 = vld [vmem:[#allocation86_spill] sm:$0xff] }
 0x899   :  { %3323 = vmatprep.subr.bf16.mxu0 %v6077_v48  ;;  %3364 = vmatprep.subr.bf16.mxu1 %v6080_v49  ;;  %v7320_v48 = vld [vmem:[#allocation87_spill] sm:$0xff]  ;;  %v7321_v49 = vld [vmem:[#allocation88_spill] sm:$0xff] }
 0x89a   :  { %3353 = vmatprep.mubr.bf16.mxu0 %v6936_v35  ;;  %3394 = vmatprep.mubr.bf16.mxu1 %v6936_v35 }
 0x89c   :  { %3324 = vmatpush1.bf16.msra.mxu0 %v6085_v27  ;;  %3365 = vmatpush1.bf16.msra.mxu1 %v6088_v51  ;;  %v7322_v27 = vld [vmem:[#allocation22_spill] sm:$0xff]  ;;  %v7323_v51 = vld [vmem:[#allocation23_spill] sm:$0xff] }
 0x89d   :  { %3325 = vmatprep.subr.bf16.mxu0 %v6091_v52  ;;  %3366 = vmatprep.subr.bf16.mxu1 %v6094_v25  ;;  %v7324_v52 = vld [vmem:[#allocation24_spill] sm:$0xff]  ;;  %v7325_v25 = vld [vmem:[#allocation25_spill] sm:$0xff] }
 0x8a0   :  { %3326 = vmatpush1.bf16.msra.mxu0 %v6097_v59  ;;  %3367 = vmatpush1.bf16.msra.mxu1 %v6100_v60  ;;  %v7326_v59 = vld [vmem:[#allocation26_spill] sm:$0xff]  ;;  %v7327_v60 = vld [vmem:[#allocation27_spill] sm:$0xff] }
 0x8a1   :  { %3327 = vmatprep.subr.bf16.mxu0 %v6103_v63  ;;  %3368 = vmatprep.subr.bf16.mxu1 %v6106_v1  ;;  %v7328_v63 = vld [vmem:[#allocation28_spill] sm:$0xff]  ;;  %v7329_v1 = vld [vmem:[#allocation29_spill] sm:$0xff] }
 0x8a4   :  { %3328 = vmatpush1.bf16.msra.mxu0 %v7316_v37  ;;  %3369 = vmatpush1.bf16.msra.mxu1 %v7317_v38  ;;  %v7343_v37 = vld [vmem:[#allocation47_spill] sm:$0xff]  ;;  %v7345_v38 = vld [vmem:[#allocation49_spill] sm:$0xff] }
 0x8a5   :  { %3329 = vmatprep.subr.bf16.mxu0 %v7318_v42  ;;  %3370 = vmatprep.subr.bf16.mxu1 %v7319_v43  ;;  %v7346_v42 = vld [vmem:[#allocation89_spill] sm:$0xff]  ;;  %v7347_v43 = vld [vmem:[#allocation90_spill] sm:$0xff] }
 0x8a8   :  { %3330 = vmatpush1.bf16.msra.mxu0 %v7320_v48  ;;  %3371 = vmatpush1.bf16.msra.mxu1 %v7321_v49  ;;  %v7348_v48 = vld [vmem:[#allocation91_spill] sm:$0xff]  ;;  %v7349_v49 = vld [vmem:[#allocation92_spill] sm:$0xff] }
 0x8a9   :  { %3331 = vmatprep.subr.bf16.mxu0 %v7322_v27  ;;  %3372 = vmatprep.subr.bf16.mxu1 %v7323_v51  ;;  %v7350_v27 = vld [vmem:[#allocation50_spill] sm:$0xff]  ;;  %v7351_v51 = vld [vmem:[#allocation51_spill] sm:$0xff] }
 0x8ac   :  { %3332 = vmatpush1.bf16.msra.mxu0 %v7324_v52  ;;  %3373 = vmatpush1.bf16.msra.mxu1 %v7325_v25  ;;  %v7352_v52 = vld [vmem:[#allocation52_spill] sm:$0xff]  ;;  %v7353_v25 = vld [vmem:[#allocation53_spill] sm:$0xff] }
 0x8ad   :  { %3333 = vmatprep.subr.bf16.mxu0 %v7326_v59  ;;  %3374 = vmatprep.subr.bf16.mxu1 %v7327_v60  ;;  %v7354_v59 = vld [vmem:[#allocation54_spill] sm:$0xff]  ;;  %v7355_v60 = vld [vmem:[#allocation55_spill] sm:$0xff] }
 0x8b0   :  { %3334 = vmatpush1.bf16.msra.mxu0 %v7328_v63  ;;  %3375 = vmatpush1.bf16.msra.mxu1 %v7329_v1  ;;  %v7356_v63 = vld [vmem:[#allocation56_spill] sm:$0xff]  ;;  %v7357_v1 = vld [vmem:[#allocation57_spill] sm:$0xff] }
 0x8b1   :  { %3335 = vmatprep.subr.bf16.mxu0 %v7330_v41  ;;  %3376 = vmatprep.subr.bf16.mxu1 %v7331_v47  ;;  %v7358_v41 = vld [vmem:[#allocation58_spill] sm:$0xff]  ;;  %v7359_v47 = vld [vmem:[#allocation59_spill] sm:$0xff] }
 0x8b4   :  { %3336 = vmatpush1.bf16.msra.mxu0 %v7332_v56  ;;  %3377 = vmatpush1.bf16.msra.mxu1 %v7333_v57  ;;  %v7360_v56 = vld [vmem:[#allocation60_spill] sm:$0xff]  ;;  %v7361_v57 = vld [vmem:[#allocation61_spill] sm:$0xff] }
 0x8b5   :  { %3433 = vmatprep.subr.bf16.mxu0 %v7334_v31  ;;  %3474 = vmatprep.subr.bf16.mxu1 %v7335_v17  ;;  %v7362_v31 = vld [vmem:[#allocation62_spill] sm:$0xff]  ;;  %v7363_v17 = vld [vmem:[#allocation63_spill] sm:$0xff] }
 0x8b7   :  { %3354 = vmatmul.mubr.bf16.vlgmr.msra.gmra.mrb[100].mxu0 %v3120_v40  ;;  %3395 = vmatmul.mubr.bf16.vlgmr.msra.gmra.mrb[100].mxu1 %v3120_v40  ;;  %v7344_v40 = vld [vmem:[#allocation48_spill] sm:$0xff] }
 0x8b8   :  { %3434 = vmatpush1.bf16.msra.mxu0 %v7336_v8  ;;  %3475 = vmatpush1.bf16.msra.mxu1 %v7337_v58  ;;  %v7364_v8 = vld [vmem:[#allocation64_spill] sm:$0xff]  ;;  %v7365_v58 = vld [vmem:[#allocation65_spill] sm:$0xff] }
 0x8b9   :  { %3435 = vmatprep.subr.bf16.mxu0 %v7338_v24  ;;  %3476 = vmatprep.subr.bf16.mxu1 %v7339_v11  ;;  %v7366_v24 = vld [vmem:[#allocation66_spill] sm:$0xff]  ;;  %v7367_v11 = vld [vmem:[#allocation67_spill] sm:$0xff] }
 0x8ba   :  { %3465 = vmatprep.mubr.bf16.mxu0 %v6936_v35  ;;  %3506 = vmatprep.mubr.bf16.mxu1 %v6936_v35 }
 0x8bc   :  { %3436 = vmatpush1.bf16.msra.mxu0 %v7340_v3  ;;  %3477 = vmatpush1.bf16.msra.mxu1 %v7341_v26 }
 0x8bd   :  { %3437 = vmatprep.subr.bf16.mxu0 %v7342_v15  ;;  %3478 = vmatprep.subr.bf16.mxu1 %v7343_v37 }
 0x8c0   :  { %3438 = vmatpush1.bf16.msra.mxu0 %v7344_v40  ;;  %3479 = vmatpush1.bf16.msra.mxu1 %v7345_v38 }
 0x8c1   :  { %3439 = vmatprep.subr.bf16.mxu0 %v7346_v42  ;;  %3480 = vmatprep.subr.bf16.mxu1 %v7347_v43 }
 0x8c4   :  { %3440 = vmatpush1.bf16.msra.mxu0 %v7348_v48  ;;  %3481 = vmatpush1.bf16.msra.mxu1 %v7349_v49 }
 0x8c5   :  { %3441 = vmatprep.subr.bf16.mxu0 %v7350_v27  ;;  %3482 = vmatprep.subr.bf16.mxu1 %v7351_v51 }
 0x8c8   :  { %3442 = vmatpush1.bf16.msra.mxu0 %v7352_v52  ;;  %3483 = vmatpush1.bf16.msra.mxu1 %v7353_v25 }
 0x8c9   :  { %3443 = vmatprep.subr.bf16.mxu0 %v7354_v59  ;;  %3484 = vmatprep.subr.bf16.mxu1 %v7355_v60 }
 0x8cc   :  { %3444 = vmatpush1.bf16.msra.mxu0 %v7356_v63  ;;  %3485 = vmatpush1.bf16.msra.mxu1 %v7357_v1 }
 0x8cd   :  { %3445 = vmatprep.subr.bf16.mxu0 %v7358_v41  ;;  %3486 = vmatprep.subr.bf16.mxu1 %v7359_v47 }
 0x8d0   :  { %3446 = vmatpush1.bf16.msra.mxu0 %v7360_v56  ;;  %3487 = vmatpush1.bf16.msra.mxu1 %v7361_v57 }
 0x8d1   :  { %3447 = vmatprep.subr.bf16.mxu0 %v7362_v31  ;;  %3488 = vmatprep.subr.bf16.mxu1 %v7363_v17 }
 0x8d4   :  { %3448 = vmatpush1.bf16.msra.mxu0 %v7364_v8  ;;  %3489 = vmatpush1.bf16.msra.mxu1 %v7365_v58  ;;  %v7368_v58 = vld [vmem:[#allocation21_spill] sm:$0xff] }
 0x8d5   :  { %3515 = vmatprep.subr.bf16.mxu0 %v7366_v24  ;;  %3556 = vmatprep.subr.bf16.mxu1 %v7367_v11 }
 0x94a   :  { %v3156_v3 = vpop.f32.mrb[92].mxu0  ;;  %v3197_v26 = vpop.f32.mrb[92].mxu1 }
 0x94b   :  { %v3158_v15 = vpop.f32.mrb[93].mxu0  ;;  %v3199_v37 = vpop.f32.mrb[93].mxu1 }
 0x94c   :  { %v3160_v40 = vpop.f32.mrb[94].mxu0  ;;  %v3201_v38 = vpop.f32.mrb[94].mxu1 }
 0x94d   :  { %v3161_v42 = vpop.f32.mrb[95].mxu0  ;;  %v3202_v43 = vpop.f32.mrb[95].mxu1 }
 0x96a   :  { %v3238_v48 = vpop.f32.mrb[96].mxu0  ;;  %v3279_v49 = vpop.f32.mrb[96].mxu1 }
 0x96b   :  { %v3239_v27 = vadd.f32 %v3238_v48, %v3156_v3  ;;  %v3280_v51 = vadd.f32 %v3279_v49, %v3197_v26  ;;  %v3240_v52 = vpop.f32.mrb[97].mxu0  ;;  %v3281_v25 = vpop.f32.mrb[97].mxu1 }
 0x96c   :  { %v3241_v59 = vadd.f32 %v3240_v52, %v3158_v15  ;;  %v3282_v60 = vadd.f32 %v3281_v25, %v3199_v37  ;;  %v3242_v63 = vpop.f32.mrb[98].mxu0  ;;  %v3283_v1 = vpop.f32.mrb[98].mxu1  ;;  %v7369_v25 = vld [vmem:[#allocation101_spill] sm:$0xff] }
 0x96d   :  { %v3286_v41 = vadd.f32 %v3239_v27, %v5448_v62  ;;  %v3243_v47 = vpop.f32.mrb[99].mxu0  ;;  %v3284_v56 = vpop.f32.mrb[99].mxu1  ;;  %v3288_v8 = vadd.f32 %v3280_v51, %v7254_v12 }
 0x96e   :  { %v3287_v57 = vadd.f32 %v3241_v59, %v5452_v0  ;;  %v3289_v24 = vadd.f32 %v3282_v60, %v7368_v58  ;;  %v7370_v60 = vld [vmem:[#allocation102_spill] sm:$0xff]  ;;  %v7371_v47 = vld [vmem:[#allocation103_spill] sm:$0xff] }
 0x96f   :  { %v3934_v31 = vmul.f32 -1.442695, %v3286_v41  ;;  %v3936_v11 = vmul.f32 -1.442695, %v3288_v8 }
 0x970   :  { %v3935_v17 = vmul.f32 -1.442695, %v3287_v57  ;;  %v7372_v57 = vld [vmem:[#allocation104_spill] sm:$0xff] }
 0x971   :  { %4407 = vpow2.f32 %v3934_v31 }
 0x972   :  { %4409 = vpow2.f32 %v3935_v17 }
 0x973   :  { %4411 = vtanh.f32 %v3289_v24 }
 0x974   :  { %4413 = vpow2.f32 %v3936_v11 }
 0x97b   :  { %v4408_v3 = vpop.eup %4407 }
 0x97c   :  { %v3299_v26 = vadd.f32 1.0, %v4408_v3  ;;  %v4410_v15 = vpop.eup %4409 }
 0x97d   :  { %v3300_v37 = vadd.f32 1.0, %v4410_v15  ;;  %v4412_v40 = vpop.eup %4411 }
 0x97e   :  { %4415 = vrcp.f32 %v3299_v26  ;;  %v4414_v38 = vpop.eup %4413 }
 0x97f   :  { %4417 = vrcp.f32 %v3300_v37  ;;  %v3301_v49 = vadd.f32 1.0, %v4414_v38 }
 0x981   :  { %4419 = vrcp.f32 %v3301_v49 }
 0x988   :  { %v4416_v42 = vpop.eup %4415 }
 0x989   :  { %v3310_v43 = vmul.f32 %v4416_v42, %v4412_v40  ;;  %v4418_v48 = vpop.eup %4417 }
 0x98a   :  { %v3355_v27 = vpop.f32.mrb[100].mxu0  ;;  %v3396_v52 = vpop.f32.mrb[100].mxu1  ;;  %v3309_v51 = vmul.f32 %v4418_v48, %v6456_v10 }
 0x98b   :  { %v3403_v59 = vadd.f32 %v3355_v27, %v7369_v25  ;;  %v3405_v63 = vadd.f32 %v3396_v52, %v7370_v60  ;;  %v3357_v1 = vpop.f32.mrb[101].mxu0  ;;  %v3398_v41 = vpop.f32.mrb[101].mxu1 }
 0x98c   :  { %v3404_v56 = vadd.f32 %v3357_v1, %v7371_v47  ;;  %v3406_v31 = vadd.f32 %v3398_v41, %v7372_v57  ;;  %v3359_v17 = vpop.f32.mrb[102].mxu0  ;;  %v3400_v8 = vpop.f32.mrb[102].mxu1  ;;  %v6574_v24 = vadd.f32 %v3310_v43, %v3309_v51 }
 0x98d   :  { %v3937_v11 = vmul.f32 -1.442695, %v3403_v59  ;;  %v3360_v3 = vpop.f32.mrb[103].mxu0  ;;  %v3401_v26 = vpop.f32.mrb[103].mxu1  ;;  %v3939_v37 = vmul.f32 -1.442695, %v3405_v63 }
 0x98e   :  { %v3938_v15 = vmul.f32 -1.442695, %v3404_v56  ;;  %4421 = vtanh.f32 %v6574_v24  ;;  %v4420_v10 = vpop.eup %4419 }
 0x98f   :  { %4423 = vpow2.f32 %v3937_v11 }
 0x990   :  { %4425 = vpow2.f32 %v3938_v15 }
 0x991   :  { %4427 = vtanh.f32 %v3406_v31 }
 0x992   :  { %4429 = vpow2.f32 %v3939_v37 }
 0x998   :  { %v4422_v40 = vpop.eup %4421 }
 0x999   :  { %v4424_v38 = vpop.eup %4423  ;;  %v3313_v42 = vmul.f32 %v4422_v40, %v4420_v10 }
 0x99a   :  { %v3416_v48 = vadd.f32 1.0, %v4424_v38  ;;  %v4426_v27 = vpop.eup %4425 }
 0x99b   :  { %v3432_v43 = vpack.c.bf16 %v3313_v42, %v3313_v42  ;;  %v3417_v52 = vadd.f32 1.0, %v4426_v27  ;;  %v4428_v49 = vpop.eup %4427 }
 0x99c   :  { %4431 = vrcp.f32 %v3416_v48 }
 0x99d   :  { %3466 = vmatmul.mubr.bf16.vlgmr.msra.gmra.mrb[104].mxu0 %v3432_v43  ;;  %3507 = vmatmul.mubr.bf16.vlgmr.msra.gmra.mrb[104].mxu1 %v3432_v43  ;;  %4433 = vrcp.f32 %v3417_v52 }
 0x99e   :  { %3516 = vmatpush1.bf16.msra.mxu0 %v6213_v55  ;;  %3557 = vmatpush1.bf16.msra.mxu1 %v6216_v21  ;;  %v4430_v55 = vpop.eup %4429 }
 0x99f   :  { %3517 = vmatprep.subr.bf16.mxu0 %v6219_v19  ;;  %3558 = vmatprep.subr.bf16.mxu1 %v6222_v29  ;;  %v3418_v19 = vadd.f32 1.0, %v4430_v55  ;;  %v3943_v55 = vld [vmem:[%s6638_s8] ss:$0 sm:$0xff] }
 0x9a0   :  { %3547 = vmatprep.mubr.bf16.mxu0 %v6936_v35  ;;  %3588 = vmatprep.mubr.bf16.mxu1 %v6936_v35 }
 0x9a1   :  { %4435 = vrcp.f32 %v3418_v19 }
 0x9a2   :  { %3518 = vmatpush1.bf16.msra.mxu0 %v6227_v23  ;;  %3559 = vmatpush1.bf16.msra.mxu1 %v6230_v22 }
 0x9a3   :  { %3519 = vmatprep.subr.bf16.mxu0 %v6233_v16  ;;  %3560 = vmatprep.subr.bf16.mxu1 %v6236_v7 }
 0x9a6   :  { %v4432_v51 = vpop.eup %4431  ;;  %3520 = vmatpush1.bf16.msra.mxu0 %v6239_v20  ;;  %3561 = vmatpush1.bf16.msra.mxu1 %v6242_v14  ;;  %v4191_v14 = vld [vmem:[#allocation12] sm:$0xff]  }
 0x9a7   :  { %v3427_v21 = vmul.f32 %v4432_v51, %v4428_v49  ;;  %3521 = vmatprep.subr.bf16.mxu0 %v6245_v18  ;;  %3562 = vmatprep.subr.bf16.mxu1 %v6248_v28  ;;  %v4434_v35 = vpop.eup %4433  ;;  %v4822_v18 = vmov 0.0   ;;  %v4192_v28 = vld [vmem:[#allocation12 + $0x8] sm:$0xff]  }
 0x9a8   :  { %v3426_v29 = vmul.f32 %v4434_v35, %v6476_v30 }
 0x9aa   :  { %3522 = vmatpush1.bf16.msra.mxu0 %v6252_v5  ;;  %3563 = vmatpush1.bf16.msra.mxu1 %v6255_v34  ;;  %v3428_v23 = vadd.f32 %v3427_v21, %v3426_v29  ;;  %v4193_v5 = vld [vmem:[#allocation12 + $0x10] sm:$0xff]   ;;  %v4194_v34 = vld [vmem:[#allocation12 + $0x18] sm:$0xff]  }
 0x9ab   :  { %3523 = vmatprep.subr.bf16.mxu0 %v6260_v61  ;;  %3564 = vmatprep.subr.bf16.mxu1 %v6263_v33  ;;  %v4436_v22 = vpop.eup %4435  ;;  %v4195_v61 = vld [vmem:[#allocation12 + $0x20] sm:$0xff]   ;;  %v4196_v33 = vld [vmem:[#allocation12 + $0x28] sm:$0xff]  }
 0x9ac   :  { %4437 = vtanh.f32 %v3428_v23 }
 0x9ae   :  { %3524 = vmatpush1.bf16.msra.mxu0 %v7307_v32  ;;  %3565 = vmatpush1.bf16.msra.mxu1 %v7308_v45 }
 0x9af   :  { %3525 = vmatprep.subr.bf16.mxu0 %v7309_v36  ;;  %3566 = vmatprep.subr.bf16.mxu1 %v7310_v50 }
 0x9b2   :  { %3526 = vmatpush1.bf16.msra.mxu0 %v7311_v4  ;;  %3567 = vmatpush1.bf16.msra.mxu1 %v7312_v9 }
 0x9b3   :  { %3527 = vmatprep.subr.bf16.mxu0 %v7313_v39  ;;  %3568 = vmatprep.subr.bf16.mxu1 %v7314_v44 }
 0x9b6   :  { %3528 = vmatpush1.bf16.msra.mxu0 %v7315_v2  ;;  %3569 = vmatpush1.bf16.msra.mxu1 %v6294_v13  ;;  %v4438_v16 = vpop.eup %4437 }
 0x9b7   :  { %3529 = vmatprep.subr.bf16.mxu0 %v6297_v53  ;;  %3570 = vmatprep.subr.bf16.mxu1 %v6300_v54  ;;  %v3430_v7 = vmul.f32 %v4438_v16, %v4436_v22  ;;  %v4198_v53 = vld [vmem:[#allocation12 + $0x38] sm:$0xff]  }
 0x9b9   :  { %v3431_v20 = vpack.c.bf16 %v3430_v7, %v3430_v7 }
 0x9ba   :  { %3530 = vmatpush1.bf16.msra.mxu0 %v6303_v46  ;;  %3571 = vmatpush1.bf16.msra.mxu1 %v6306_v6  ;;  %v4197_v6 = vld [vmem:[#allocation12 + $0x30] sm:$0xff]  }
 0x9bb   :  { %3961 = vmatprep.subr.bf16.mxu0 %v4822_v18 }
 0x9bd   :  { %3548 = vmatmul.mubr.bf16.vlgmr.msra.gmra.mrb[108].mxu0 %v3431_v20  ;;  %3589 = vmatmul.mubr.bf16.vlgmr.msra.gmra.mrb[108].mxu1 %v3431_v20 }
 0x9be   :  { %3962 = vmatpush3.bf16.msra.mxu0 %v4191_v14  ;;  %3977 = vmatprep.mubr.msk.bf16.mxu0 %vm4823_vm0, %v4822_v18 }
 0x9bf   :  { %3963 = vmatprep.subr.bf16.mxu0 %v4822_v18 }
 0x9c2   :  { %3964 = vmatpush3.bf16.msra.mxu0 %v4192_v28 }
 0x9c3   :  { %3965 = vmatprep.subr.bf16.mxu0 %v4822_v18 }
 0x9c6   :  { %3966 = vmatpush3.bf16.msra.mxu0 %v4193_v5 }
 0x9c7   :  { %3967 = vmatprep.subr.bf16.mxu0 %v4822_v18 }
 0x9ca   :  { %3968 = vmatpush3.bf16.msra.mxu0 %v4194_v34 }
 0x9cb   :  { %3969 = vmatprep.subr.bf16.mxu0 %v4822_v18 }
 0x9ce   :  { %3970 = vmatpush3.bf16.msra.mxu0 %v4195_v61 }
 0x9cf   :  { %3971 = vmatprep.subr.bf16.mxu0 %v4822_v18 }
 0x9d2   :  { %3972 = vmatpush3.bf16.msra.mxu0 %v4196_v33 }
 0x9d3   :  { %3973 = vmatprep.subr.bf16.mxu0 %v4822_v18 }
 0x9d6   :  { %3974 = vmatpush3.bf16.msra.mxu0 %v4197_v6 }
 0x9d7   :  { %3975 = vmatprep.subr.bf16.mxu0 %v4822_v18 }
 0x9da   :  { %3976 = vmatpush3.bf16.msra.mxu0 %v4198_v53 }
 0xa70   :  { %v3467_v13 = vpop.f32.mrb[104].mxu0  ;;  %v3508_v54 = vpop.f32.mrb[104].mxu1 }
 0xa71   :  { %v3469_v46 = vpop.f32.mrb[105].mxu0  ;;  %v3510_v30 = vpop.f32.mrb[105].mxu1 }
 0xa72   :  { %v3471_v32 = vpop.f32.mrb[106].mxu0  ;;  %v3512_v45 = vpop.f32.mrb[106].mxu1 }
 0xa73   :  { %v3472_v36 = vpop.f32.mrb[107].mxu0  ;;  %v3513_v50 = vpop.f32.mrb[107].mxu1 }
 0xa90   :  { %v3549_v4 = vpop.f32.mrb[108].mxu0  ;;  %v3590_v9 = vpop.f32.mrb[108].mxu1 }
 0xa91   :  { %v3550_v39 = vadd.f32 %v3549_v4, %v3467_v13  ;;  %v3591_v44 = vadd.f32 %v3590_v9, %v3508_v54  ;;  %v3551_v2 = vpop.f32.mrb[109].mxu0  ;;  %v3592_v25 = vpop.f32.mrb[109].mxu1 }
 0xa92   :  { %v3552_v59 = vadd.f32 %v3551_v2, %v3469_v46  ;;  %v3593_v60 = vadd.f32 %v3592_v25, %v3510_v30  ;;  %v3553_v63 = vpop.f32.mrb[110].mxu0  ;;  %v3594_v1 = vpop.f32.mrb[110].mxu1 }
 0xa93   :  { %v3597_v41 = vadd.f32 %v3550_v39, %v5448_v62  ;;  %v3554_v47 = vpop.f32.mrb[111].mxu0  ;;  %v3595_v56 = vpop.f32.mrb[111].mxu1  ;;  %v3599_v8 = vadd.f32 %v3591_v44, %v7254_v12 }
 0xa94   :  { %v3598_v57 = vadd.f32 %v3552_v59, %v5452_v0  ;;  %v3600_v11 = vadd.f32 %v3593_v60, %v7368_v58 }
 0xa95   :  { %v3940_v31 = vmul.f32 -1.442695, %v3597_v41  ;;  %v3942_v3 = vmul.f32 -1.442695, %v3599_v8 }
 0xa96   :  { %v3941_v17 = vmul.f32 -1.442695, %v3598_v57 }
 0xa97   :  { %4439 = vpow2.f32 %v3940_v31 }
 0xa98   :  { %4441 = vpow2.f32 %v3941_v17 }
 0xa99   :  { %4443 = vtanh.f32 %v3600_v11 }
 0xa9a   :  { %4445 = vpow2.f32 %v3942_v3 }
 0xaa1   :  { %v4440_v26 = vpop.eup %4439 }
 0xaa2   :  { %v3610_v15 = vadd.f32 1.0, %v4440_v26  ;;  %v4442_v10 = vpop.eup %4441 }
 0xaa3   :  { %v3611_v62 = vadd.f32 1.0, %v4442_v10  ;;  %v4444_v37 = vpop.eup %4443 }
 0xaa4   :  { %4447 = vrcp.f32 %v3610_v15  ;;  %v4446_v40 = vpop.eup %4445 }
 0xaa5   :  { %4449 = vrcp.f32 %v3611_v62  ;;  %v3612_v48 = vadd.f32 1.0, %v4446_v40 }
 0xaa7   :  { %4451 = vrcp.f32 %v3612_v48 }
 0xaae   :  { %v4448_v0 = vpop.eup %4447 }
 0xaaf   :  { %v3621_v38 = vmul.f32 %v4448_v0, %v4444_v37  ;;  %v4450_v42 = vpop.eup %4449 }
 0xab0   :  { %v3620_v27 = vmul.f32 %v4450_v42, %v6574_v24 }
 0xab1   :  { %v4452_v58 = vpop.eup %4451 }
 0xab2   :  { %v3622_v12 = vadd.f32 %v3621_v38, %v3620_v27 }
 0xab4   :  { %4453 = vtanh.f32 %v3622_v12 }
 0xabe   :  { %v4454_v43 = vpop.eup %4453 }
 0xabf   :  { %v3624_v52 = vmul.f32 %v4454_v43, %v4452_v58 }
 0xac1   :  { %v3625_v49 = vpack.c.bf16 %v3624_v52, %v3624_v52 }
 0xac3   :  { %3978 = vmatmul.mubr.bf16.vlgmr.msra.gmra.mrb[112].mxu0 %v3625_v49 }
 0xb96   :  { %v3731_v51 = vpop.f32.mrb[112].mxu0 }
 0xb97   :  { %v3732_v21 = vadd.f32 %v3943_v55, %v3731_v51  ;;  %v3979_v35 = vpop.f32.mrb[113].mxu0 }
 0xb98   :  { %v3734_v19 = vpop.f32.mrb[114].mxu0 }
 0xb99   :  { %3737 = vst [vmem:[#allocation14] sm:$0xff] %v3732_v21  ;;  %v3980_v24 = vpop.f32.mrb[115].mxu0 }
 0xb9a   :  { %4790 = shalt.err (!%p4787_p10)
}
 0xb9b   :  { %s4791_s8 = scalar_lea.hbm %s6639_s9, 128 }
 0xb9c   :  { %p4792_p11 = scmp.ne.s32.totalorder %s6639_s9, %s4791_s8  ;;  %p4795_p12 = scmp.lt.u32.totalorder %s4791_s8, %s6639_s9 }
 0xb9e   :  { %p4797_p13 = pnand %p4795_p12, %p4792_p11 }
 0xba0   :  { %4800 = shalt.err (!%p4797_p13)
}
 0xba1   :  { %3747 = dma.vmem_to_hbm [thread:$0]  %s3745_s21, 128, %s6639_s9, [#allocation5]  }
 0xba2   :  { %4809 = dma.done.wait [#allocation5], 128  }
 0xba3   :  { %4810 = vsyncadd [#allocation5], 4294967168 }
 0xba4   :  { %3751 = vsyncpa [#allocation4], 1 }
 0xba5   :  { %3752 = vsyncpa [#allocation7], 1 }
 0xba6   :  { %3753 = vsyncpa [#allocation10], 1 }
 0xba7   :  { %3754 = vsyncpa [#allocation13], 1 }
 0xba8   :  { %3755 = vsyncpa [#allocation5], 1 }

</bundles_post_ra>
